<compile_context>
chip_gen: v6e
topology: v6e:2x2x1
jax: 0.10.0
libtpu: 0.0.40
codegen_flags: <defaults>
</compile_context>

<pallas_src>
import math

import jax
import jax.numpy as jnp
from jax.experimental import pallas as pl
from jax.experimental.pallas import tpu as pltpu

# ---- small, forward-consistent config -------------------------------------
VOCAB = 32
NUM_CLASSES = 4
D_MODEL = 32
NHEAD = 4
HEAD_DIM = D_MODEL // NHEAD
NUM_LAYERS = 2
DIM_FF = 64
MAX_SEQ = 8
PAD_IDX = 0
ORTHO_W = 0.01
LN_EPS = 1e-5
NEG_INF = -1e9
BATCH = 2
SEQ = 8
N_PROJ = 3 * NUM_LAYERS          # Q/K/V matrices across all layers


# ---------------------------------------------------------------------------
# Fused forward kernel: encoder layers + classifier + ortho penalty,
# one grid step, activations resident in VMEM.
# ---------------------------------------------------------------------------
def fused_forward_kernel(x_ref, maskb_ref,
                         wqkv_ref, bqkv_ref, wo_ref, bo_ref,
                         ln1w_ref, ln1b_ref, w1_ref, b1_ref, w2_ref, b2_ref,
                         ln2w_ref, ln2b_ref, clf_w_ref, clf_b_ref, proj_ref,
                         logits_ref, penalty_ref):
    B, S, D = x_ref.shape
    BS = B * S
    scale = 1.0 / math.sqrt(HEAD_DIM)

    x = x_ref[...].reshape(BS, D)          # [B*S, D] float32 (stays in vregs/VMEM)
    bias = maskb_ref[...]                  # [B, 1, S] additive key-padding bias

    for l in range(NUM_LAYERS):            # static unroll over layers
        # ---- fused Q|K|V projection (bf16 operands, f32 accumulation) -----
        xb = x.astype(jnp.bfloat16)
        qkv = jnp.dot(xb, wqkv_ref[l],
                      preferred_element_type=jnp.float32) + bqkv_ref[l]  # [BS, 3D]
        qkv3 = qkv.reshape(B, S, 3 * D)

        # ---- multi-head attention: batched over B, heads statically -------
        wo_l = wo_ref[l]                                            # [D, D] bf16
        attn = jnp.zeros((BS, D), jnp.float32)
        for h in range(NHEAD):
            lo = h * HEAD_DIM
            hi = lo + HEAD_DIM
            q = qkv3[:, :, lo:hi].astype(jnp.bfloat16)              # [B, S, Hd]
            k = qkv3[:, :, D + lo:D + hi].astype(jnp.bfloat16)
            v = qkv3[:, :, 2 * D + lo:2 * D + hi].astype(jnp.bfloat16)

            s = jnp.einsum('bqd,bkd->bqk', q, k,
                           preferred_element_type=jnp.float32) * scale
            s = s + bias                                            # mask keys
            s = s - jnp.max(s, axis=-1, keepdims=True)              # f32 softmax
            p = jnp.exp(s)
            p = p / jnp.sum(p, axis=-1, keepdims=True)

            ctx = jnp.einsum('bqk,bkd->bqd', p.astype(jnp.bfloat16), v,
                             preferred_element_type=jnp.float32)    # [B, S, Hd]
            # fold output projection per head (avoids lane-axis concat)
            attn = attn + jnp.dot(
                ctx.reshape(BS, HEAD_DIM).astype(jnp.bfloat16),
                wo_l[lo:hi, :], preferred_element_type=jnp.float32)
        attn = attn + bo_ref[l]

        # ---- residual + LayerNorm 1 (post-norm, f32) -----------------------
        h1 = x + attn
        mu1 = jnp.mean(h1, axis=-1, keepdims=True)
        var1 = jnp.mean((h1 - mu1) ** 2, axis=-1, keepdims=True)
        h1n = (h1 - mu1) * jax.lax.rsqrt(var1 + LN_EPS) * ln1w_ref[l] + ln1b_ref[l]

        # ---- feed-forward (ReLU), bf16 MXU operands ------------------------
        ff = jnp.dot(h1n.astype(jnp.bfloat16), w1_ref[l],
                     preferred_element_type=jnp.float32) + b1_ref[l]
        ff = jnp.maximum(ff, 0.0)
        ff = jnp.dot(ff.astype(jnp.bfloat16), w2_ref[l],
                     preferred_element_type=jnp.float32) + b2_ref[l]

        # ---- residual + LayerNorm 2 ----------------------------------------
        h2 = h1n + ff
        mu2 = jnp.mean(h2, axis=-1, keepdims=True)
        var2 = jnp.mean((h2 - mu2) ** 2, axis=-1, keepdims=True)
        x = (h2 - mu2) * jax.lax.rsqrt(var2 + LN_EPS) * ln2w_ref[l] + ln2b_ref[l]

    # ---- classifier on the CLS token (fused, no HBM round trip) ------------
    cls = x.reshape(B, S, D)[:, 0, :]                               # [B, D]
    logits_ref[...] = (jnp.dot(cls, clf_w_ref[...],
                               preferred_element_type=jnp.float32)
                       + clf_b_ref[...])

    # ---- orthogonality penalty over the Q/K/V projections -------------------
    # ||W^T W - I||_F^2 = sum(G^2) - 2*trace(G) + D,  trace(W^T W) = sum(W^2)
    # TODO(synk): exact OSPA get_orthogonality_penalty formula unavailable;
    # using weight * sum_l ||W^T W - I||_F^2 (enforce_mode='regularize').
    acc = 0.0
    for n in range(N_PROJ):                  # static unroll, single grid step
        wn = proj_ref[n]                     # [D, D] float32
        gram = jnp.dot(wn.T, wn, preferred_element_type=jnp.float32)
        acc = acc + jnp.sum(gram * gram) - 2.0 * jnp.sum(wn * wn)
    pen = acc + float(N_PROJ * D_MODEL)
    penalty_ref[...] = (ORTHO_W * pen) * jnp.ones((1, 1), jnp.float32)


def fused_forward(x, mask_bias, p):
    B, S, D = x.shape

    def full(arr):
        nd = arr.ndim
        return pl.BlockSpec(arr.shape, lambda i, nd=nd: (0,) * nd)

    args = (x, mask_bias,
            p["wqkv"], p["bqkv"], p["wo"], p["bo"],
            p["ln1w"], p["ln1b"], p["w1"], p["b1"], p["w2"], p["b2"],
            p["ln2w"], p["ln2b"], p["clf_w"], p["clf_b"], p["proj_stack"])

    logits, penalty = pl.pallas_call(
        fused_forward_kernel,
        out_shape=(jax.ShapeDtypeStruct((B, NUM_CLASSES), jnp.float32),
                   jax.ShapeDtypeStruct((1, 1), jnp.float32)),
        grid=(1,),
        in_specs=[full(a) for a in args],
        out_specs=[pl.BlockSpec((B, NUM_CLASSES), lambda i: (0, 0)),
                   pl.BlockSpec((1, 1), lambda i: (0, 0))],
        compiler_params=pltpu.CompilerParams(
            dimension_semantics=("arbitrary",)),
    )(*args)
    return logits, penalty


# ---------------------------------------------------------------------------
# Parameter init (deterministic, synthetic) and forward pass.
# ---------------------------------------------------------------------------
def sinusoidal_pe(max_len, d_model):
    pos = jnp.arange(max_len, dtype=jnp.float32)[:, None]
    div = jnp.exp(jnp.arange(0, d_model, 2, dtype=jnp.float32)
                  * (-math.log(10000.0) / d_model))
    pe = jnp.zeros((max_len, d_model), jnp.float32)
    pe = pe.at[:, 0::2].set(jnp.sin(pos * div))
    pe = pe.at[:, 1::2].set(jnp.cos(pos * div))
    return pe


def init_params(key):
    k_emb, k_clf, k_layers = jax.random.split(key, 3)

    emb = jax.random.normal(k_emb, (VOCAB, D_MODEL), jnp.float32)
    emb = emb.at[PAD_IDX].set(0.0)           # nn.Embedding padding_idx behavior

    def mat(k, shape, fan_in):
        return jax.random.normal(k, shape, jnp.float32) / math.sqrt(fan_in)

    layers = []
    lkeys = jax.random.split(k_layers, NUM_LAYERS)
    for lk in lkeys:
        ks = jax.random.split(lk, 6)
        layers.append(dict(
            wq=mat(ks[0], (D_MODEL, D_MODEL), D_MODEL),
            wk=mat(ks[1], (D_MODEL, D_MODEL), D_MODEL),
            wv=mat(ks[2], (D_MODEL, D_MODEL), D_MODEL),
            wo=mat(ks[3], (D_MODEL, D_MODEL), D_MODEL),
            w1=mat(ks[4], (D_MODEL, DIM_FF), D_MODEL),
            w2=mat(ks[5], (DIM_FF, D_MODEL), DIM_FF),
        ))

    def stack(fn):
        return jnp.stack([fn(l) for l in layers], axis=0)

    zeros_d = jnp.zeros((NUM_LAYERS, 1, D_MODEL), jnp.float32)
    params = dict(
        emb=emb,
        pos=sinusoidal_pe(MAX_SEQ, D_MODEL),
        # fused Q|K|V weight [L, D, 3D], MXU weights stored bf16
        wqkv=stack(lambda l: jnp.concatenate([l["wq"], l["wk"], l["wv"]],
                                             axis=1)).astype(jnp.bfloat16),
        bqkv=jnp.zeros((NUM_LAYERS, 1, 3 * D_MODEL), jnp.float32),
        wo=stack(lambda l: l["wo"]).astype(jnp.bfloat16),
        bo=zeros_d,
        ln1w=jnp.ones((NUM_LAYERS, 1, D_MODEL), jnp.float32),
        ln1b=zeros_d,
        w1=stack(lambda l: l["w1"]).astype(jnp.bfloat16),
        b1=jnp.zeros((NUM_LAYERS, 1, DIM_FF), jnp.float32),
        w2=stack(lambda l: l["w2"]).astype(jnp.bfloat16),
        b2=zeros_d,
        ln2w=jnp.ones((NUM_LAYERS, 1, D_MODEL), jnp.float32),
        ln2b=zeros_d,
        clf_w=mat(jax.random.split(k_clf)[0], (D_MODEL, NUM_CLASSES), D_MODEL),
        clf_b=jnp.zeros((1, NUM_CLASSES), jnp.float32),
        # float32 stack of Q/K/V projections for the orthogonality penalty
        proj_stack=jnp.stack(
            [w for l in layers for w in (l["wq"], l["wk"], l["wv"])], axis=0),
    )
    return params


def sequence_classifier_forward(params, input_ids):
    B, S = input_ids.shape
    pad_mask = (input_ids == PAD_IDX)
    mask_bias = jnp.where(pad_mask, NEG_INF, 0.0).astype(jnp.float32)[:, None, :]

    # embedding * sqrt(d_model) + positional encoding (glue; dropout = no-op)
    x = params["emb"][input_ids] * math.sqrt(D_MODEL)
    x = x + params["pos"][None, :S, :]

    logits, penalty = fused_forward(x.astype(jnp.float32), mask_bias, params)
    return logits, penalty[0, 0]


if __name__ == "__main__":
    key = jax.random.PRNGKey(0)
    kp, kt = jax.random.split(key)
    params = init_params(kp)

    # token ids in [1, VOCAB); pad the tail of the second sequence to exercise
    # the key-padding mask (pad_idx = 0).
    input_ids = jax.random.randint(kt, (BATCH, SEQ), 1, VOCAB, dtype=jnp.int32)
    input_ids = input_ids.at[1, -2:].set(PAD_IDX)

    fwd = jax.jit(sequence_classifier_forward)
    logits, penalty = fwd(params, input_ids)
    jax.block_until_ready(logits)
    jax.block_until_ready(penalty)

    assert logits.shape == (BATCH, NUM_CLASSES)
    assert penalty.shape == ()
    assert bool(jnp.all(jnp.isfinite(logits)))
    assert bool(jnp.isfinite(penalty))
    print("KERNEL_OK")
</pallas_src>

<mosaic_0001>
module attributes {stable_mosaic.version = 11 : i64} {
  func.func @fused_forward_kernel(%arg0: i32, %arg1: memref<2x8x32xf32, #tpu.memory_space<vmem>>, %arg2: memref<2x1x8xf32, #tpu.memory_space<vmem>>, %arg3: memref<2x32x96xbf16, #tpu.memory_space<vmem>>, %arg4: memref<2x1x96xf32, #tpu.memory_space<vmem>>, %arg5: memref<2x32x32xbf16, #tpu.memory_space<vmem>>, %arg6: memref<2x1x32xf32, #tpu.memory_space<vmem>>, %arg7: memref<2x1x32xf32, #tpu.memory_space<vmem>>, %arg8: memref<2x1x32xf32, #tpu.memory_space<vmem>>, %arg9: memref<2x32x64xbf16, #tpu.memory_space<vmem>>, %arg10: memref<2x1x64xf32, #tpu.memory_space<vmem>>, %arg11: memref<2x64x32xbf16, #tpu.memory_space<vmem>>, %arg12: memref<2x1x32xf32, #tpu.memory_space<vmem>>, %arg13: memref<2x1x32xf32, #tpu.memory_space<vmem>>, %arg14: memref<2x1x32xf32, #tpu.memory_space<vmem>>, %arg15: memref<32x4xf32, #tpu.memory_space<vmem>>, %arg16: memref<1x4xf32, #tpu.memory_space<vmem>>, %arg17: memref<6x32x32xf32, #tpu.memory_space<vmem>>, %arg18: memref<2x4xf32, #tpu.memory_space<vmem>>, %arg19: memref<1x1xf32, #tpu.memory_space<vmem>>) attributes {dimension_semantics = [#tpu.dimension_semantics<arbitrary>], iteration_bounds = array<i64: 1>, scalar_prefetch = 0 : i64, scratch_operands = 0 : i64, tpu.core_type = #tpu.core_type<tc>, window_params = [{pipeline_mode = #tpu.pipeline_mode<synchronous>, transform_indices = @transform_0, window_bounds = array<i64: 2, 8, 32>}, {pipeline_mode = #tpu.pipeline_mode<synchronous>, transform_indices = @transform_1, window_bounds = array<i64: 2, 1, 8>}, {pipeline_mode = #tpu.pipeline_mode<synchronous>, transform_indices = @transform_2, window_bounds = array<i64: 2, 32, 96>}, {pipeline_mode = #tpu.pipeline_mode<synchronous>, transform_indices = @transform_3, window_bounds = array<i64: 2, 1, 96>}, {pipeline_mode = #tpu.pipeline_mode<synchronous>, transform_indices = @transform_4, window_bounds = array<i64: 2, 32, 32>}, {pipeline_mode = #tpu.pipeline_mode<synchronous>, transform_indices = @transform_5, window_bounds = array<i64: 2, 1, 32>}, {pipeline_mode = #tpu.pipeline_mode<synchronous>, transform_indices = @transform_6, window_bounds = array<i64: 2, 1, 32>}, {pipeline_mode = #tpu.pipeline_mode<synchronous>, transform_indices = @transform_7, window_bounds = array<i64: 2, 1, 32>}, {pipeline_mode = #tpu.pipeline_mode<synchronous>, transform_indices = @transform_8, window_bounds = array<i64: 2, 32, 64>}, {pipeline_mode = #tpu.pipeline_mode<synchronous>, transform_indices = @transform_9, window_bounds = array<i64: 2, 1, 64>}, {pipeline_mode = #tpu.pipeline_mode<synchronous>, transform_indices = @transform_10, window_bounds = array<i64: 2, 64, 32>}, {pipeline_mode = #tpu.pipeline_mode<synchronous>, transform_indices = @transform_11, window_bounds = array<i64: 2, 1, 32>}, {pipeline_mode = #tpu.pipeline_mode<synchronous>, transform_indices = @transform_12, window_bounds = array<i64: 2, 1, 32>}, {pipeline_mode = #tpu.pipeline_mode<synchronous>, transform_indices = @transform_13, window_bounds = array<i64: 2, 1, 32>}, {pipeline_mode = #tpu.pipeline_mode<synchronous>, transform_indices = @transform_14, window_bounds = array<i64: 32, 4>}, {pipeline_mode = #tpu.pipeline_mode<synchronous>, transform_indices = @transform_15, window_bounds = array<i64: 1, 4>}, {pipeline_mode = #tpu.pipeline_mode<synchronous>, transform_indices = @transform_16, window_bounds = array<i64: 6, 32, 32>}, {pipeline_mode = #tpu.pipeline_mode<synchronous>, transform_indices = @transform_17, window_bounds = array<i64: 2, 4>}, {pipeline_mode = #tpu.pipeline_mode<synchronous>, transform_indices = @transform_18, window_bounds = array<i64: 1, 1>}]} {
    %c0 = arith.constant 0 : index
    %c0_0 = arith.constant 0 : index
    %c0_1 = arith.constant 0 : index
    %0 = vector.load %arg1[%c0, %c0_0, %c0_1] : memref<2x8x32xf32, #tpu.memory_space<vmem>>, vector<2x8x32xf32>
    %1 = vector.shape_cast %0 : vector<2x8x32xf32> to vector<16x32xf32>
    %c0_2 = arith.constant 0 : index
    %c0_3 = arith.constant 0 : index
    %c0_4 = arith.constant 0 : index
    %2 = vector.load %arg2[%c0_2, %c0_3, %c0_4] : memref<2x1x8xf32, #tpu.memory_space<vmem>>, vector<2x1x8xf32>
    %3 = arith.truncf %1 : vector<16x32xf32> to vector<16x32xbf16>
    %c0_5 = arith.constant 0 : index
    %c0_6 = arith.constant 0 : index
    %c0_7 = arith.constant 0 : index
    %4 = vector.load %arg3[%c0_5, %c0_6, %c0_7] : memref<2x32x96xbf16, #tpu.memory_space<vmem>>, vector<1x32x96xbf16>
    %5 = vector.shape_cast %4 : vector<1x32x96xbf16> to vector<32x96xbf16>
    %cst = arith.constant dense<0.000000e+00> : vector<16x96xf32>
    %6 = tpu.matmul %3, %5, %cst {dimension_numbers = #tpu.dot_dimension_numbers<[1], [0], [0], [1], [0, 0, 1, 1], [], []>} : vector<16x32xbf16>, vector<32x96xbf16>, vector<16x96xf32> -> vector<16x96xf32>
    %c0_8 = arith.constant 0 : index
    %c0_9 = arith.constant 0 : index
    %c0_10 = arith.constant 0 : index
    %7 = vector.load %arg4[%c0_8, %c0_9, %c0_10] : memref<2x1x96xf32, #tpu.memory_space<vmem>>, vector<1x1x96xf32>
    %8 = vector.shape_cast %7 : vector<1x1x96xf32> to vector<1x96xf32>
    %9 = vector.broadcast %8 : vector<1x96xf32> to vector<16x96xf32>
    %10 = arith.addf %6, %9 : vector<16x96xf32>
    %11 = vector.shape_cast %10 : vector<16x96xf32> to vector<2x8x96xf32>
    %c0_11 = arith.constant 0 : index
    %c0_12 = arith.constant 0 : index
    %c0_13 = arith.constant 0 : index
    %12 = vector.load %arg5[%c0_11, %c0_12, %c0_13] : memref<2x32x32xbf16, #tpu.memory_space<vmem>>, vector<1x32x32xbf16>
    %13 = vector.shape_cast %12 : vector<1x32x32xbf16> to vector<32x32xbf16>
    %cst_14 = arith.constant 0.000000e+00 : f32
    %14 = vector.broadcast %cst_14 : f32 to vector<16x32xf32>
    %15 = vector.extract_strided_slice %11 {offsets = [0, 0, 0], sizes = [2, 8, 8], strides = [1, 1, 1]} : vector<2x8x96xf32> to vector<2x8x8xf32>
    %16 = arith.truncf %15 : vector<2x8x8xf32> to vector<2x8x8xbf16>
    %17 = vector.extract_strided_slice %11 {offsets = [0, 0, 32], sizes = [2, 8, 8], strides = [1, 1, 1]} : vector<2x8x96xf32> to vector<2x8x8xf32>
    %18 = arith.truncf %17 : vector<2x8x8xf32> to vector<2x8x8xbf16>
    %19 = vector.extract_strided_slice %11 {offsets = [0, 0, 64], sizes = [2, 8, 8], strides = [1, 1, 1]} : vector<2x8x96xf32> to vector<2x8x8xf32>
    %20 = arith.truncf %19 : vector<2x8x8xf32> to vector<2x8x8xbf16>
    "tpu.trace_start"() <{level = 10 : i32, message = "bqd,bkd->bqk"}> : () -> ()
    %cst_15 = arith.constant dense<0.000000e+00> : vector<2x8x8xf32>
    %21 = tpu.matmul %16, %18, %cst_15 {dimension_numbers = #tpu.dot_dimension_numbers<[2], [2], [1], [1], [0, 0, 0, 1, 1, 1], [0], [0]>} : vector<2x8x8xbf16>, vector<2x8x8xbf16>, vector<2x8x8xf32> -> vector<2x8x8xf32>
    "tpu.trace_stop"() : () -> ()
    %cst_16 = arith.constant 0.353553385 : f32
    %22 = vector.broadcast %cst_16 : f32 to vector<2x8x8xf32>
    %23 = arith.mulf %21, %22 : vector<2x8x8xf32>
    %24 = vector.broadcast %2 : vector<2x1x8xf32> to vector<2x8x8xf32>
    %25 = arith.addf %23, %24 : vector<2x8x8xf32>
    %cst_17 = arith.constant dense<0xFF800000> : vector<2x8xf32>
    %26 = vector.multi_reduction <maximumf>, %25, %cst_17 [2] : vector<2x8x8xf32> to vector<2x8xf32>
    %27 = vector.shape_cast %26 : vector<2x8xf32> to vector<2x8x1xf32>
    %28 = vector.broadcast %27 : vector<2x8x1xf32> to vector<2x8x8xf32>
    %29 = arith.subf %25, %28 : vector<2x8x8xf32>
    %30 = math.exp %29 : vector<2x8x8xf32>
    %cst_18 = arith.constant dense<0.000000e+00> : vector<2x8xf32>
    %31 = vector.multi_reduction <add>, %30, %cst_18 [2] : vector<2x8x8xf32> to vector<2x8xf32>
    %32 = vector.shape_cast %31 : vector<2x8xf32> to vector<2x8x1xf32>
    %33 = vector.broadcast %32 : vector<2x8x1xf32> to vector<2x8x8xf32>
    %34 = arith.divf %30, %33 : vector<2x8x8xf32>
    %35 = arith.truncf %34 : vector<2x8x8xf32> to vector<2x8x8xbf16>
    "tpu.trace_start"() <{level = 10 : i32, message = "bqk,bkd->bqd"}> : () -> ()
    %cst_19 = arith.constant dense<0.000000e+00> : vector<2x8x8xf32>
    %36 = tpu.matmul %35, %20, %cst_19 {dimension_numbers = #tpu.dot_dimension_numbers<[2], [1], [1], [2], [0, 0, 0, 1, 1, 2], [0], [0]>} : vector<2x8x8xbf16>, vector<2x8x8xbf16>, vector<2x8x8xf32> -> vector<2x8x8xf32>
    "tpu.trace_stop"() : () -> ()
    %37 = vector.shape_cast %36 : vector<2x8x8xf32> to vector<16x8xf32>
    %38 = arith.truncf %37 : vector<16x8xf32> to vector<16x8xbf16>
    %39 = vector.extract_strided_slice %13 {offsets = [0, 0], sizes = [8, 32], strides = [1, 1]} : vector<32x32xbf16> to vector<8x32xbf16>
    %cst_20 = arith.constant dense<0.000000e+00> : vector<16x32xf32>
    %40 = tpu.matmul %38, %39, %cst_20 {dimension_numbers = #tpu.dot_dimension_numbers<[1], [0], [0], [1], [0, 0, 1, 1], [], []>} : vector<16x8xbf16>, vector<8x32xbf16>, vector<16x32xf32> -> vector<16x32xf32>
    %41 = arith.addf %14, %40 : vector<16x32xf32>
    %42 = vector.extract_strided_slice %11 {offsets = [0, 0, 8], sizes = [2, 8, 8], strides = [1, 1, 1]} : vector<2x8x96xf32> to vector<2x8x8xf32>
    %43 = arith.truncf %42 : vector<2x8x8xf32> to vector<2x8x8xbf16>
    %44 = vector.extract_strided_slice %11 {offsets = [0, 0, 40], sizes = [2, 8, 8], strides = [1, 1, 1]} : vector<2x8x96xf32> to vector<2x8x8xf32>
    %45 = arith.truncf %44 : vector<2x8x8xf32> to vector<2x8x8xbf16>
    %46 = vector.extract_strided_slice %11 {offsets = [0, 0, 72], sizes = [2, 8, 8], strides = [1, 1, 1]} : vector<2x8x96xf32> to vector<2x8x8xf32>
    %47 = arith.truncf %46 : vector<2x8x8xf32> to vector<2x8x8xbf16>
    "tpu.trace_start"() <{level = 10 : i32, message = "bqd,bkd->bqk"}> : () -> ()
    %cst_21 = arith.constant dense<0.000000e+00> : vector<2x8x8xf32>
    %48 = tpu.matmul %43, %45, %cst_21 {dimension_numbers = #tpu.dot_dimension_numbers<[2], [2], [1], [1], [0, 0, 0, 1, 1, 1], [0], [0]>} : vector<2x8x8xbf16>, vector<2x8x8xbf16>, vector<2x8x8xf32> -> vector<2x8x8xf32>
    "tpu.trace_stop"() : () -> ()
    %cst_22 = arith.constant 0.353553385 : f32
    %49 = vector.broadcast %cst_22 : f32 to vector<2x8x8xf32>
    %50 = arith.mulf %48, %49 : vector<2x8x8xf32>
    %51 = vector.broadcast %2 : vector<2x1x8xf32> to vector<2x8x8xf32>
    %52 = arith.addf %50, %51 : vector<2x8x8xf32>
    %cst_23 = arith.constant dense<0xFF800000> : vector<2x8xf32>
    %53 = vector.multi_reduction <maximumf>, %52, %cst_23 [2] : vector<2x8x8xf32> to vector<2x8xf32>
    %54 = vector.shape_cast %53 : vector<2x8xf32> to vector<2x8x1xf32>
    %55 = vector.broadcast %54 : vector<2x8x1xf32> to vector<2x8x8xf32>
    %56 = arith.subf %52, %55 : vector<2x8x8xf32>
    %57 = math.exp %56 : vector<2x8x8xf32>
    %cst_24 = arith.constant dense<0.000000e+00> : vector<2x8xf32>
    %58 = vector.multi_reduction <add>, %57, %cst_24 [2] : vector<2x8x8xf32> to vector<2x8xf32>
    %59 = vector.shape_cast %58 : vector<2x8xf32> to vector<2x8x1xf32>
    %60 = vector.broadcast %59 : vector<2x8x1xf32> to vector<2x8x8xf32>
    %61 = arith.divf %57, %60 : vector<2x8x8xf32>
    %62 = arith.truncf %61 : vector<2x8x8xf32> to vector<2x8x8xbf16>
    "tpu.trace_start"() <{level = 10 : i32, message = "bqk,bkd->bqd"}> : () -> ()
    %cst_25 = arith.constant dense<0.000000e+00> : vector<2x8x8xf32>
    %63 = tpu.matmul %62, %47, %cst_25 {dimension_numbers = #tpu.dot_dimension_numbers<[2], [1], [1], [2], [0, 0, 0, 1, 1, 2], [0], [0]>} : vector<2x8x8xbf16>, vector<2x8x8xbf16>, vector<2x8x8xf32> -> vector<2x8x8xf32>
    "tpu.trace_stop"() : () -> ()
    %64 = vector.shape_cast %63 : vector<2x8x8xf32> to vector<16x8xf32>
    %65 = arith.truncf %64 : vector<16x8xf32> to vector<16x8xbf16>
    %66 = vector.extract_strided_slice %13 {offsets = [8, 0], sizes = [8, 32], strides = [1, 1]} : vector<32x32xbf16> to vector<8x32xbf16>
    %cst_26 = arith.constant dense<0.000000e+00> : vector<16x32xf32>
    %67 = tpu.matmul %65, %66, %cst_26 {dimension_numbers = #tpu.dot_dimension_numbers<[1], [0], [0], [1], [0, 0, 1, 1], [], []>} : vector<16x8xbf16>, vector<8x32xbf16>, vector<16x32xf32> -> vector<16x32xf32>
    %68 = arith.addf %41, %67 : vector<16x32xf32>
    %69 = vector.extract_strided_slice %11 {offsets = [0, 0, 16], sizes = [2, 8, 8], strides = [1, 1, 1]} : vector<2x8x96xf32> to vector<2x8x8xf32>
    %70 = arith.truncf %69 : vector<2x8x8xf32> to vector<2x8x8xbf16>
    %71 = vector.extract_strided_slice %11 {offsets = [0, 0, 48], sizes = [2, 8, 8], strides = [1, 1, 1]} : vector<2x8x96xf32> to vector<2x8x8xf32>
    %72 = arith.truncf %71 : vector<2x8x8xf32> to vector<2x8x8xbf16>
    %73 = vector.extract_strided_slice %11 {offsets = [0, 0, 80], sizes = [2, 8, 8], strides = [1, 1, 1]} : vector<2x8x96xf32> to vector<2x8x8xf32>
    %74 = arith.truncf %73 : vector<2x8x8xf32> to vector<2x8x8xbf16>
    "tpu.trace_start"() <{level = 10 : i32, message = "bqd,bkd->bqk"}> : () -> ()
    %cst_27 = arith.constant dense<0.000000e+00> : vector<2x8x8xf32>
    %75 = tpu.matmul %70, %72, %cst_27 {dimension_numbers = #tpu.dot_dimension_numbers<[2], [2], [1], [1], [0, 0, 0, 1, 1, 1], [0], [0]>} : vector<2x8x8xbf16>, vector<2x8x8xbf16>, vector<2x8x8xf32> -> vector<2x8x8xf32>
    "tpu.trace_stop"() : () -> ()
    %cst_28 = arith.constant 0.353553385 : f32
    %76 = vector.broadcast %cst_28 : f32 to vector<2x8x8xf32>
    %77 = arith.mulf %75, %76 : vector<2x8x8xf32>
    %78 = vector.broadcast %2 : vector<2x1x8xf32> to vector<2x8x8xf32>
    %79 = arith.addf %77, %78 : vector<2x8x8xf32>
    %cst_29 = arith.constant dense<0xFF800000> : vector<2x8xf32>
    %80 = vector.multi_reduction <maximumf>, %79, %cst_29 [2] : vector<2x8x8xf32> to vector<2x8xf32>
    %81 = vector.shape_cast %80 : vector<2x8xf32> to vector<2x8x1xf32>
    %82 = vector.broadcast %81 : vector<2x8x1xf32> to vector<2x8x8xf32>
    %83 = arith.subf %79, %82 : vector<2x8x8xf32>
    %84 = math.exp %83 : vector<2x8x8xf32>
    %cst_30 = arith.constant dense<0.000000e+00> : vector<2x8xf32>
    %85 = vector.multi_reduction <add>, %84, %cst_30 [2] : vector<2x8x8xf32> to vector<2x8xf32>
    %86 = vector.shape_cast %85 : vector<2x8xf32> to vector<2x8x1xf32>
    %87 = vector.broadcast %86 : vector<2x8x1xf32> to vector<2x8x8xf32>
    %88 = arith.divf %84, %87 : vector<2x8x8xf32>
    %89 = arith.truncf %88 : vector<2x8x8xf32> to vector<2x8x8xbf16>
    "tpu.trace_start"() <{level = 10 : i32, message = "bqk,bkd->bqd"}> : () -> ()
    %cst_31 = arith.constant dense<0.000000e+00> : vector<2x8x8xf32>
    %90 = tpu.matmul %89, %74, %cst_31 {dimension_numbers = #tpu.dot_dimension_numbers<[2], [1], [1], [2], [0, 0, 0, 1, 1, 2], [0], [0]>} : vector<2x8x8xbf16>, vector<2x8x8xbf16>, vector<2x8x8xf32> -> vector<2x8x8xf32>
    "tpu.trace_stop"() : () -> ()
    %91 = vector.shape_cast %90 : vector<2x8x8xf32> to vector<16x8xf32>
    %92 = arith.truncf %91 : vector<16x8xf32> to vector<16x8xbf16>
    %93 = vector.extract_strided_slice %13 {offsets = [16, 0], sizes = [8, 32], strides = [1, 1]} : vector<32x32xbf16> to vector<8x32xbf16>
    %cst_32 = arith.constant dense<0.000000e+00> : vector<16x32xf32>
    %94 = tpu.matmul %92, %93, %cst_32 {dimension_numbers = #tpu.dot_dimension_numbers<[1], [0], [0], [1], [0, 0, 1, 1], [], []>} : vector<16x8xbf16>, vector<8x32xbf16>, vector<16x32xf32> -> vector<16x32xf32>
    %95 = arith.addf %68, %94 : vector<16x32xf32>
    %96 = vector.extract_strided_slice %11 {offsets = [0, 0, 24], sizes = [2, 8, 8], strides = [1, 1, 1]} : vector<2x8x96xf32> to vector<2x8x8xf32>
    %97 = arith.truncf %96 : vector<2x8x8xf32> to vector<2x8x8xbf16>
    %98 = vector.extract_strided_slice %11 {offsets = [0, 0, 56], sizes = [2, 8, 8], strides = [1, 1, 1]} : vector<2x8x96xf32> to vector<2x8x8xf32>
    %99 = arith.truncf %98 : vector<2x8x8xf32> to vector<2x8x8xbf16>
    %100 = vector.extract_strided_slice %11 {offsets = [0, 0, 88], sizes = [2, 8, 8], strides = [1, 1, 1]} : vector<2x8x96xf32> to vector<2x8x8xf32>
    %101 = arith.truncf %100 : vector<2x8x8xf32> to vector<2x8x8xbf16>
    "tpu.trace_start"() <{level = 10 : i32, message = "bqd,bkd->bqk"}> : () -> ()
    %cst_33 = arith.constant dense<0.000000e+00> : vector<2x8x8xf32>
    %102 = tpu.matmul %97, %99, %cst_33 {dimension_numbers = #tpu.dot_dimension_numbers<[2], [2], [1], [1], [0, 0, 0, 1, 1, 1], [0], [0]>} : vector<2x8x8xbf16>, vector<2x8x8xbf16>, vector<2x8x8xf32> -> vector<2x8x8xf32>
    "tpu.trace_stop"() : () -> ()
    %cst_34 = arith.constant 0.353553385 : f32
    %103 = vector.broadcast %cst_34 : f32 to vector<2x8x8xf32>
    %104 = arith.mulf %102, %103 : vector<2x8x8xf32>
    %105 = vector.broadcast %2 : vector<2x1x8xf32> to vector<2x8x8xf32>
    %106 = arith.addf %104, %105 : vector<2x8x8xf32>
    %cst_35 = arith.constant dense<0xFF800000> : vector<2x8xf32>
    %107 = vector.multi_reduction <maximumf>, %106, %cst_35 [2] : vector<2x8x8xf32> to vector<2x8xf32>
    %108 = vector.shape_cast %107 : vector<2x8xf32> to vector<2x8x1xf32>
    %109 = vector.broadcast %108 : vector<2x8x1xf32> to vector<2x8x8xf32>
    %110 = arith.subf %106, %109 : vector<2x8x8xf32>
    %111 = math.exp %110 : vector<2x8x8xf32>
    %cst_36 = arith.constant dense<0.000000e+00> : vector<2x8xf32>
    %112 = vector.multi_reduction <add>, %111, %cst_36 [2] : vector<2x8x8xf32> to vector<2x8xf32>
    %113 = vector.shape_cast %112 : vector<2x8xf32> to vector<2x8x1xf32>
    %114 = vector.broadcast %113 : vector<2x8x1xf32> to vector<2x8x8xf32>
    %115 = arith.divf %111, %114 : vector<2x8x8xf32>
    %116 = arith.truncf %115 : vector<2x8x8xf32> to vector<2x8x8xbf16>
    "tpu.trace_start"() <{level = 10 : i32, message = "bqk,bkd->bqd"}> : () -> ()
    %cst_37 = arith.constant dense<0.000000e+00> : vector<2x8x8xf32>
    %117 = tpu.matmul %116, %101, %cst_37 {dimension_numbers = #tpu.dot_dimension_numbers<[2], [1], [1], [2], [0, 0, 0, 1, 1, 2], [0], [0]>} : vector<2x8x8xbf16>, vector<2x8x8xbf16>, vector<2x8x8xf32> -> vector<2x8x8xf32>
    "tpu.trace_stop"() : () -> ()
    %118 = vector.shape_cast %117 : vector<2x8x8xf32> to vector<16x8xf32>
    %119 = arith.truncf %118 : vector<16x8xf32> to vector<16x8xbf16>
    %120 = vector.extract_strided_slice %13 {offsets = [24, 0], sizes = [8, 32], strides = [1, 1]} : vector<32x32xbf16> to vector<8x32xbf16>
    %cst_38 = arith.constant dense<0.000000e+00> : vector<16x32xf32>
    %121 = tpu.matmul %119, %120, %cst_38 {dimension_numbers = #tpu.dot_dimension_numbers<[1], [0], [0], [1], [0, 0, 1, 1], [], []>} : vector<16x8xbf16>, vector<8x32xbf16>, vector<16x32xf32> -> vector<16x32xf32>
    %122 = arith.addf %95, %121 : vector<16x32xf32>
    %c0_39 = arith.constant 0 : index
    %c0_40 = arith.constant 0 : index
    %c0_41 = arith.constant 0 : index
    %123 = vector.load %arg6[%c0_39, %c0_40, %c0_41] : memref<2x1x32xf32, #tpu.memory_space<vmem>>, vector<1x1x32xf32>
    %124 = vector.shape_cast %123 : vector<1x1x32xf32> to vector<1x32xf32>
    %125 = vector.broadcast %124 : vector<1x32xf32> to vector<16x32xf32>
    %126 = arith.addf %122, %125 : vector<16x32xf32>
    %127 = arith.addf %1, %126 : vector<16x32xf32>
    %cst_42 = arith.constant dense<0.000000e+00> : vector<16xf32>
    %128 = vector.multi_reduction <add>, %127, %cst_42 [1] : vector<16x32xf32> to vector<16xf32>
    %129 = vector.shape_cast %128 : vector<16xf32> to vector<16x1xf32>
    %cst_43 = arith.constant 3.200000e+01 : f32
    %130 = vector.broadcast %cst_43 : f32 to vector<16x1xf32>
    %131 = arith.divf %129, %130 : vector<16x1xf32>
    %132 = vector.broadcast %131 : vector<16x1xf32> to vector<16x32xf32>
    %133 = arith.subf %127, %132 : vector<16x32xf32>
    %134 = arith.mulf %133, %133 : vector<16x32xf32>
    %cst_44 = arith.constant dense<0.000000e+00> : vector<16xf32>
    %135 = vector.multi_reduction <add>, %134, %cst_44 [1] : vector<16x32xf32> to vector<16xf32>
    %136 = vector.shape_cast %135 : vector<16xf32> to vector<16x1xf32>
    %cst_45 = arith.constant 3.200000e+01 : f32
    %137 = vector.broadcast %cst_45 : f32 to vector<16x1xf32>
    %138 = arith.divf %136, %137 : vector<16x1xf32>
    %139 = vector.broadcast %131 : vector<16x1xf32> to vector<16x32xf32>
    %140 = arith.subf %127, %139 : vector<16x32xf32>
    %cst_46 = arith.constant 9.99999974E-6 : f32
    %141 = vector.broadcast %cst_46 : f32 to vector<16x1xf32>
    %142 = arith.addf %138, %141 : vector<16x1xf32>
    %143 = math.rsqrt %142 : vector<16x1xf32>
    %144 = vector.broadcast %143 : vector<16x1xf32> to vector<16x32xf32>
    %145 = arith.mulf %140, %144 : vector<16x32xf32>
    %c0_47 = arith.constant 0 : index
    %c0_48 = arith.constant 0 : index
    %c0_49 = arith.constant 0 : index
    %146 = vector.load %arg7[%c0_47, %c0_48, %c0_49] : memref<2x1x32xf32, #tpu.memory_space<vmem>>, vector<1x1x32xf32>
    %147 = vector.shape_cast %146 : vector<1x1x32xf32> to vector<1x32xf32>
    %148 = vector.broadcast %147 : vector<1x32xf32> to vector<16x32xf32>
    %149 = arith.mulf %145, %148 : vector<16x32xf32>
    %c0_50 = arith.constant 0 : index
    %c0_51 = arith.constant 0 : index
    %c0_52 = arith.constant 0 : index
    %150 = vector.load %arg8[%c0_50, %c0_51, %c0_52] : memref<2x1x32xf32, #tpu.memory_space<vmem>>, vector<1x1x32xf32>
    %151 = vector.shape_cast %150 : vector<1x1x32xf32> to vector<1x32xf32>
    %152 = vector.broadcast %151 : vector<1x32xf32> to vector<16x32xf32>
    %153 = arith.addf %149, %152 : vector<16x32xf32>
    %154 = arith.truncf %153 : vector<16x32xf32> to vector<16x32xbf16>
    %c0_53 = arith.constant 0 : index
    %c0_54 = arith.constant 0 : index
    %c0_55 = arith.constant 0 : index
    %155 = vector.load %arg9[%c0_53, %c0_54, %c0_55] : memref<2x32x64xbf16, #tpu.memory_space<vmem>>, vector<1x32x64xbf16>
    %156 = vector.shape_cast %155 : vector<1x32x64xbf16> to vector<32x64xbf16>
    %cst_56 = arith.constant dense<0.000000e+00> : vector<16x64xf32>
    %157 = tpu.matmul %154, %156, %cst_56 {dimension_numbers = #tpu.dot_dimension_numbers<[1], [0], [0], [1], [0, 0, 1, 1], [], []>} : vector<16x32xbf16>, vector<32x64xbf16>, vector<16x64xf32> -> vector<16x64xf32>
    %c0_57 = arith.constant 0 : index
    %c0_58 = arith.constant 0 : index
    %c0_59 = arith.constant 0 : index
    %158 = vector.load %arg10[%c0_57, %c0_58, %c0_59] : memref<2x1x64xf32, #tpu.memory_space<vmem>>, vector<1x1x64xf32>
    %159 = vector.shape_cast %158 : vector<1x1x64xf32> to vector<1x64xf32>
    %160 = vector.broadcast %159 : vector<1x64xf32> to vector<16x64xf32>
    %161 = arith.addf %157, %160 : vector<16x64xf32>
    %cst_60 = arith.constant 0.000000e+00 : f32
    %162 = vector.broadcast %cst_60 : f32 to vector<16x64xf32>
    %163 = arith.maximumf %161, %162 : vector<16x64xf32>
    %164 = arith.truncf %163 : vector<16x64xf32> to vector<16x64xbf16>
    %c0_61 = arith.constant 0 : index
    %c0_62 = arith.constant 0 : index
    %c0_63 = arith.constant 0 : index
    %165 = vector.load %arg11[%c0_61, %c0_62, %c0_63] : memref<2x64x32xbf16, #tpu.memory_space<vmem>>, vector<1x64x32xbf16>
    %166 = vector.shape_cast %165 : vector<1x64x32xbf16> to vector<64x32xbf16>
    %cst_64 = arith.constant dense<0.000000e+00> : vector<16x32xf32>
    %167 = tpu.matmul %164, %166, %cst_64 {dimension_numbers = #tpu.dot_dimension_numbers<[1], [0], [0], [1], [0, 0, 1, 1], [], []>} : vector<16x64xbf16>, vector<64x32xbf16>, vector<16x32xf32> -> vector<16x32xf32>
    %c0_65 = arith.constant 0 : index
    %c0_66 = arith.constant 0 : index
    %c0_67 = arith.constant 0 : index
    %168 = vector.load %arg12[%c0_65, %c0_66, %c0_67] : memref<2x1x32xf32, #tpu.memory_space<vmem>>, vector<1x1x32xf32>
    %169 = vector.shape_cast %168 : vector<1x1x32xf32> to vector<1x32xf32>
    %170 = vector.broadcast %169 : vector<1x32xf32> to vector<16x32xf32>
    %171 = arith.addf %167, %170 : vector<16x32xf32>
    %172 = arith.addf %153, %171 : vector<16x32xf32>
    %cst_68 = arith.constant dense<0.000000e+00> : vector<16xf32>
    %173 = vector.multi_reduction <add>, %172, %cst_68 [1] : vector<16x32xf32> to vector<16xf32>
    %174 = vector.shape_cast %173 : vector<16xf32> to vector<16x1xf32>
    %cst_69 = arith.constant 3.200000e+01 : f32
    %175 = vector.broadcast %cst_69 : f32 to vector<16x1xf32>
    %176 = arith.divf %174, %175 : vector<16x1xf32>
    %177 = vector.broadcast %176 : vector<16x1xf32> to vector<16x32xf32>
    %178 = arith.subf %172, %177 : vector<16x32xf32>
    %179 = arith.mulf %178, %178 : vector<16x32xf32>
    %cst_70 = arith.constant dense<0.000000e+00> : vector<16xf32>
    %180 = vector.multi_reduction <add>, %179, %cst_70 [1] : vector<16x32xf32> to vector<16xf32>
    %181 = vector.shape_cast %180 : vector<16xf32> to vector<16x1xf32>
    %cst_71 = arith.constant 3.200000e+01 : f32
    %182 = vector.broadcast %cst_71 : f32 to vector<16x1xf32>
    %183 = arith.divf %181, %182 : vector<16x1xf32>
    %184 = vector.broadcast %176 : vector<16x1xf32> to vector<16x32xf32>
    %185 = arith.subf %172, %184 : vector<16x32xf32>
    %cst_72 = arith.constant 9.99999974E-6 : f32
    %186 = vector.broadcast %cst_72 : f32 to vector<16x1xf32>
    %187 = arith.addf %183, %186 : vector<16x1xf32>
    %188 = math.rsqrt %187 : vector<16x1xf32>
    %189 = vector.broadcast %188 : vector<16x1xf32> to vector<16x32xf32>
    %190 = arith.mulf %185, %189 : vector<16x32xf32>
    %c0_73 = arith.constant 0 : index
    %c0_74 = arith.constant 0 : index
    %c0_75 = arith.constant 0 : index
    %191 = vector.load %arg13[%c0_73, %c0_74, %c0_75] : memref<2x1x32xf32, #tpu.memory_space<vmem>>, vector<1x1x32xf32>
    %192 = vector.shape_cast %191 : vector<1x1x32xf32> to vector<1x32xf32>
    %193 = vector.broadcast %192 : vector<1x32xf32> to vector<16x32xf32>
    %194 = arith.mulf %190, %193 : vector<16x32xf32>
    %c0_76 = arith.constant 0 : index
    %c0_77 = arith.constant 0 : index
    %c0_78 = arith.constant 0 : index
    %195 = vector.load %arg14[%c0_76, %c0_77, %c0_78] : memref<2x1x32xf32, #tpu.memory_space<vmem>>, vector<1x1x32xf32>
    %196 = vector.shape_cast %195 : vector<1x1x32xf32> to vector<1x32xf32>
    %197 = vector.broadcast %196 : vector<1x32xf32> to vector<16x32xf32>
    %198 = arith.addf %194, %197 : vector<16x32xf32>
    %199 = arith.truncf %198 : vector<16x32xf32> to vector<16x32xbf16>
    %c1 = arith.constant 1 : index
    %c0_79 = arith.constant 0 : index
    %c0_80 = arith.constant 0 : index
    %200 = vector.load %arg3[%c1, %c0_79, %c0_80] : memref<2x32x96xbf16, #tpu.memory_space<vmem>>, vector<1x32x96xbf16>
    %201 = vector.shape_cast %200 : vector<1x32x96xbf16> to vector<32x96xbf16>
    %cst_81 = arith.constant dense<0.000000e+00> : vector<16x96xf32>
    %202 = tpu.matmul %199, %201, %cst_81 {dimension_numbers = #tpu.dot_dimension_numbers<[1], [0], [0], [1], [0, 0, 1, 1], [], []>} : vector<16x32xbf16>, vector<32x96xbf16>, vector<16x96xf32> -> vector<16x96xf32>
    %c1_82 = arith.constant 1 : index
    %c0_83 = arith.constant 0 : index
    %c0_84 = arith.constant 0 : index
    %203 = vector.load %arg4[%c1_82, %c0_83, %c0_84] : memref<2x1x96xf32, #tpu.memory_space<vmem>>, vector<1x1x96xf32>
    %204 = vector.shape_cast %203 : vector<1x1x96xf32> to vector<1x96xf32>
    %205 = vector.broadcast %204 : vector<1x96xf32> to vector<16x96xf32>
    %206 = arith.addf %202, %205 : vector<16x96xf32>
    %207 = vector.shape_cast %206 : vector<16x96xf32> to vector<2x8x96xf32>
    %c1_85 = arith.constant 1 : index
    %c0_86 = arith.constant 0 : index
    %c0_87 = arith.constant 0 : index
    %208 = vector.load %arg5[%c1_85, %c0_86, %c0_87] : memref<2x32x32xbf16, #tpu.memory_space<vmem>>, vector<1x32x32xbf16>
    %209 = vector.shape_cast %208 : vector<1x32x32xbf16> to vector<32x32xbf16>
    %cst_88 = arith.constant 0.000000e+00 : f32
    %210 = vector.broadcast %cst_88 : f32 to vector<16x32xf32>
    %211 = vector.extract_strided_slice %207 {offsets = [0, 0, 0], sizes = [2, 8, 8], strides = [1, 1, 1]} : vector<2x8x96xf32> to vector<2x8x8xf32>
    %212 = arith.truncf %211 : vector<2x8x8xf32> to vector<2x8x8xbf16>
    %213 = vector.extract_strided_slice %207 {offsets = [0, 0, 32], sizes = [2, 8, 8], strides = [1, 1, 1]} : vector<2x8x96xf32> to vector<2x8x8xf32>
    %214 = arith.truncf %213 : vector<2x8x8xf32> to vector<2x8x8xbf16>
    %215 = vector.extract_strided_slice %207 {offsets = [0, 0, 64], sizes = [2, 8, 8], strides = [1, 1, 1]} : vector<2x8x96xf32> to vector<2x8x8xf32>
    %216 = arith.truncf %215 : vector<2x8x8xf32> to vector<2x8x8xbf16>
    "tpu.trace_start"() <{level = 10 : i32, message = "bqd,bkd->bqk"}> : () -> ()
    %cst_89 = arith.constant dense<0.000000e+00> : vector<2x8x8xf32>
    %217 = tpu.matmul %212, %214, %cst_89 {dimension_numbers = #tpu.dot_dimension_numbers<[2], [2], [1], [1], [0, 0, 0, 1, 1, 1], [0], [0]>} : vector<2x8x8xbf16>, vector<2x8x8xbf16>, vector<2x8x8xf32> -> vector<2x8x8xf32>
    "tpu.trace_stop"() : () -> ()
    %cst_90 = arith.constant 0.353553385 : f32
    %218 = vector.broadcast %cst_90 : f32 to vector<2x8x8xf32>
    %219 = arith.mulf %217, %218 : vector<2x8x8xf32>
    %220 = vector.broadcast %2 : vector<2x1x8xf32> to vector<2x8x8xf32>
    %221 = arith.addf %219, %220 : vector<2x8x8xf32>
    %cst_91 = arith.constant dense<0xFF800000> : vector<2x8xf32>
    %222 = vector.multi_reduction <maximumf>, %221, %cst_91 [2] : vector<2x8x8xf32> to vector<2x8xf32>
    %223 = vector.shape_cast %222 : vector<2x8xf32> to vector<2x8x1xf32>
    %224 = vector.broadcast %223 : vector<2x8x1xf32> to vector<2x8x8xf32>
    %225 = arith.subf %221, %224 : vector<2x8x8xf32>
    %226 = math.exp %225 : vector<2x8x8xf32>
    %cst_92 = arith.constant dense<0.000000e+00> : vector<2x8xf32>
    %227 = vector.multi_reduction <add>, %226, %cst_92 [2] : vector<2x8x8xf32> to vector<2x8xf32>
    %228 = vector.shape_cast %227 : vector<2x8xf32> to vector<2x8x1xf32>
    %229 = vector.broadcast %228 : vector<2x8x1xf32> to vector<2x8x8xf32>
    %230 = arith.divf %226, %229 : vector<2x8x8xf32>
    %231 = arith.truncf %230 : vector<2x8x8xf32> to vector<2x8x8xbf16>
    "tpu.trace_start"() <{level = 10 : i32, message = "bqk,bkd->bqd"}> : () -> ()
    %cst_93 = arith.constant dense<0.000000e+00> : vector<2x8x8xf32>
    %232 = tpu.matmul %231, %216, %cst_93 {dimension_numbers = #tpu.dot_dimension_numbers<[2], [1], [1], [2], [0, 0, 0, 1, 1, 2], [0], [0]>} : vector<2x8x8xbf16>, vector<2x8x8xbf16>, vector<2x8x8xf32> -> vector<2x8x8xf32>
    "tpu.trace_stop"() : () -> ()
    %233 = vector.shape_cast %232 : vector<2x8x8xf32> to vector<16x8xf32>
    %234 = arith.truncf %233 : vector<16x8xf32> to vector<16x8xbf16>
    %235 = vector.extract_strided_slice %209 {offsets = [0, 0], sizes = [8, 32], strides = [1, 1]} : vector<32x32xbf16> to vector<8x32xbf16>
    %cst_94 = arith.constant dense<0.000000e+00> : vector<16x32xf32>
    %236 = tpu.matmul %234, %235, %cst_94 {dimension_numbers = #tpu.dot_dimension_numbers<[1], [0], [0], [1], [0, 0, 1, 1], [], []>} : vector<16x8xbf16>, vector<8x32xbf16>, vector<16x32xf32> -> vector<16x32xf32>
    %237 = arith.addf %210, %236 : vector<16x32xf32>
    %238 = vector.extract_strided_slice %207 {offsets = [0, 0, 8], sizes = [2, 8, 8], strides = [1, 1, 1]} : vector<2x8x96xf32> to vector<2x8x8xf32>
    %239 = arith.truncf %238 : vector<2x8x8xf32> to vector<2x8x8xbf16>
    %240 = vector.extract_strided_slice %207 {offsets = [0, 0, 40], sizes = [2, 8, 8], strides = [1, 1, 1]} : vector<2x8x96xf32> to vector<2x8x8xf32>
    %241 = arith.truncf %240 : vector<2x8x8xf32> to vector<2x8x8xbf16>
    %242 = vector.extract_strided_slice %207 {offsets = [0, 0, 72], sizes = [2, 8, 8], strides = [1, 1, 1]} : vector<2x8x96xf32> to vector<2x8x8xf32>
    %243 = arith.truncf %242 : vector<2x8x8xf32> to vector<2x8x8xbf16>
    "tpu.trace_start"() <{level = 10 : i32, message = "bqd,bkd->bqk"}> : () -> ()
    %cst_95 = arith.constant dense<0.000000e+00> : vector<2x8x8xf32>
    %244 = tpu.matmul %239, %241, %cst_95 {dimension_numbers = #tpu.dot_dimension_numbers<[2], [2], [1], [1], [0, 0, 0, 1, 1, 1], [0], [0]>} : vector<2x8x8xbf16>, vector<2x8x8xbf16>, vector<2x8x8xf32> -> vector<2x8x8xf32>
    "tpu.trace_stop"() : () -> ()
    %cst_96 = arith.constant 0.353553385 : f32
    %245 = vector.broadcast %cst_96 : f32 to vector<2x8x8xf32>
    %246 = arith.mulf %244, %245 : vector<2x8x8xf32>
    %247 = vector.broadcast %2 : vector<2x1x8xf32> to vector<2x8x8xf32>
    %248 = arith.addf %246, %247 : vector<2x8x8xf32>
    %cst_97 = arith.constant dense<0xFF800000> : vector<2x8xf32>
    %249 = vector.multi_reduction <maximumf>, %248, %cst_97 [2] : vector<2x8x8xf32> to vector<2x8xf32>
    %250 = vector.shape_cast %249 : vector<2x8xf32> to vector<2x8x1xf32>
    %251 = vector.broadcast %250 : vector<2x8x1xf32> to vector<2x8x8xf32>
    %252 = arith.subf %248, %251 : vector<2x8x8xf32>
    %253 = math.exp %252 : vector<2x8x8xf32>
    %cst_98 = arith.constant dense<0.000000e+00> : vector<2x8xf32>
    %254 = vector.multi_reduction <add>, %253, %cst_98 [2] : vector<2x8x8xf32> to vector<2x8xf32>
    %255 = vector.shape_cast %254 : vector<2x8xf32> to vector<2x8x1xf32>
    %256 = vector.broadcast %255 : vector<2x8x1xf32> to vector<2x8x8xf32>
    %257 = arith.divf %253, %256 : vector<2x8x8xf32>
    %258 = arith.truncf %257 : vector<2x8x8xf32> to vector<2x8x8xbf16>
    "tpu.trace_start"() <{level = 10 : i32, message = "bqk,bkd->bqd"}> : () -> ()
    %cst_99 = arith.constant dense<0.000000e+00> : vector<2x8x8xf32>
    %259 = tpu.matmul %258, %243, %cst_99 {dimension_numbers = #tpu.dot_dimension_numbers<[2], [1], [1], [2], [0, 0, 0, 1, 1, 2], [0], [0]>} : vector<2x8x8xbf16>, vector<2x8x8xbf16>, vector<2x8x8xf32> -> vector<2x8x8xf32>
    "tpu.trace_stop"() : () -> ()
    %260 = vector.shape_cast %259 : vector<2x8x8xf32> to vector<16x8xf32>
    %261 = arith.truncf %260 : vector<16x8xf32> to vector<16x8xbf16>
    %262 = vector.extract_strided_slice %209 {offsets = [8, 0], sizes = [8, 32], strides = [1, 1]} : vector<32x32xbf16> to vector<8x32xbf16>
    %cst_100 = arith.constant dense<0.000000e+00> : vector<16x32xf32>
    %263 = tpu.matmul %261, %262, %cst_100 {dimension_numbers = #tpu.dot_dimension_numbers<[1], [0], [0], [1], [0, 0, 1, 1], [], []>} : vector<16x8xbf16>, vector<8x32xbf16>, vector<16x32xf32> -> vector<16x32xf32>
    %264 = arith.addf %237, %263 : vector<16x32xf32>
    %265 = vector.extract_strided_slice %207 {offsets = [0, 0, 16], sizes = [2, 8, 8], strides = [1, 1, 1]} : vector<2x8x96xf32> to vector<2x8x8xf32>
    %266 = arith.truncf %265 : vector<2x8x8xf32> to vector<2x8x8xbf16>
    %267 = vector.extract_strided_slice %207 {offsets = [0, 0, 48], sizes = [2, 8, 8], strides = [1, 1, 1]} : vector<2x8x96xf32> to vector<2x8x8xf32>
    %268 = arith.truncf %267 : vector<2x8x8xf32> to vector<2x8x8xbf16>
    %269 = vector.extract_strided_slice %207 {offsets = [0, 0, 80], sizes = [2, 8, 8], strides = [1, 1, 1]} : vector<2x8x96xf32> to vector<2x8x8xf32>
    %270 = arith.truncf %269 : vector<2x8x8xf32> to vector<2x8x8xbf16>
    "tpu.trace_start"() <{level = 10 : i32, message = "bqd,bkd->bqk"}> : () -> ()
    %cst_101 = arith.constant dense<0.000000e+00> : vector<2x8x8xf32>
    %271 = tpu.matmul %266, %268, %cst_101 {dimension_numbers = #tpu.dot_dimension_numbers<[2], [2], [1], [1], [0, 0, 0, 1, 1, 1], [0], [0]>} : vector<2x8x8xbf16>, vector<2x8x8xbf16>, vector<2x8x8xf32> -> vector<2x8x8xf32>
    "tpu.trace_stop"() : () -> ()
    %cst_102 = arith.constant 0.353553385 : f32
    %272 = vector.broadcast %cst_102 : f32 to vector<2x8x8xf32>
    %273 = arith.mulf %271, %272 : vector<2x8x8xf32>
    %274 = vector.broadcast %2 : vector<2x1x8xf32> to vector<2x8x8xf32>
    %275 = arith.addf %273, %274 : vector<2x8x8xf32>
    %cst_103 = arith.constant dense<0xFF800000> : vector<2x8xf32>
    %276 = vector.multi_reduction <maximumf>, %275, %cst_103 [2] : vector<2x8x8xf32> to vector<2x8xf32>
    %277 = vector.shape_cast %276 : vector<2x8xf32> to vector<2x8x1xf32>
    %278 = vector.broadcast %277 : vector<2x8x1xf32> to vector<2x8x8xf32>
    %279 = arith.subf %275, %278 : vector<2x8x8xf32>
    %280 = math.exp %279 : vector<2x8x8xf32>
    %cst_104 = arith.constant dense<0.000000e+00> : vector<2x8xf32>
    %281 = vector.multi_reduction <add>, %280, %cst_104 [2] : vector<2x8x8xf32> to vector<2x8xf32>
    %282 = vector.shape_cast %281 : vector<2x8xf32> to vector<2x8x1xf32>
    %283 = vector.broadcast %282 : vector<2x8x1xf32> to vector<2x8x8xf32>
    %284 = arith.divf %280, %283 : vector<2x8x8xf32>
    %285 = arith.truncf %284 : vector<2x8x8xf32> to vector<2x8x8xbf16>
    "tpu.trace_start"() <{level = 10 : i32, message = "bqk,bkd->bqd"}> : () -> ()
    %cst_105 = arith.constant dense<0.000000e+00> : vector<2x8x8xf32>
    %286 = tpu.matmul %285, %270, %cst_105 {dimension_numbers = #tpu.dot_dimension_numbers<[2], [1], [1], [2], [0, 0, 0, 1, 1, 2], [0], [0]>} : vector<2x8x8xbf16>, vector<2x8x8xbf16>, vector<2x8x8xf32> -> vector<2x8x8xf32>
    "tpu.trace_stop"() : () -> ()
    %287 = vector.shape_cast %286 : vector<2x8x8xf32> to vector<16x8xf32>
    %288 = arith.truncf %287 : vector<16x8xf32> to vector<16x8xbf16>
    %289 = vector.extract_strided_slice %209 {offsets = [16, 0], sizes = [8, 32], strides = [1, 1]} : vector<32x32xbf16> to vector<8x32xbf16>
    %cst_106 = arith.constant dense<0.000000e+00> : vector<16x32xf32>
    %290 = tpu.matmul %288, %289, %cst_106 {dimension_numbers = #tpu.dot_dimension_numbers<[1], [0], [0], [1], [0, 0, 1, 1], [], []>} : vector<16x8xbf16>, vector<8x32xbf16>, vector<16x32xf32> -> vector<16x32xf32>
    %291 = arith.addf %264, %290 : vector<16x32xf32>
    %292 = vector.extract_strided_slice %207 {offsets = [0, 0, 24], sizes = [2, 8, 8], strides = [1, 1, 1]} : vector<2x8x96xf32> to vector<2x8x8xf32>
    %293 = arith.truncf %292 : vector<2x8x8xf32> to vector<2x8x8xbf16>
    %294 = vector.extract_strided_slice %207 {offsets = [0, 0, 56], sizes = [2, 8, 8], strides = [1, 1, 1]} : vector<2x8x96xf32> to vector<2x8x8xf32>
    %295 = arith.truncf %294 : vector<2x8x8xf32> to vector<2x8x8xbf16>
    %296 = vector.extract_strided_slice %207 {offsets = [0, 0, 88], sizes = [2, 8, 8], strides = [1, 1, 1]} : vector<2x8x96xf32> to vector<2x8x8xf32>
    %297 = arith.truncf %296 : vector<2x8x8xf32> to vector<2x8x8xbf16>
    "tpu.trace_start"() <{level = 10 : i32, message = "bqd,bkd->bqk"}> : () -> ()
    %cst_107 = arith.constant dense<0.000000e+00> : vector<2x8x8xf32>
    %298 = tpu.matmul %293, %295, %cst_107 {dimension_numbers = #tpu.dot_dimension_numbers<[2], [2], [1], [1], [0, 0, 0, 1, 1, 1], [0], [0]>} : vector<2x8x8xbf16>, vector<2x8x8xbf16>, vector<2x8x8xf32> -> vector<2x8x8xf32>
    "tpu.trace_stop"() : () -> ()
    %cst_108 = arith.constant 0.353553385 : f32
    %299 = vector.broadcast %cst_108 : f32 to vector<2x8x8xf32>
    %300 = arith.mulf %298, %299 : vector<2x8x8xf32>
    %301 = vector.broadcast %2 : vector<2x1x8xf32> to vector<2x8x8xf32>
    %302 = arith.addf %300, %301 : vector<2x8x8xf32>
    %cst_109 = arith.constant dense<0xFF800000> : vector<2x8xf32>
    %303 = vector.multi_reduction <maximumf>, %302, %cst_109 [2] : vector<2x8x8xf32> to vector<2x8xf32>
    %304 = vector.shape_cast %303 : vector<2x8xf32> to vector<2x8x1xf32>
    %305 = vector.broadcast %304 : vector<2x8x1xf32> to vector<2x8x8xf32>
    %306 = arith.subf %302, %305 : vector<2x8x8xf32>
    %307 = math.exp %306 : vector<2x8x8xf32>
    %cst_110 = arith.constant dense<0.000000e+00> : vector<2x8xf32>
    %308 = vector.multi_reduction <add>, %307, %cst_110 [2] : vector<2x8x8xf32> to vector<2x8xf32>
    %309 = vector.shape_cast %308 : vector<2x8xf32> to vector<2x8x1xf32>
    %310 = vector.broadcast %309 : vector<2x8x1xf32> to vector<2x8x8xf32>
    %311 = arith.divf %307, %310 : vector<2x8x8xf32>
    %312 = arith.truncf %311 : vector<2x8x8xf32> to vector<2x8x8xbf16>
    "tpu.trace_start"() <{level = 10 : i32, message = "bqk,bkd->bqd"}> : () -> ()
    %cst_111 = arith.constant dense<0.000000e+00> : vector<2x8x8xf32>
    %313 = tpu.matmul %312, %297, %cst_111 {dimension_numbers = #tpu.dot_dimension_numbers<[2], [1], [1], [2], [0, 0, 0, 1, 1, 2], [0], [0]>} : vector<2x8x8xbf16>, vector<2x8x8xbf16>, vector<2x8x8xf32> -> vector<2x8x8xf32>
    "tpu.trace_stop"() : () -> ()
    %314 = vector.shape_cast %313 : vector<2x8x8xf32> to vector<16x8xf32>
    %315 = arith.truncf %314 : vector<16x8xf32> to vector<16x8xbf16>
    %316 = vector.extract_strided_slice %209 {offsets = [24, 0], sizes = [8, 32], strides = [1, 1]} : vector<32x32xbf16> to vector<8x32xbf16>
    %cst_112 = arith.constant dense<0.000000e+00> : vector<16x32xf32>
    %317 = tpu.matmul %315, %316, %cst_112 {dimension_numbers = #tpu.dot_dimension_numbers<[1], [0], [0], [1], [0, 0, 1, 1], [], []>} : vector<16x8xbf16>, vector<8x32xbf16>, vector<16x32xf32> -> vector<16x32xf32>
    %318 = arith.addf %291, %317 : vector<16x32xf32>
    %c1_113 = arith.constant 1 : index
    %c0_114 = arith.constant 0 : index
    %c0_115 = arith.constant 0 : index
    %319 = vector.load %arg6[%c1_113, %c0_114, %c0_115] : memref<2x1x32xf32, #tpu.memory_space<vmem>>, vector<1x1x32xf32>
    %320 = vector.shape_cast %319 : vector<1x1x32xf32> to vector<1x32xf32>
    %321 = vector.broadcast %320 : vector<1x32xf32> to vector<16x32xf32>
    %322 = arith.addf %318, %321 : vector<16x32xf32>
    %323 = arith.addf %198, %322 : vector<16x32xf32>
    %cst_116 = arith.constant dense<0.000000e+00> : vector<16xf32>
    %324 = vector.multi_reduction <add>, %323, %cst_116 [1] : vector<16x32xf32> to vector<16xf32>
    %325 = vector.shape_cast %324 : vector<16xf32> to vector<16x1xf32>
    %cst_117 = arith.constant 3.200000e+01 : f32
    %326 = vector.broadcast %cst_117 : f32 to vector<16x1xf32>
    %327 = arith.divf %325, %326 : vector<16x1xf32>
    %328 = vector.broadcast %327 : vector<16x1xf32> to vector<16x32xf32>
    %329 = arith.subf %323, %328 : vector<16x32xf32>
    %330 = arith.mulf %329, %329 : vector<16x32xf32>
    %cst_118 = arith.constant dense<0.000000e+00> : vector<16xf32>
    %331 = vector.multi_reduction <add>, %330, %cst_118 [1] : vector<16x32xf32> to vector<16xf32>
    %332 = vector.shape_cast %331 : vector<16xf32> to vector<16x1xf32>
    %cst_119 = arith.constant 3.200000e+01 : f32
    %333 = vector.broadcast %cst_119 : f32 to vector<16x1xf32>
    %334 = arith.divf %332, %333 : vector<16x1xf32>
    %335 = vector.broadcast %327 : vector<16x1xf32> to vector<16x32xf32>
    %336 = arith.subf %323, %335 : vector<16x32xf32>
    %cst_120 = arith.constant 9.99999974E-6 : f32
    %337 = vector.broadcast %cst_120 : f32 to vector<16x1xf32>
    %338 = arith.addf %334, %337 : vector<16x1xf32>
    %339 = math.rsqrt %338 : vector<16x1xf32>
    %340 = vector.broadcast %339 : vector<16x1xf32> to vector<16x32xf32>
    %341 = arith.mulf %336, %340 : vector<16x32xf32>
    %c1_121 = arith.constant 1 : index
    %c0_122 = arith.constant 0 : index
    %c0_123 = arith.constant 0 : index
    %342 = vector.load %arg7[%c1_121, %c0_122, %c0_123] : memref<2x1x32xf32, #tpu.memory_space<vmem>>, vector<1x1x32xf32>
    %343 = vector.shape_cast %342 : vector<1x1x32xf32> to vector<1x32xf32>
    %344 = vector.broadcast %343 : vector<1x32xf32> to vector<16x32xf32>
    %345 = arith.mulf %341, %344 : vector<16x32xf32>
    %c1_124 = arith.constant 1 : index
    %c0_125 = arith.constant 0 : index
    %c0_126 = arith.constant 0 : index
    %346 = vector.load %arg8[%c1_124, %c0_125, %c0_126] : memref<2x1x32xf32, #tpu.memory_space<vmem>>, vector<1x1x32xf32>
    %347 = vector.shape_cast %346 : vector<1x1x32xf32> to vector<1x32xf32>
    %348 = vector.broadcast %347 : vector<1x32xf32> to vector<16x32xf32>
    %349 = arith.addf %345, %348 : vector<16x32xf32>
    %350 = arith.truncf %349 : vector<16x32xf32> to vector<16x32xbf16>
    %c1_127 = arith.constant 1 : index
    %c0_128 = arith.constant 0 : index
    %c0_129 = arith.constant 0 : index
    %351 = vector.load %arg9[%c1_127, %c0_128, %c0_129] : memref<2x32x64xbf16, #tpu.memory_space<vmem>>, vector<1x32x64xbf16>
    %352 = vector.shape_cast %351 : vector<1x32x64xbf16> to vector<32x64xbf16>
    %cst_130 = arith.constant dense<0.000000e+00> : vector<16x64xf32>
    %353 = tpu.matmul %350, %352, %cst_130 {dimension_numbers = #tpu.dot_dimension_numbers<[1], [0], [0], [1], [0, 0, 1, 1], [], []>} : vector<16x32xbf16>, vector<32x64xbf16>, vector<16x64xf32> -> vector<16x64xf32>
    %c1_131 = arith.constant 1 : index
    %c0_132 = arith.constant 0 : index
    %c0_133 = arith.constant 0 : index
    %354 = vector.load %arg10[%c1_131, %c0_132, %c0_133] : memref<2x1x64xf32, #tpu.memory_space<vmem>>, vector<1x1x64xf32>
    %355 = vector.shape_cast %354 : vector<1x1x64xf32> to vector<1x64xf32>
    %356 = vector.broadcast %355 : vector<1x64xf32> to vector<16x64xf32>
    %357 = arith.addf %353, %356 : vector<16x64xf32>
    %cst_134 = arith.constant 0.000000e+00 : f32
    %358 = vector.broadcast %cst_134 : f32 to vector<16x64xf32>
    %359 = arith.maximumf %357, %358 : vector<16x64xf32>
    %360 = arith.truncf %359 : vector<16x64xf32> to vector<16x64xbf16>
    %c1_135 = arith.constant 1 : index
    %c0_136 = arith.constant 0 : index
    %c0_137 = arith.constant 0 : index
    %361 = vector.load %arg11[%c1_135, %c0_136, %c0_137] : memref<2x64x32xbf16, #tpu.memory_space<vmem>>, vector<1x64x32xbf16>
    %362 = vector.shape_cast %361 : vector<1x64x32xbf16> to vector<64x32xbf16>
    %cst_138 = arith.constant dense<0.000000e+00> : vector<16x32xf32>
    %363 = tpu.matmul %360, %362, %cst_138 {dimension_numbers = #tpu.dot_dimension_numbers<[1], [0], [0], [1], [0, 0, 1, 1], [], []>} : vector<16x64xbf16>, vector<64x32xbf16>, vector<16x32xf32> -> vector<16x32xf32>
    %c1_139 = arith.constant 1 : index
    %c0_140 = arith.constant 0 : index
    %c0_141 = arith.constant 0 : index
    %364 = vector.load %arg12[%c1_139, %c0_140, %c0_141] : memref<2x1x32xf32, #tpu.memory_space<vmem>>, vector<1x1x32xf32>
    %365 = vector.shape_cast %364 : vector<1x1x32xf32> to vector<1x32xf32>
    %366 = vector.broadcast %365 : vector<1x32xf32> to vector<16x32xf32>
    %367 = arith.addf %363, %366 : vector<16x32xf32>
    %368 = arith.addf %349, %367 : vector<16x32xf32>
    %cst_142 = arith.constant dense<0.000000e+00> : vector<16xf32>
    %369 = vector.multi_reduction <add>, %368, %cst_142 [1] : vector<16x32xf32> to vector<16xf32>
    %370 = vector.shape_cast %369 : vector<16xf32> to vector<16x1xf32>
    %cst_143 = arith.constant 3.200000e+01 : f32
    %371 = vector.broadcast %cst_143 : f32 to vector<16x1xf32>
    %372 = arith.divf %370, %371 : vector<16x1xf32>
    %373 = vector.broadcast %372 : vector<16x1xf32> to vector<16x32xf32>
    %374 = arith.subf %368, %373 : vector<16x32xf32>
    %375 = arith.mulf %374, %374 : vector<16x32xf32>
    %cst_144 = arith.constant dense<0.000000e+00> : vector<16xf32>
    %376 = vector.multi_reduction <add>, %375, %cst_144 [1] : vector<16x32xf32> to vector<16xf32>
    %377 = vector.shape_cast %376 : vector<16xf32> to vector<16x1xf32>
    %cst_145 = arith.constant 3.200000e+01 : f32
    %378 = vector.broadcast %cst_145 : f32 to vector<16x1xf32>
    %379 = arith.divf %377, %378 : vector<16x1xf32>
    %380 = vector.broadcast %372 : vector<16x1xf32> to vector<16x32xf32>
    %381 = arith.subf %368, %380 : vector<16x32xf32>
    %cst_146 = arith.constant 9.99999974E-6 : f32
    %382 = vector.broadcast %cst_146 : f32 to vector<16x1xf32>
    %383 = arith.addf %379, %382 : vector<16x1xf32>
    %384 = math.rsqrt %383 : vector<16x1xf32>
    %385 = vector.broadcast %384 : vector<16x1xf32> to vector<16x32xf32>
    %386 = arith.mulf %381, %385 : vector<16x32xf32>
    %c1_147 = arith.constant 1 : index
    %c0_148 = arith.constant 0 : index
    %c0_149 = arith.constant 0 : index
    %387 = vector.load %arg13[%c1_147, %c0_148, %c0_149] : memref<2x1x32xf32, #tpu.memory_space<vmem>>, vector<1x1x32xf32>
    %388 = vector.shape_cast %387 : vector<1x1x32xf32> to vector<1x32xf32>
    %389 = vector.broadcast %388 : vector<1x32xf32> to vector<16x32xf32>
    %390 = arith.mulf %386, %389 : vector<16x32xf32>
    %c1_150 = arith.constant 1 : index
    %c0_151 = arith.constant 0 : index
    %c0_152 = arith.constant 0 : index
    %391 = vector.load %arg14[%c1_150, %c0_151, %c0_152] : memref<2x1x32xf32, #tpu.memory_space<vmem>>, vector<1x1x32xf32>
    %392 = vector.shape_cast %391 : vector<1x1x32xf32> to vector<1x32xf32>
    %393 = vector.broadcast %392 : vector<1x32xf32> to vector<16x32xf32>
    %394 = arith.addf %390, %393 : vector<16x32xf32>
    %395 = vector.shape_cast %394 : vector<16x32xf32> to vector<2x8x32xf32>
    %396 = vector.extract_strided_slice %395 {offsets = [0, 0, 0], sizes = [2, 1, 32], strides = [1, 1, 1]} : vector<2x8x32xf32> to vector<2x1x32xf32>
    %397 = vector.shape_cast %396 : vector<2x1x32xf32> to vector<2x32xf32>
    %c0_153 = arith.constant 0 : index
    %c0_154 = arith.constant 0 : index
    %398 = vector.load %arg15[%c0_153, %c0_154] : memref<32x4xf32, #tpu.memory_space<vmem>>, vector<32x4xf32>
    %cst_155 = arith.constant dense<0.000000e+00> : vector<2x4xf32>
    %399 = tpu.matmul %397, %398, %cst_155 {dimension_numbers = #tpu.dot_dimension_numbers<[1], [0], [0], [1], [0, 0, 1, 1], [], []>} : vector<2x32xf32>, vector<32x4xf32>, vector<2x4xf32> -> vector<2x4xf32>
    %c0_156 = arith.constant 0 : index
    %c0_157 = arith.constant 0 : index
    %400 = vector.load %arg16[%c0_156, %c0_157] : memref<1x4xf32, #tpu.memory_space<vmem>>, vector<1x4xf32>
    %401 = vector.broadcast %400 : vector<1x4xf32> to vector<2x4xf32>
    %402 = arith.addf %399, %401 : vector<2x4xf32>
    %c0_158 = arith.constant 0 : index
    %c0_159 = arith.constant 0 : index
    %403 = vector.load %arg18[%c0_158, %c0_159] : memref<2x4xf32, #tpu.memory_space<vmem>>, vector<2x4xf32>
    tpu.vector_store %arg18[%c0_158, %c0_159], %402 {strides = array<i32>} : memref<2x4xf32, #tpu.memory_space<vmem>>, vector<2x4xf32>,
    %c0_160 = arith.constant 0 : index
    %c0_161 = arith.constant 0 : index
    %c0_162 = arith.constant 0 : index
    %404 = vector.load %arg17[%c0_160, %c0_161, %c0_162] : memref<6x32x32xf32, #tpu.memory_space<vmem>>, vector<1x32x32xf32>
    %405 = vector.shape_cast %404 : vector<1x32x32xf32> to vector<32x32xf32>
    %406 = tpu.transpose %405, [1, 0] : vector<32x32xf32> -> vector<32x32xf32>
    %cst_163 = arith.constant dense<0.000000e+00> : vector<32x32xf32>
    %407 = tpu.matmul %406, %405, %cst_163 {dimension_numbers = #tpu.dot_dimension_numbers<[1], [0], [0], [1], [0, 0, 1, 1], [], []>} : vector<32x32xf32>, vector<32x32xf32>, vector<32x32xf32> -> vector<32x32xf32>
    %408 = arith.mulf %407, %407 : vector<32x32xf32>
    %409 = vector.shape_cast %408 : vector<32x32xf32> to vector<1x32x32xf32>
    %cst_164 = arith.constant dense<0.000000e+00> : vector<1xf32>
    %410 = vector.multi_reduction <add>, %409, %cst_164 [1, 2] : vector<1x32x32xf32> to vector<1xf32>
    %411 = vector.shape_cast %410 : vector<1xf32> to vector<1x1x1xf32>
    %412 = vector.extract %411[0, 0, 0] : f32 from vector<1x1x1xf32>
    %cst_165 = arith.constant 0.000000e+00 : f32
    %413 = arith.addf %cst_165, %412 : f32
    %414 = arith.mulf %405, %405 : vector<32x32xf32>
    %415 = vector.shape_cast %414 : vector<32x32xf32> to vector<1x32x32xf32>
    %cst_166 = arith.constant dense<0.000000e+00> : vector<1xf32>
    %416 = vector.multi_reduction <add>, %415, %cst_166 [1, 2] : vector<1x32x32xf32> to vector<1xf32>
    %417 = vector.shape_cast %416 : vector<1xf32> to vector<1x1x1xf32>
    %418 = vector.extract %417[0, 0, 0] : f32 from vector<1x1x1xf32>
    %cst_167 = arith.constant 2.000000e+00 : f32
    %419 = arith.mulf %cst_167, %418 : f32
    %420 = arith.subf %413, %419 : f32
    %c1_168 = arith.constant 1 : index
    %c0_169 = arith.constant 0 : index
    %c0_170 = arith.constant 0 : index
    %421 = vector.load %arg17[%c1_168, %c0_169, %c0_170] : memref<6x32x32xf32, #tpu.memory_space<vmem>>, vector<1x32x32xf32>
    %422 = vector.shape_cast %421 : vector<1x32x32xf32> to vector<32x32xf32>
    %423 = tpu.transpose %422, [1, 0] : vector<32x32xf32> -> vector<32x32xf32>
    %cst_171 = arith.constant dense<0.000000e+00> : vector<32x32xf32>
    %424 = tpu.matmul %423, %422, %cst_171 {dimension_numbers = #tpu.dot_dimension_numbers<[1], [0], [0], [1], [0, 0, 1, 1], [], []>} : vector<32x32xf32>, vector<32x32xf32>, vector<32x32xf32> -> vector<32x32xf32>
    %425 = arith.mulf %424, %424 : vector<32x32xf32>
    %426 = vector.shape_cast %425 : vector<32x32xf32> to vector<1x32x32xf32>
    %cst_172 = arith.constant dense<0.000000e+00> : vector<1xf32>
    %427 = vector.multi_reduction <add>, %426, %cst_172 [1, 2] : vector<1x32x32xf32> to vector<1xf32>
    %428 = vector.shape_cast %427 : vector<1xf32> to vector<1x1x1xf32>
    %429 = vector.extract %428[0, 0, 0] : f32 from vector<1x1x1xf32>
    %430 = arith.addf %420, %429 : f32
    %431 = arith.mulf %422, %422 : vector<32x32xf32>
    %432 = vector.shape_cast %431 : vector<32x32xf32> to vector<1x32x32xf32>
    %cst_173 = arith.constant dense<0.000000e+00> : vector<1xf32>
    %433 = vector.multi_reduction <add>, %432, %cst_173 [1, 2] : vector<1x32x32xf32> to vector<1xf32>
    %434 = vector.shape_cast %433 : vector<1xf32> to vector<1x1x1xf32>
    %435 = vector.extract %434[0, 0, 0] : f32 from vector<1x1x1xf32>
    %cst_174 = arith.constant 2.000000e+00 : f32
    %436 = arith.mulf %cst_174, %435 : f32
    %437 = arith.subf %430, %436 : f32
    %c2 = arith.constant 2 : index
    %c0_175 = arith.constant 0 : index
    %c0_176 = arith.constant 0 : index
    %438 = vector.load %arg17[%c2, %c0_175, %c0_176] : memref<6x32x32xf32, #tpu.memory_space<vmem>>, vector<1x32x32xf32>
    %439 = vector.shape_cast %438 : vector<1x32x32xf32> to vector<32x32xf32>
    %440 = tpu.transpose %439, [1, 0] : vector<32x32xf32> -> vector<32x32xf32>
    %cst_177 = arith.constant dense<0.000000e+00> : vector<32x32xf32>
    %441 = tpu.matmul %440, %439, %cst_177 {dimension_numbers = #tpu.dot_dimension_numbers<[1], [0], [0], [1], [0, 0, 1, 1], [], []>} : vector<32x32xf32>, vector<32x32xf32>, vector<32x32xf32> -> vector<32x32xf32>
    %442 = arith.mulf %441, %441 : vector<32x32xf32>
    %443 = vector.shape_cast %442 : vector<32x32xf32> to vector<1x32x32xf32>
    %cst_178 = arith.constant dense<0.000000e+00> : vector<1xf32>
    %444 = vector.multi_reduction <add>, %443, %cst_178 [1, 2] : vector<1x32x32xf32> to vector<1xf32>
    %445 = vector.shape_cast %444 : vector<1xf32> to vector<1x1x1xf32>
    %446 = vector.extract %445[0, 0, 0] : f32 from vector<1x1x1xf32>
    %447 = arith.addf %437, %446 : f32
    %448 = arith.mulf %439, %439 : vector<32x32xf32>
    %449 = vector.shape_cast %448 : vector<32x32xf32> to vector<1x32x32xf32>
    %cst_179 = arith.constant dense<0.000000e+00> : vector<1xf32>
    %450 = vector.multi_reduction <add>, %449, %cst_179 [1, 2] : vector<1x32x32xf32> to vector<1xf32>
    %451 = vector.shape_cast %450 : vector<1xf32> to vector<1x1x1xf32>
    %452 = vector.extract %451[0, 0, 0] : f32 from vector<1x1x1xf32>
    %cst_180 = arith.constant 2.000000e+00 : f32
    %453 = arith.mulf %cst_180, %452 : f32
    %454 = arith.subf %447, %453 : f32
    %c3 = arith.constant 3 : index
    %c0_181 = arith.constant 0 : index
    %c0_182 = arith.constant 0 : index
    %455 = vector.load %arg17[%c3, %c0_181, %c0_182] : memref<6x32x32xf32, #tpu.memory_space<vmem>>, vector<1x32x32xf32>
    %456 = vector.shape_cast %455 : vector<1x32x32xf32> to vector<32x32xf32>
    %457 = tpu.transpose %456, [1, 0] : vector<32x32xf32> -> vector<32x32xf32>
    %cst_183 = arith.constant dense<0.000000e+00> : vector<32x32xf32>
    %458 = tpu.matmul %457, %456, %cst_183 {dimension_numbers = #tpu.dot_dimension_numbers<[1], [0], [0], [1], [0, 0, 1, 1], [], []>} : vector<32x32xf32>, vector<32x32xf32>, vector<32x32xf32> -> vector<32x32xf32>
    %459 = arith.mulf %458, %458 : vector<32x32xf32>
    %460 = vector.shape_cast %459 : vector<32x32xf32> to vector<1x32x32xf32>
    %cst_184 = arith.constant dense<0.000000e+00> : vector<1xf32>
    %461 = vector.multi_reduction <add>, %460, %cst_184 [1, 2] : vector<1x32x32xf32> to vector<1xf32>
    %462 = vector.shape_cast %461 : vector<1xf32> to vector<1x1x1xf32>
    %463 = vector.extract %462[0, 0, 0] : f32 from vector<1x1x1xf32>
    %464 = arith.addf %454, %463 : f32
    %465 = arith.mulf %456, %456 : vector<32x32xf32>
    %466 = vector.shape_cast %465 : vector<32x32xf32> to vector<1x32x32xf32>
    %cst_185 = arith.constant dense<0.000000e+00> : vector<1xf32>
    %467 = vector.multi_reduction <add>, %466, %cst_185 [1, 2] : vector<1x32x32xf32> to vector<1xf32>
    %468 = vector.shape_cast %467 : vector<1xf32> to vector<1x1x1xf32>
    %469 = vector.extract %468[0, 0, 0] : f32 from vector<1x1x1xf32>
    %cst_186 = arith.constant 2.000000e+00 : f32
    %470 = arith.mulf %cst_186, %469 : f32
    %471 = arith.subf %464, %470 : f32
    %c4 = arith.constant 4 : index
    %c0_187 = arith.constant 0 : index
    %c0_188 = arith.constant 0 : index
    %472 = vector.load %arg17[%c4, %c0_187, %c0_188] : memref<6x32x32xf32, #tpu.memory_space<vmem>>, vector<1x32x32xf32>
    %473 = vector.shape_cast %472 : vector<1x32x32xf32> to vector<32x32xf32>
    %474 = tpu.transpose %473, [1, 0] : vector<32x32xf32> -> vector<32x32xf32>
    %cst_189 = arith.constant dense<0.000000e+00> : vector<32x32xf32>
    %475 = tpu.matmul %474, %473, %cst_189 {dimension_numbers = #tpu.dot_dimension_numbers<[1], [0], [0], [1], [0, 0, 1, 1], [], []>} : vector<32x32xf32>, vector<32x32xf32>, vector<32x32xf32> -> vector<32x32xf32>
    %476 = arith.mulf %475, %475 : vector<32x32xf32>
    %477 = vector.shape_cast %476 : vector<32x32xf32> to vector<1x32x32xf32>
    %cst_190 = arith.constant dense<0.000000e+00> : vector<1xf32>
    %478 = vector.multi_reduction <add>, %477, %cst_190 [1, 2] : vector<1x32x32xf32> to vector<1xf32>
    %479 = vector.shape_cast %478 : vector<1xf32> to vector<1x1x1xf32>
    %480 = vector.extract %479[0, 0, 0] : f32 from vector<1x1x1xf32>
    %481 = arith.addf %471, %480 : f32
    %482 = arith.mulf %473, %473 : vector<32x32xf32>
    %483 = vector.shape_cast %482 : vector<32x32xf32> to vector<1x32x32xf32>
    %cst_191 = arith.constant dense<0.000000e+00> : vector<1xf32>
    %484 = vector.multi_reduction <add>, %483, %cst_191 [1, 2] : vector<1x32x32xf32> to vector<1xf32>
    %485 = vector.shape_cast %484 : vector<1xf32> to vector<1x1x1xf32>
    %486 = vector.extract %485[0, 0, 0] : f32 from vector<1x1x1xf32>
    %cst_192 = arith.constant 2.000000e+00 : f32
    %487 = arith.mulf %cst_192, %486 : f32
    %488 = arith.subf %481, %487 : f32
    %c5 = arith.constant 5 : index
    %c0_193 = arith.constant 0 : index
    %c0_194 = arith.constant 0 : index
    %489 = vector.load %arg17[%c5, %c0_193, %c0_194] : memref<6x32x32xf32, #tpu.memory_space<vmem>>, vector<1x32x32xf32>
    %490 = vector.shape_cast %489 : vector<1x32x32xf32> to vector<32x32xf32>
    %491 = tpu.transpose %490, [1, 0] : vector<32x32xf32> -> vector<32x32xf32>
    %cst_195 = arith.constant dense<0.000000e+00> : vector<32x32xf32>
    %492 = tpu.matmul %491, %490, %cst_195 {dimension_numbers = #tpu.dot_dimension_numbers<[1], [0], [0], [1], [0, 0, 1, 1], [], []>} : vector<32x32xf32>, vector<32x32xf32>, vector<32x32xf32> -> vector<32x32xf32>
    %493 = arith.mulf %492, %492 : vector<32x32xf32>
    %494 = vector.shape_cast %493 : vector<32x32xf32> to vector<1x32x32xf32>
    %cst_196 = arith.constant dense<0.000000e+00> : vector<1xf32>
    %495 = vector.multi_reduction <add>, %494, %cst_196 [1, 2] : vector<1x32x32xf32> to vector<1xf32>
    %496 = vector.shape_cast %495 : vector<1xf32> to vector<1x1x1xf32>
    %497 = vector.extract %496[0, 0, 0] : f32 from vector<1x1x1xf32>
    %498 = arith.addf %488, %497 : f32
    %499 = arith.mulf %490, %490 : vector<32x32xf32>
    %500 = vector.shape_cast %499 : vector<32x32xf32> to vector<1x32x32xf32>
    %cst_197 = arith.constant dense<0.000000e+00> : vector<1xf32>
    %501 = vector.multi_reduction <add>, %500, %cst_197 [1, 2] : vector<1x32x32xf32> to vector<1xf32>
    %502 = vector.shape_cast %501 : vector<1xf32> to vector<1x1x1xf32>
    %503 = vector.extract %502[0, 0, 0] : f32 from vector<1x1x1xf32>
    %cst_198 = arith.constant 2.000000e+00 : f32
    %504 = arith.mulf %cst_198, %503 : f32
    %505 = arith.subf %498, %504 : f32
    %cst_199 = arith.constant 1.920000e+02 : f32
    %506 = arith.addf %505, %cst_199 : f32
    %cst_200 = arith.constant 0.00999999977 : f32
    %507 = arith.mulf %cst_200, %506 : f32
    %cst_201 = arith.constant 1.000000e+00 : f32
    %508 = vector.broadcast %cst_201 : f32 to vector<1x1xf32>
    %509 = vector.broadcast %507 : f32 to vector<1x1xf32>
    %510 = arith.mulf %509, %508 : vector<1x1xf32>
    %c0_202 = arith.constant 0 : index
    %c0_203 = arith.constant 0 : index
    %511 = vector.load %arg19[%c0_202, %c0_203] : memref<1x1xf32, #tpu.memory_space<vmem>>, vector<1x1xf32>
    tpu.vector_store %arg19[%c0_202, %c0_203], %510 {strides = array<i32>} : memref<1x1xf32, #tpu.memory_space<vmem>>, vector<1x1xf32>,
    return
  }
  func.func @transform_0(%arg0: i32) -> (i32, i32, i32) {
    %c0_i32 = arith.constant 0 : i32
    %c0_i32_0 = arith.constant 0 : i32
    %c0_i32_1 = arith.constant 0 : i32
    %c0_i32_2 = arith.constant 0 : i32
    return %c0_i32, %c0_i32_0, %c0_i32_1 : i32, i32, i32
  }
  func.func @transform_1(%arg0: i32) -> (i32, i32, i32) {
    %c0_i32 = arith.constant 0 : i32
    %c0_i32_0 = arith.constant 0 : i32
    %c0_i32_1 = arith.constant 0 : i32
    %c0_i32_2 = arith.constant 0 : i32
    return %c0_i32, %c0_i32_0, %c0_i32_1 : i32, i32, i32
  }
  func.func @transform_2(%arg0: i32) -> (i32, i32, i32) {
    %c0_i32 = arith.constant 0 : i32
    %c0_i32_0 = arith.constant 0 : i32
    %c0_i32_1 = arith.constant 0 : i32
    %c0_i32_2 = arith.constant 0 : i32
    return %c0_i32, %c0_i32_0, %c0_i32_1 : i32, i32, i32
  }
  func.func @transform_3(%arg0: i32) -> (i32, i32, i32) {
    %c0_i32 = arith.constant 0 : i32
    %c0_i32_0 = arith.constant 0 : i32
    %c0_i32_1 = arith.constant 0 : i32
    %c0_i32_2 = arith.constant 0 : i32
    return %c0_i32, %c0_i32_0, %c0_i32_1 : i32, i32, i32
  }
  func.func @transform_4(%arg0: i32) -> (i32, i32, i32) {
    %c0_i32 = arith.constant 0 : i32
    %c0_i32_0 = arith.constant 0 : i32
    %c0_i32_1 = arith.constant 0 : i32
    %c0_i32_2 = arith.constant 0 : i32
    return %c0_i32, %c0_i32_0, %c0_i32_1 : i32, i32, i32
  }
  func.func @transform_5(%arg0: i32) -> (i32, i32, i32) {
    %c0_i32 = arith.constant 0 : i32
    %c0_i32_0 = arith.constant 0 : i32
    %c0_i32_1 = arith.constant 0 : i32
    %c0_i32_2 = arith.constant 0 : i32
    return %c0_i32, %c0_i32_0, %c0_i32_1 : i32, i32, i32
  }
  func.func @transform_6(%arg0: i32) -> (i32, i32, i32) {
    %c0_i32 = arith.constant 0 : i32
    %c0_i32_0 = arith.constant 0 : i32
    %c0_i32_1 = arith.constant 0 : i32
    %c0_i32_2 = arith.constant 0 : i32
    return %c0_i32, %c0_i32_0, %c0_i32_1 : i32, i32, i32
  }
  func.func @transform_7(%arg0: i32) -> (i32, i32, i32) {
    %c0_i32 = arith.constant 0 : i32
    %c0_i32_0 = arith.constant 0 : i32
    %c0_i32_1 = arith.constant 0 : i32
    %c0_i32_2 = arith.constant 0 : i32
    return %c0_i32, %c0_i32_0, %c0_i32_1 : i32, i32, i32
  }
  func.func @transform_8(%arg0: i32) -> (i32, i32, i32) {
    %c0_i32 = arith.constant 0 : i32
    %c0_i32_0 = arith.constant 0 : i32
    %c0_i32_1 = arith.constant 0 : i32
    %c0_i32_2 = arith.constant 0 : i32
    return %c0_i32, %c0_i32_0, %c0_i32_1 : i32, i32, i32
  }
  func.func @transform_9(%arg0: i32) -> (i32, i32, i32) {
    %c0_i32 = arith.constant 0 : i32
    %c0_i32_0 = arith.constant 0 : i32
    %c0_i32_1 = arith.constant 0 : i32
    %c0_i32_2 = arith.constant 0 : i32
    return %c0_i32, %c0_i32_0, %c0_i32_1 : i32, i32, i32
  }
  func.func @transform_10(%arg0: i32) -> (i32, i32, i32) {
    %c0_i32 = arith.constant 0 : i32
    %c0_i32_0 = arith.constant 0 : i32
    %c0_i32_1 = arith.constant 0 : i32
    %c0_i32_2 = arith.constant 0 : i32
    return %c0_i32, %c0_i32_0, %c0_i32_1 : i32, i32, i32
  }
  func.func @transform_11(%arg0: i32) -> (i32, i32, i32) {
    %c0_i32 = arith.constant 0 : i32
    %c0_i32_0 = arith.constant 0 : i32
    %c0_i32_1 = arith.constant 0 : i32
    %c0_i32_2 = arith.constant 0 : i32
    return %c0_i32, %c0_i32_0, %c0_i32_1 : i32, i32, i32
  }
  func.func @transform_12(%arg0: i32) -> (i32, i32, i32) {
    %c0_i32 = arith.constant 0 : i32
    %c0_i32_0 = arith.constant 0 : i32
    %c0_i32_1 = arith.constant 0 : i32
    %c0_i32_2 = arith.constant 0 : i32
    return %c0_i32, %c0_i32_0, %c0_i32_1 : i32, i32, i32
  }
  func.func @transform_13(%arg0: i32) -> (i32, i32, i32) {
    %c0_i32 = arith.constant 0 : i32
    %c0_i32_0 = arith.constant 0 : i32
    %c0_i32_1 = arith.constant 0 : i32
    %c0_i32_2 = arith.constant 0 : i32
    return %c0_i32, %c0_i32_0, %c0_i32_1 : i32, i32, i32
  }
  func.func @transform_14(%arg0: i32) -> (i32, i32) {
    %c0_i32 = arith.constant 0 : i32
    %c0_i32_0 = arith.constant 0 : i32
    %c0_i32_1 = arith.constant 0 : i32
    return %c0_i32, %c0_i32_0 : i32, i32
  }
  func.func @transform_15(%arg0: i32) -> (i32, i32) {
    %c0_i32 = arith.constant 0 : i32
    %c0_i32_0 = arith.constant 0 : i32
    %c0_i32_1 = arith.constant 0 : i32
    return %c0_i32, %c0_i32_0 : i32, i32
  }
  func.func @transform_16(%arg0: i32) -> (i32, i32, i32) {
    %c0_i32 = arith.constant 0 : i32
    %c0_i32_0 = arith.constant 0 : i32
    %c0_i32_1 = arith.constant 0 : i32
    %c0_i32_2 = arith.constant 0 : i32
    return %c0_i32, %c0_i32_0, %c0_i32_1 : i32, i32, i32
  }
  func.func @transform_17(%arg0: i32) -> (i32, i32) {
    %c0_i32 = arith.constant 0 : i32
    %c0_i32_0 = arith.constant 0 : i32
    %c0_i32_1 = arith.constant 0 : i32
    return %c0_i32, %c0_i32_0 : i32, i32
  }
  func.func @transform_18(%arg0: i32) -> (i32, i32) {
    %c0_i32 = arith.constant 0 : i32
    %c0_i32_0 = arith.constant 0 : i32
    %c0_i32_1 = arith.constant 0 : i32
    return %c0_i32, %c0_i32_0 : i32, i32
  }
}

</mosaic_0001>

<bundles_post_ra>
// kernel: sequence_classifier_forward.1
= control target key start
LH: loop header
LB: loop body
LE: loop exit
PB: predicated region body
PF: predicated region fallthrough
CT: control target
= control target key end

     0   :  { %s6081_s0 = inlined_call_operand.vmem [shape: f32[2,8,32], index: 0, kind: input, shape index: {}]   ;;  %s6082_s1 = inlined_call_operand.vmem [shape: f32[2,1,8], index: 1, kind: input, shape index: {}]   ;;  %s6083_s2 = inlined_call_operand.vmem [shape: bf16[2,32,96], index: 2, kind: input, shape index: {}]   ;;  %s6084_s3 = inlined_call_operand.vmem [shape: f32[2,1,96], index: 3, kind: input, shape index: {}]   ;;  %s6085_s4 = inlined_call_operand.vmem [shape: bf16[2,32,32], index: 4, kind: input, shape index: {}]   ;;  %s6086_s5 = inlined_call_operand.vmem [shape: f32[2,1,32], index: 5, kind: input, shape index: {}]   ;;  %s6087_s6 = inlined_call_operand.vmem [shape: f32[2,1,32], index: 6, kind: input, shape index: {}]   ;;  %s6088_s7 = inlined_call_operand.vmem [shape: f32[2,1,32], index: 7, kind: input, shape index: {}]   ;;  %s6089_s8 = inlined_call_operand.vmem [shape: bf16[2,32,64], index: 8, kind: input, shape index: {}]   ;;  %s6090_s9 = inlined_call_operand.vmem [shape: f32[2,1,64], index: 9, kind: input, shape index: {}]   ;;  %s6091_s10 = inlined_call_operand.vmem [shape: bf16[2,64,32], index: 10, kind: input, shape index: {}]   ;;  %s6092_s11 = inlined_call_operand.vmem [shape: f32[2,1,32], index: 11, kind: input, shape index: {}]   ;;  %s6093_s12 = inlined_call_operand.vmem [shape: f32[2,1,32], index: 12, kind: input, shape index: {}]   ;;  %s6094_s13 = inlined_call_operand.vmem [shape: f32[2,1,32], index: 13, kind: input, shape index: {}]   ;;  %s6095_s14 = inlined_call_operand.vmem [shape: f32[32,4], index: 14, kind: input, shape index: {}]   ;;  %s6096_s15 = inlined_call_operand.vmem [shape: f32[1,4], index: 15, kind: input, shape index: {}]   ;;  %s6097_s16 = inlined_call_operand.vmem [shape: f32[6,32,32], index: 16, kind: input, shape index: {}]   ;;  %s6098_s17 = inlined_call_operand.hbm [shape: f32[2,4], index: 17, kind: output, shape index: {0}]   ;;  %s6099_s18 = inlined_call_operand.hbm [shape: f32[1,1], index: 18, kind: output, shape index: {1}]  }
   0x1   :  { %6113 = sst [smem:[#allocation8_spill]] %s6081_s0 }
   0x2   :  { %6114 = sst [smem:[#allocation9_spill]] %s6082_s1 }
   0x3   :  { %6115 = sst [smem:[#allocation10_spill]] %s6083_s2 }
   0x4   :  { %24 = vsyncpa [#allocation3], 0  ;;  %s6116_s29 = sld [smem:[#allocation10_spill]]  ;;  %v5005_v1 = vmov 0.0   ;;  %vm5006_vm0 = vmmov 0   ;;  %vm89_vm1 = vcmask 261120  }
   0x5   :  { %4425 = vmatprep.subr.bf16.mxu0 %v5005_v1  ;;  %4433 = vmatprep.subr.bf16.mxu1 %v5005_v1  ;;  %s6117_s20 = sld [smem:[#allocation8_spill]] }
   0x6   :  { %4429 = vmatprep.mubr.msk.bf16.mxu0 %vm5006_vm0, %v5005_v1  ;;  %4435 = vmatprep.mubr.msk.bf16.mxu1 %vm5006_vm0, %v5005_v1 }
   0xa   :  { %v4863_v0 = vld [vmem:[%s6116_s29 + $0x8] sm:$0xff]   ;;  %v4864_v2 = vld [vmem:[%s6116_s29] sm:$0xff]  }
   0xb   :  { %4426 = vmatpush3.bf16.msra.mxu0 %v4863_v0  ;;  %v5128_v3 = vld [vmem:[%s6117_s20] sm:$0xff]  ;;  %v5133_v4 = vld [vmem:[%s6117_s20 + $0x8] sm:$0xff] }
   0xc   :  { %4427 = vmatprep.subr.bf16.mxu0 %v5005_v1  ;;  %v65_v5 = vpack.c.bf16 %v5133_v4, %v5128_v3 }
   0xf   :  { %4428 = vmatpush3.bf16.msra.mxu0 %v4864_v2 }
  0x10   :  { %4439 = vmatprep.subr.bf16.mxu0 %v5005_v1 }
  0x12   :  { %4430 = vmatmul.mubr.msk.bf16.vlgmr.msra.gmra.mxu0 %vm89_vm1, %v65_v5 }
  0x13   :  { %4441 = vmatprep.mubr.msk.bf16.mxu0 %vm5006_vm0, %v5005_v1 }
  0x14   :  { %25 = vsyncpa [#allocation5], 0  ;;  %v4116_v6 = vld [vmem:[%s6084_s3] ss:$0 sm:$0xff]  ;;  %s5007_s24 = smov 96   ;;  %vm143_vm2 = vcmask 64512  }
  0x15   :  { %s6118_s27 = sld [smem:[#allocation9_spill]]  ;;  %s5008_s0 = smov 64   ;;  %vm284_vm3 = vcmask 1043456   ;;  %vm1410_vm4 = vcmask 523264   ;;  %vm2946_vm5 = vcmask 1041409   ;;  %vm3020_vm6 = vcmask 25600  }
  0x16   :  { %s5009_s19 = smov 88   ;;  %s5010_s1 = smov 120  }
  0x17   :  { %s5011_s20 = smov 56   ;;  %s6111_s21 = smov 112  }
  0x18   :  { %s5013_s22 = smov 80   ;;  %s6109_s28 = smov 48  }
  0x19   :  { %s6107_s30 = smov 72   ;;  %s6105_s2 = smov 104  }
  0x1a   :  { %s6103_s26 = smov 40   ;;  %s6121_s23 = smov 72  }
  0x1b   :  { %v5170_v20 = vld [vmem:[%s6118_s27] ss:$0 sm:$0xff]  ;;  %v5176_v26 = vld [vmem:[%s6118_s27 + $0x1] ss:$0 sm:$0xff]  ;;  %s6122_s25 = smov 104  }
  0xd2   :  { %v127_v7 = vpop.f32.mrf.mxu0 }
  0xd3   :  { %v128_v8 = vadd.f32 %v4116_v6, %v127_v7 }
  0xd4   :  { %v4431_v9 = vpop.f32.mrf.mxu0 }
  0xd5   :  { %v5147_v10 = vpack.c.bf16 %v128_v8, %v128_v8 }
  0xd6   :  { %v130_v11 = vpop.f32.mrf.mxu0 }
  0xd7   :  { %v131_v12 = vadd.f32 %v4116_v6, %v130_v11  ;;  %141 = vrot.lane.b32.xlu0 %v5147_v10, %s5007_s24 }
  0xd8   :  { %v4432_v13 = vpop.f32.mrf.mxu0 }
  0xd9   :  { %v5151_v14 = vpack.c.bf16 %v131_v12, %v131_v12 }
  0xdb   :  { %191 = vrot.lane.b32.xlu0 %v5151_v14, %s5007_s24 }
 0x149   :  { %v142_v15 = vpop.permute.xlu0 %141 }
 0x14a   :  { %v148_v16 = vsel %vm143_vm2, %v142_v15, 0 }
 0x14b   :  { %4434 = vmatpush3.bf16.xpose.msra.mxu1 %v148_v16 }
 0x14c   :  { %4445 = vmatprep.subr.bf16.mxu1 %v5005_v1 }
 0x14d   :  { %v192_v17 = vpop.permute.xlu0 %191 }
 0x14e   :  { %v197_v18 = vsel %vm143_vm2, %v192_v17, 0 }
 0x14f   :  { %4440 = vmatpush3.bf16.xpose.msra.mxu0 %v197_v18 }
 0x150   :  { %4451 = vmatprep.subr.bf16.mxu0 %v5005_v1 }
 0x152   :  { %4436 = vmatmul.mubr.msk.bf16.vlgmr.msra.gmra.mxu1 %vm143_vm2, %v5147_v10 }
 0x153   :  { %4447 = vmatprep.mubr.msk.bf16.mxu1 %vm5006_vm0, %v5005_v1 }
 0x156   :  { %4442 = vmatmul.mubr.msk.bf16.vlgmr.msra.gmra.mxu0 %vm143_vm2, %v5151_v14 }
 0x157   :  { %4453 = vmatprep.mubr.msk.bf16.mxu0 %vm5006_vm0, %v5005_v1 }
 0x212   :  { %v184_v19 = vpop.f32.mrf.mxu1 }
 0x213   :  { %v239_v21 = vmul.f32 0.35355338, %v184_v19 }
 0x214   :  { %v4437_v22 = vpop.f32.mrf.mxu1 }
 0x215   :  { %v253_v23 = vadd.f32 %v5170_v20, %v239_v21 }
 0x216   :  { %v187_v24 = vpop.f32.mrf.mxu1  ;;  %v233_v25 = vpop.f32.mrf.mxu0 }
 0x217   :  { %v240_v27 = vmul.f32 0.35355338, %v233_v25  ;;  %v255_v28 = vsel %vm143_vm2, %v253_v23, -inf }
 0x218   :  { %256 = vmax.xlane.f32.xlu1 %v255_v28  ;;  %v4438_v29 = vpop.f32.mrf.mxu1  ;;  %v4443_v30 = vpop.f32.mrf.mxu0 }
 0x219   :  { %v254_v31 = vadd.f32 %v5176_v26, %v240_v27 }
 0x21a   :  { %v236_v32 = vpop.f32.mrf.mxu0 }
 0x21b   :  { %v258_v33 = vsel %vm143_vm2, %v254_v31, -inf }
 0x21c   :  { %259 = vmax.xlane.f32.xlu1 %v258_v33  ;;  %v4444_v34 = vpop.f32.mrf.mxu0 }
 0x22d   :  { %279 = vrot.lane.b32.xlu1 %v5147_v10, %s5008_s0 }
 0x231   :  { %328 = vrot.lane.b32.xlu1 %v5151_v14, %s5008_s0 }
 0x235   :  { %379 = vrot.lane.b32.xlu1 %v5147_v10, %s5009_s19 }
 0x2a1   :  { %v257_v35 = vpop.xlane.xlu1 %256 }
 0x2a2   :  { %v261_v36 = vsub.f32 %v253_v23, %v257_v35 }
 0x2a4   :  { %v263_v37 = vmul.f32 1.442695, %v261_v36 }
 0x2a5   :  { %v260_v38 = vpop.xlane.xlu1 %259 }
 0x2a6   :  { %4879 = vpow2.f32 %v263_v37  ;;  %v262_v39 = vsub.f32 %v254_v31, %v260_v38 }
 0x2a8   :  { %v265_v40 = vmul.f32 1.442695, %v262_v39 }
 0x2a9   :  { %v280_v41 = vpop.permute.xlu1 %279 }
 0x2aa   :  { %4881 = vpow2.f32 %v265_v40  ;;  %v286_v42 = vsel %vm284_vm3, %v280_v41, 0 }
 0x2ab   :  { %4446 = vmatpush3.bf16.msra.mxu1 %v286_v42 }
 0x2ac   :  { %4457 = vmatprep.subr.bf16.mxu1 %v5005_v1 }
 0x2ad   :  { %v329_v43 = vpop.permute.xlu1 %328 }
 0x2ae   :  { %v334_v44 = vsel %vm284_vm3, %v329_v43, 0 }
 0x2af   :  { %4452 = vmatpush3.bf16.msra.mxu0 %v334_v44 }
 0x2b0   :  { %4463 = vmatprep.subr.bf16.mxu0 %v5005_v1 }
 0x2b1   :  { %v380_v49 = vpop.permute.xlu1 %379 }
 0x2b2   :  { %v385_v56 = vsel %vm143_vm2, %v380_v49, 0  ;;  %v134_v49 = vld [vmem:[%s6085_s4] sm:$0xf] }
 0x2b3   :  { %v4880_v45 = vpop.eup %4879 }
 0x2b4   :  { %v267_v46 = vsel %vm143_vm2, %v4880_v45, 0.0 }
 0x2b5   :  { %268 = vadd.xlane.f32.xlu0 %v267_v46 }
 0x2b7   :  { %v4882_v47 = vpop.eup %4881 }
 0x2b8   :  { %v270_v48 = vsel %vm143_vm2, %v4882_v47, 0.0 }
 0x2b9   :  { %271 = vadd.xlane.f32.xlu1 %v270_v48 }
 0x2ca   :  { %429 = vrot.lane.b32.xlu1 %v5151_v14, %s5009_s19 }
 0x2cb   :  { %377 = vrot.lane.b32.xlu0 %v5147_v10, %s5010_s1 }
 0x2ce   :  { %427 = vrot.lane.b32.xlu1 %v5151_v14, %s5010_s1 }
 0x33e   :  { %v269_v50 = vpop.xlane.xlu0 %268 }
 0x33f   :  { %4883 = vrcp.f32 %v269_v50 }
 0x342   :  { %v272_v51 = vpop.xlane.xlu1 %271  ;;  %v378_v61 = vpop.permute.xlu0 %377 }
 0x343   :  { %4885 = vrcp.f32 %v272_v51 }
 0x346   :  { %v430_v58 = vpop.permute.xlu1 %429 }
 0x347   :  { %v435_v60 = vsel %vm143_vm2, %v430_v58, 0 }
 0x34a   :  { %v428_v62 = vpop.permute.xlu1 %427 }
 0x34c   :  { %v4884_v52 = vpop.eup %4883 }
 0x34d   :  { %v274_v53 = vmul.f32 %v4884_v52, %v4880_v45  ;;  %v653_v52 = vsel %vm284_vm3, %v134_v49, 0 }
 0x34f   :  { %v277_v54 = vpack.c.bf16 %v274_v53, %v274_v53 }
 0x350   :  { %v4886_v55 = vpop.eup %4885 }
 0x351   :  { %4448 = vmatmul.mubr.msk.bf16.vlgmr.msra.gmra.mxu1 %vm143_vm2, %v277_v54  ;;  %v276_v57 = vmul.f32 %v4886_v55, %v4882_v47 }
 0x352   :  { %4458 = vmatpush3.bf16.xpose.msra.mxu1 %v385_v56  ;;  %4459 = vmatprep.mubr.msk.bf16.mxu1 %vm5006_vm0, %v5005_v1 }
 0x353   :  { %v278_v59 = vpack.c.bf16 %v276_v57, %v276_v57  ;;  %4469 = vmatprep.subr.bf16.mxu1 %v5005_v1  ;;  %v135_v57 = vld [vmem:[%s6085_s4 + $0x4] sm:$0xf] }
 0x354   :  { %v606_v58 = vsel %vm284_vm3, %v135_v57, 0 }
 0x355   :  { %4454 = vmatmul.mubr.msk.bf16.vlgmr.msra.gmra.mxu0 %vm143_vm2, %v278_v59 }
 0x356   :  { %4464 = vmatpush3.bf16.xpose.msra.mxu0 %v435_v60  ;;  %4465 = vmatprep.mubr.msk.bf16.mxu0 %vm5006_vm0, %v5005_v1 }
 0x357   :  { %4475 = vmatprep.subr.bf16.mxu0 %v5005_v1 }
 0x359   :  { %4460 = vmatmul.mubr.msk.bf16.vlgmr.msra.gmra.mxu1 %vm143_vm2, %v378_v61 }
 0x35a   :  { %4471 = vmatprep.mubr.msk.bf16.mxu1 %vm5006_vm0, %v5005_v1 }
 0x35d   :  { %4466 = vmatmul.mubr.msk.bf16.vlgmr.msra.gmra.mxu0 %vm143_vm2, %v428_v62 }
 0x35e   :  { %4477 = vmatprep.mubr.msk.bf16.mxu0 %vm5006_vm0, %v5005_v1 }
 0x411   :  { %v5215_v63 = vpop.f32.mrf.mxu1 }
 0x413   :  { %v4449_v0 = vpop.f32.mrf.mxu1 }
 0x415   :  { %v325_v2 = vpop.f32.mrf.mxu1  ;;  %v5217_v5 = vpop.f32.mrf.mxu0 }
 0x416   :  { %v376_v6 = vpack.c.bf16 %v5217_v5, %v5215_v63 }
 0x417   :  { %v4450_v7 = vpop.f32.mrf.mxu1  ;;  %v4455_v8 = vpop.f32.mrf.mxu0 }
 0x419   :  { %v373_v9 = vpop.f32.mrf.mxu0  ;;  %v421_v11 = vpop.f32.mrf.mxu1 }
 0x41a   :  { %v477_v12 = vmul.f32 0.35355338, %v421_v11 }
 0x41b   :  { %v4456_v13 = vpop.f32.mrf.mxu0  ;;  %v4461_v15 = vpop.f32.mrf.mxu1 }
 0x41c   :  { %v479_v16 = vadd.f32 %v5170_v20, %v477_v12 }
 0x41d   :  { %v424_v17 = vpop.f32.mrf.mxu1  ;;  %v471_v18 = vpop.f32.mrf.mxu0 }
 0x41e   :  { %v478_v19 = vmul.f32 0.35355338, %v471_v18  ;;  %v481_v21 = vsel %vm143_vm2, %v479_v16, -inf }
 0x41f   :  { %482 = vmax.xlane.f32.xlu1 %v481_v21  ;;  %v4462_v22 = vpop.f32.mrf.mxu1  ;;  %v4467_v23 = vpop.f32.mrf.mxu0 }
 0x420   :  { %v480_v24 = vadd.f32 %v5176_v26, %v478_v19 }
 0x421   :  { %v474_v25 = vpop.f32.mrf.mxu0 }
 0x422   :  { %v484_v27 = vsel %vm143_vm2, %v480_v24, -inf }
 0x423   :  { %485 = vmax.xlane.f32.xlu0 %v484_v27  ;;  %v4468_v28 = vpop.f32.mrf.mxu0 }
 0x439   :  { %553 = vrot.lane.b32.xlu0 %v5151_v14, %s5011_s20 }
 0x43d   :  { %696 = vrot.lane.b32.xlu0 %v5147_v10, %s6111_s21 }
 0x4a8   :  { %v483_v29 = vpop.xlane.xlu1 %482 }
 0x4a9   :  { %v487_v30 = vsub.f32 %v479_v16, %v483_v29 }
 0x4ab   :  { %v489_v31 = vmul.f32 1.442695, %v487_v30 }
 0x4ac   :  { %v486_v32 = vpop.xlane.xlu0 %485 }
 0x4ad   :  { %4887 = vpow2.f32 %v489_v31  ;;  %v488_v33 = vsub.f32 %v480_v24, %v486_v32 }
 0x4af   :  { %v491_v34 = vmul.f32 1.442695, %v488_v33 }
 0x4b0   :  { %v554_v35 = vpop.permute.xlu0 %553 }
 0x4b1   :  { %4889 = vpow2.f32 %v491_v34  ;;  %v559_v36 = vsel %vm284_vm3, %v554_v35, 0 }
 0x4b2   :  { %4476 = vmatpush3.bf16.msra.mxu0 %v559_v36 }
 0x4b3   :  { %4487 = vmatprep.subr.bf16.mxu0 %v5005_v1 }
 0x4b4   :  { %v697_v9 = vpop.permute.xlu0 %696 }
 0x4ba   :  { %v4888_v37 = vpop.eup %4887 }
 0x4bb   :  { %v493_v38 = vsel %vm143_vm2, %v4888_v37, 0.0 }
 0x4bc   :  { %494 = vadd.xlane.f32.xlu1 %v493_v38 }
 0x4be   :  { %v4890_v39 = vpop.eup %4889 }
 0x4bf   :  { %v496_v40 = vsel %vm143_vm2, %v4890_v39, 0.0 }
 0x4c0   :  { %497 = vadd.xlane.f32.xlu1 %v496_v40 }
 0x4d1   :  { %505 = vrot.lane.b32.xlu1 %v5147_v10, %s5011_s20 }
 0x4d5   :  { %698 = vrot.lane.b32.xlu1 %v5147_v10, %s5013_s22 }
 0x4d9   :  { %748 = vrot.lane.b32.xlu1 %v5151_v14, %s5013_s22 }
 0x4dd   :  { %746 = vrot.lane.b32.xlu1 %v5151_v14, %s6111_s21  ;;  %s6123_s21 = smov 40  }
 0x545   :  { %v495_v41 = vpop.xlane.xlu1 %494 }
 0x546   :  { %4891 = vrcp.f32 %v495_v41 }
 0x549   :  { %v498_v42 = vpop.xlane.xlu1 %497 }
 0x54a   :  { %4893 = vrcp.f32 %v498_v42 }
 0x54d   :  { %v506_v43 = vpop.permute.xlu1 %505 }
 0x54e   :  { %v511_v44 = vsel %vm284_vm3, %v506_v43, 0 }
 0x54f   :  { %4470 = vmatpush3.bf16.msra.mxu1 %v511_v44 }
 0x550   :  { %4481 = vmatprep.subr.bf16.mxu1 %v5005_v1 }
 0x551   :  { %v699_v53 = vpop.permute.xlu1 %698 }
 0x552   :  { %v704_v5 = vsel %vm143_vm2, %v699_v53, 0 }
 0x553   :  { %v4892_v45 = vpop.eup %4891 }
 0x554   :  { %v500_v46 = vmul.f32 %v4892_v45, %v4888_v37 }
 0x555   :  { %v749_v54 = vpop.permute.xlu1 %748 }
 0x556   :  { %v503_v47 = vpack.c.bf16 %v500_v46, %v500_v46  ;;  %v754_v55 = vsel %vm143_vm2, %v749_v54, 0 }
 0x557   :  { %v4894_v48 = vpop.eup %4893 }
 0x558   :  { %4472 = vmatmul.mubr.msk.bf16.vlgmr.msra.gmra.mxu1 %vm143_vm2, %v503_v47  ;;  %v502_v50 = vmul.f32 %v4894_v48, %v4890_v39 }
 0x559   :  { %4483 = vmatprep.mubr.msk.bf16.mxu1 %vm5006_vm0, %v5005_v1  ;;  %v747_v56 = vpop.permute.xlu1 %746  ;;  %4482 = vmatpush3.bf16.msra.mxu1 %v606_v58 }
 0x55a   :  { %v504_v51 = vpack.c.bf16 %v502_v50, %v502_v50  ;;  %4493 = vmatprep.subr.bf16.mxu1 %v5005_v1 }
 0x55c   :  { %4478 = vmatmul.mubr.msk.bf16.vlgmr.msra.gmra.mxu0 %vm143_vm2, %v504_v51 }
 0x55d   :  { %4488 = vmatpush3.bf16.msra.mxu0 %v653_v52  ;;  %4489 = vmatprep.mubr.msk.bf16.mxu0 %vm5006_vm0, %v5005_v1 }
 0x55e   :  { %4499 = vmatprep.subr.bf16.mxu0 %v5005_v1 }
 0x564   :  { %4490 = vmatmul.mubr.msk.bf16.vlgmr.msra.gmra.mxu0 %vm143_vm2, %v376_v6 }
 0x565   :  { %4500 = vmatpush3.bf16.xpose.msra.mxu0 %v754_v55  ;;  %4501 = vmatprep.mubr.msk.bf16.mxu0 %vm5006_vm0, %v5005_v1 }
 0x566   :  { %4511 = vmatprep.subr.bf16.mxu0 %v5005_v1 }
 0x56c   :  { %4502 = vmatmul.mubr.msk.bf16.vlgmr.msra.gmra.mxu0 %vm143_vm2, %v747_v56 }
 0x56d   :  { %4513 = vmatprep.mubr.msk.bf16.mxu0 %vm5006_vm0, %v5005_v1 }
 0x618   :  { %v547_v59 = vpop.f32.mrf.mxu1 }
 0x61a   :  { %v4473_v60 = vpop.f32.mrf.mxu1 }
 0x61b   :  { %v136_v60 = vld [vmem:[%s6085_s4 + $0x8] sm:$0xf] }
 0x61c   :  { %v550_v61 = vpop.f32.mrf.mxu1  ;;  %v595_v62 = vpop.f32.mrf.mxu0 }
 0x61d   :  { %v601_v63 = vpack.c.bf16 %v595_v62, %v547_v59  ;;  %v925_v61 = vsel %vm284_vm3, %v136_v60, 0 }
 0x61e   :  { %v4474_v0 = vpop.f32.mrf.mxu1  ;;  %v4479_v2 = vpop.f32.mrf.mxu0 }
 0x61f   :  { %4484 = vmatmul.mubr.msk.bf16.vlgmr.msra.gmra.mxu1 %vm143_vm2, %v601_v63 }
 0x620   :  { %4494 = vmatpush3.bf16.xpose.msra.mxu1 %v704_v5  ;;  %v598_v6 = vpop.f32.mrf.mxu0  ;;  %4495 = vmatprep.mubr.msk.bf16.mxu1 %vm5006_vm0, %v5005_v1 }
 0x621   :  { %4505 = vmatprep.subr.bf16.mxu1 %v5005_v1 }
 0x622   :  { %v4480_v7 = vpop.f32.mrf.mxu0 }
 0x624   :  { %v5275_v8 = vpop.f32.mrf.mxu0 }
 0x626   :  { %v4491_v11 = vpop.f32.mrf.mxu0 }
 0x627   :  { %4496 = vmatmul.mubr.msk.bf16.vlgmr.msra.gmra.mxu1 %vm143_vm2, %v697_v9 }
 0x628   :  { %v5278_v12 = vpop.f32.mrf.mxu0  ;;  %4507 = vmatprep.mubr.msk.bf16.mxu1 %vm5006_vm0, %v5005_v1 }
 0x62a   :  { %v4492_v13 = vpop.f32.mrf.mxu0 }
 0x62c   :  { %v790_v15 = vpop.f32.mrf.mxu0 }
 0x62d   :  { %v797_v16 = vmul.f32 0.35355338, %v790_v15 }
 0x62e   :  { %v4503_v17 = vpop.f32.mrf.mxu0 }
 0x62f   :  { %v799_v18 = vadd.f32 %v5176_v26, %v797_v16 }
 0x630   :  { %v793_v19 = vpop.f32.mrf.mxu0 }
 0x631   :  { %v803_v21 = vsel %vm143_vm2, %v799_v18, -inf }
 0x632   :  { %804 = vmax.xlane.f32.xlu1 %v803_v21  ;;  %v4504_v22 = vpop.f32.mrf.mxu0 }
 0x643   :  { %824 = vrot.lane.b32.xlu1 %v5147_v10, %s6109_s28 }
 0x647   :  { %972 = vrot.lane.b32.xlu1 %v5147_v10, %s6107_s30 }
 0x64b   :  { %1022 = vrot.lane.b32.xlu1 %v5151_v14, %s6107_s30 }
 0x64f   :  { %1020 = vrot.lane.b32.xlu1 %v5151_v14, %s6105_s2 }
 0x6bb   :  { %v805_v23 = vpop.xlane.xlu1 %804 }
 0x6bc   :  { %v807_v27 = vsub.f32 %v799_v18, %v805_v23 }
 0x6be   :  { %v810_v28 = vmul.f32 1.442695, %v807_v27 }
 0x6bf   :  { %v825_v24 = vpop.permute.xlu1 %824 }
 0x6c0   :  { %v830_v25 = vsel %vm284_vm3, %v825_v24, 0  ;;  %4895 = vpow2.f32 %v810_v28 }
 0x6c1   :  { %4506 = vmatpush3.bf16.msra.mxu1 %v830_v25 }
 0x6c2   :  { %4517 = vmatprep.subr.bf16.mxu1 %v5005_v1 }
 0x6c3   :  { %v973_v53 = vpop.permute.xlu1 %972 }
 0x6c4   :  { %v978_v55 = vsel %vm143_vm2, %v973_v53, 0 }
 0x6c7   :  { %v1023_v6 = vpop.permute.xlu1 %1022 }
 0x6c8   :  { %v1028_v18 = vsel %vm143_vm2, %v1023_v6, 0 }
 0x6cb   :  { %v1021_v24 = vpop.permute.xlu1 %1020 }
 0x6cd   :  { %v4896_v39 = vpop.eup %4895 }
 0x6ce   :  { %v815_v41 = vsel %vm143_vm2, %v4896_v39, 0.0 }
 0x6df   :  { %v5294_v29 = vpop.f32.mrf.mxu1 }
 0x6e1   :  { %v4485_v30 = vpop.f32.mrf.mxu1 }
 0x6e3   :  { %v5296_v31 = vpop.f32.mrf.mxu1 }
 0x6e5   :  { %v4486_v32 = vpop.f32.mrf.mxu1 }
 0x6e6   :  { %v690_v32 = vadd.f32 %v5275_v8, %v5294_v29 }
 0x6e7   :  { %v740_v33 = vpop.f32.mrf.mxu1 }
 0x6e8   :  { %v796_v34 = vmul.f32 0.35355338, %v740_v33 }
 0x6e9   :  { %v4497_v35 = vpop.f32.mrf.mxu1 }
 0x6ea   :  { %v798_v36 = vadd.f32 %v5170_v20, %v796_v34 }
 0x6eb   :  { %v743_v37 = vpop.f32.mrf.mxu1 }
 0x6ec   :  { %v800_v38 = vsel %vm143_vm2, %v798_v36, -inf }
 0x6ed   :  { %801 = vmax.xlane.f32.xlu0 %v800_v38  ;;  %v4498_v40 = vpop.f32.mrf.mxu1 }
 0x6f1   :  { %816 = vadd.xlane.f32.xlu0 %v815_v41 }
 0x776   :  { %v802_v42 = vpop.xlane.xlu0 %801 }
 0x777   :  { %v806_v43 = vsub.f32 %v798_v36, %v802_v42  ;;  %v693_v36 = vadd.f32 %v5278_v12, %v5296_v31 }
 0x779   :  { %v808_v44 = vmul.f32 1.442695, %v806_v43 }
 0x77a   :  { %v817_v47 = vpop.xlane.xlu0 %816 }
 0x77b   :  { %4897 = vpow2.f32 %v808_v44 }
 0x77c   :  { %4899 = vrcp.f32 %v817_v47 }
 0x788   :  { %v4898_v45 = vpop.eup %4897 }
 0x789   :  { %v812_v46 = vsel %vm143_vm2, %v4898_v45, 0.0  ;;  %v4900_v48 = vpop.eup %4899 }
 0x78a   :  { %813 = vadd.xlane.f32.xlu0 %v812_v46  ;;  %v821_v50 = vmul.f32 %v4900_v48, %v4896_v39 }
 0x78c   :  { %v823_v54 = vpack.c.bf16 %v821_v50, %v821_v50 }
 0x7a0   :  { %872 = vrot.lane.b32.xlu0 %v5151_v14, %s6109_s28 }
 0x7a4   :  { %970 = vrot.lane.b32.xlu0 %v5147_v10, %s6105_s2 }
 0x813   :  { %v814_v49 = vpop.xlane.xlu0 %813 }
 0x814   :  { %4901 = vrcp.f32 %v814_v49 }
 0x817   :  { %v873_v51 = vpop.permute.xlu0 %872 }
 0x818   :  { %v878_v52 = vsel %vm284_vm3, %v873_v51, 0 }
 0x819   :  { %4512 = vmatpush3.bf16.msra.mxu0 %v878_v52  ;;  %v137_v52 = vld [vmem:[%s6085_s4 + $0xc] sm:$0xf] }
 0x81a   :  { %4523 = vmatprep.subr.bf16.mxu0 %v5005_v1  ;;  %v1199_v53 = vsel %vm284_vm3, %v137_v52, 0  ;;  %v4145_v52 = vld [vmem:[%s6090_s9] ss:$0 sm:$0xff] }
 0x81b   :  { %v971_v58 = vpop.permute.xlu0 %970 }
 0x81c   :  { %4514 = vmatmul.mubr.msk.bf16.vlgmr.msra.gmra.mxu0 %vm143_vm2, %v823_v54 }
 0x81d   :  { %4524 = vmatpush3.bf16.xpose.msra.mxu0 %v978_v55  ;;  %4525 = vmatprep.mubr.msk.bf16.mxu0 %vm5006_vm0, %v5005_v1 }
 0x81e   :  { %4535 = vmatprep.subr.bf16.mxu0 %v5005_v1 }
 0x821   :  { %v4902_v56 = vpop.eup %4901 }
 0x822   :  { %v819_v57 = vmul.f32 %v4902_v56, %v4898_v45 }
 0x824   :  { %4526 = vmatmul.mubr.msk.bf16.vlgmr.msra.gmra.mxu0 %vm143_vm2, %v971_v58  ;;  %v822_v59 = vpack.c.bf16 %v819_v57, %v819_v57 }
 0x825   :  { %4537 = vmatprep.mubr.msk.bf16.mxu0 %vm5006_vm0, %v5005_v1 }
 0x826   :  { %4508 = vmatmul.mubr.msk.bf16.vlgmr.msra.gmra.mxu1 %vm143_vm2, %v822_v59 }
 0x827   :  { %4519 = vmatprep.mubr.msk.bf16.mxu1 %vm5006_vm0, %v5005_v1  ;;  %4518 = vmatpush3.bf16.msra.mxu1 %v925_v61 }
 0x828   :  { %4529 = vmatprep.subr.bf16.mxu1 %v5005_v1 }
 0x8dc   :  { %v914_v62 = vpop.f32.mrf.mxu0 }
 0x8de   :  { %v4515_v63 = vpop.f32.mrf.mxu0 }
 0x8e0   :  { %v917_v0 = vpop.f32.mrf.mxu0 }
 0x8e2   :  { %v4516_v2 = vpop.f32.mrf.mxu0 }
 0x8e4   :  { %v1014_v5 = vpop.f32.mrf.mxu0 }
 0x8e5   :  { %v1070_v7 = vmul.f32 0.35355338, %v1014_v5 }
 0x8e6   :  { %v866_v9 = vpop.f32.mrf.mxu1  ;;  %v4527_v11 = vpop.f32.mrf.mxu0 }
 0x8e7   :  { %v920_v13 = vpack.c.bf16 %v914_v62, %v866_v9  ;;  %v1072_v15 = vadd.f32 %v5170_v20, %v1070_v7  ;;  %v4142_v9 = vld [vmem:[%s6086_s5] ss:$0 sm:$0xff] }
 0x8e8   :  { %v4509_v16 = vpop.f32.mrf.mxu1  ;;  %v1017_v17 = vpop.f32.mrf.mxu0 }
 0x8e9   :  { %4520 = vmatmul.mubr.msk.bf16.vlgmr.msra.gmra.mxu1 %vm143_vm2, %v920_v13  ;;  %v1074_v19 = vsel %vm143_vm2, %v1072_v15, -inf }
 0x8ea   :  { %4530 = vmatpush3.bf16.xpose.msra.mxu1 %v1028_v18  ;;  %v869_v21 = vpop.f32.mrf.mxu1  ;;  %1075 = vmax.xlane.f32.xlu0 %v1074_v19  ;;  %v4528_v22 = vpop.f32.mrf.mxu0 }
 0x8eb   :  { %4531 = vmatprep.mubr.msk.bf16.mxu1 %vm5006_vm0, %v5005_v1  ;;  %4541 = vmatprep.subr.bf16.mxu1 %v5005_v1 }
 0x8ec   :  { %v4510_v23 = vpop.f32.mrf.mxu1 }
 0x8f1   :  { %4532 = vmatmul.mubr.msk.bf16.vlgmr.msra.gmra.mxu1 %vm143_vm2, %v1021_v24 }
 0x8f2   :  { %4543 = vmatprep.mubr.msk.bf16.mxu1 %vm5006_vm0, %v5005_v1 }
 0x973   :  { %v1076_v20 = vpop.xlane.xlu0 %1075 }
 0x974   :  { %v1080_v25 = vsub.f32 %v1072_v15, %v1076_v20 }
 0x976   :  { %v1082_v27 = vmul.f32 1.442695, %v1080_v25 }
 0x978   :  { %4903 = vpow2.f32 %v1082_v27 }
 0x985   :  { %v4904_v28 = vpop.eup %4903 }
 0x986   :  { %v1086_v30 = vsel %vm143_vm2, %v4904_v28, 0.0 }
 0x987   :  { %1087 = vadd.xlane.f32.xlu0 %v1086_v30 }
 0x9a9   :  { %v961_v33 = vpop.f32.mrf.mxu1 }
 0x9aa   :  { %v5337_v34 = vadd.f32 %v961_v33, %v690_v32 }
 0x9ab   :  { %v4521_v35 = vpop.f32.mrf.mxu1 }
 0x9ad   :  { %v964_v37 = vpop.f32.mrf.mxu1 }
 0x9ae   :  { %v5341_v38 = vadd.f32 %v964_v37, %v693_v36  ;;  %v4866_v36 = vld [vmem:[%s6089_s8] sm:$0xff]   ;;  %v4867_v37 = vld [vmem:[%s6091_s10 + $0x18] sm:$0xff]  }
 0x9af   :  { %v4522_v39 = vpop.f32.mrf.mxu1 }
 0x9b1   :  { %v1064_v40 = vpop.f32.mrf.mxu1 }
 0x9b2   :  { %v1071_v41 = vmul.f32 0.35355338, %v1064_v40 }
 0x9b3   :  { %v4533_v42 = vpop.f32.mrf.mxu1 }
 0x9b4   :  { %v1073_v43 = vadd.f32 %v5176_v26, %v1071_v41 }
 0x9b5   :  { %v1067_v44 = vpop.f32.mrf.mxu1 }
 0x9b6   :  { %v1077_v45 = vsel %vm143_vm2, %v1073_v43, -inf }
 0x9b7   :  { %1078 = vmax.xlane.f32.xlu1 %v1077_v45  ;;  %v4534_v8 = vpop.f32.mrf.mxu1 }
 0x9b8   :  { %v4143_v8 = vld [vmem:[%s6087_s6] ss:$0 sm:$0xff] }
 0x9c8   :  { %1098 = vrot.lane.b32.xlu1 %v5147_v10, %s6103_s26 }
 0xa10   :  { %v1088_v29 = vpop.xlane.xlu0 %1087 }
 0xa11   :  { %4905 = vrcp.f32 %v1088_v29 }
 0xa1e   :  { %v4906_v12 = vpop.eup %4905 }
 0xa1f   :  { %v1093_v48 = vmul.f32 %v4906_v12, %v4904_v28 }
 0xa21   :  { %v1096_v50 = vpack.c.bf16 %v1093_v48, %v1093_v48 }
 0xa40   :  { %v1079_v31 = vpop.xlane.xlu1 %1078 }
 0xa41   :  { %v1081_v46 = vsub.f32 %v1073_v43, %v1079_v31 }
 0xa43   :  { %v1084_v47 = vmul.f32 1.442695, %v1081_v46  ;;  %v4144_v46 = vld [vmem:[%s6088_s7] ss:$0 sm:$0xff] }
 0xa44   :  { %v1099_v49 = vpop.permute.xlu1 %1098 }
 0xa45   :  { %4907 = vpow2.f32 %v1084_v47  ;;  %v1104_v26 = vsel %vm284_vm3, %v1099_v49, 0 }
 0xa46   :  { %4536 = vmatpush3.bf16.msra.mxu0 %v1104_v26 }
 0xa47   :  { %4547 = vmatprep.subr.bf16.mxu0 %v5005_v1 }
 0xa49   :  { %4538 = vmatmul.mubr.msk.bf16.vlgmr.msra.gmra.mxu0 %vm143_vm2, %v1096_v50  ;;  %v4868_v50 = vld [vmem:[%s6091_s10 + $0x10] sm:$0xff]  }
 0xa4a   :  { %4549 = vmatprep.mubr.msk.bf16.mxu0 %vm5006_vm0, %v5005_v1  ;;  %4548 = vmatpush3.bf16.msra.mxu0 %v1199_v53 }
 0xa4b   :  { %4561 = vmatprep.subr.bf16.mxu0 %v5005_v1 }
 0xa52   :  { %v4908_v10 = vpop.eup %4907 }
 0xa53   :  { %v1089_v51 = vsel %vm143_vm2, %v4908_v10, 0.0 }
 0xa54   :  { %1090 = vadd.xlane.f32.xlu0 %v1089_v51  ;;  %v4870_v51 = vld [vmem:[%s6091_s10] sm:$0xff]  }
 0xa6a   :  { %1146 = vrot.lane.b32.xlu0 %v5151_v14, %s6103_s26 }
 0xadd   :  { %v1091_v54 = vpop.xlane.xlu0 %1090 }
 0xade   :  { %4909 = vrcp.f32 %v1091_v54 }
 0xae1   :  { %v1147_v55 = vpop.permute.xlu0 %1146 }
 0xae2   :  { %v1152_v56 = vsel %vm284_vm3, %v1147_v55, 0 }
 0xae3   :  { %4542 = vmatpush3.bf16.msra.mxu1 %v1152_v56 }
 0xae4   :  { %4553 = vmatprep.subr.bf16.mxu1 %v5005_v1 }
 0xaeb   :  { %v4910_v57 = vpop.eup %4909 }
 0xaec   :  { %v1095_v58 = vmul.f32 %v4910_v57, %v4908_v10  ;;  %v4869_v10 = vld [vmem:[%s6091_s10 + $0x8] sm:$0xff]  }
 0xaee   :  { %v1097_v14 = vpack.c.bf16 %v1095_v58, %v1095_v58 }
 0xaf0   :  { %4544 = vmatmul.mubr.msk.bf16.vlgmr.msra.gmra.mxu1 %vm143_vm2, %v1097_v14 }
 0xaf1   :  { %4557 = vmatprep.mubr.msk.bf16.mxu1 %vm5006_vm0, %v5005_v1 }
 0xb09   :  { %v1140_v59 = vpop.f32.mrf.mxu0 }
 0xb0b   :  { %v4539_v60 = vpop.f32.mrf.mxu0 }
 0xb0d   :  { %v1143_v61 = vpop.f32.mrf.mxu0 }
 0xb0e   :  { %v4149_v61 = vld [vmem:[%s6092_s11] ss:$0 sm:$0xff] }
 0xb0f   :  { %v4540_v62 = vpop.f32.mrf.mxu0 }
 0xbb0   :  { %v1188_v63 = vpop.f32.mrf.mxu1 }
 0xbb1   :  { %v1194_v0 = vpack.c.bf16 %v1188_v63, %v1140_v59 }
 0xbb2   :  { %v4545_v2 = vpop.f32.mrf.mxu1 }
 0xbb3   :  { %4550 = vmatmul.mubr.msk.bf16.vlgmr.msra.gmra.mxu0 %vm143_vm2, %v1194_v0 }
 0xbb4   :  { %v1191_v5 = vpop.f32.mrf.mxu1  ;;  %4569 = vmatprep.mubr.msk.bf16.mxu0 %vm5006_vm0, %v5005_v1  ;;  %4562 = vmatpush3.bf16.msra.mxu0 %v4867_v37 }
 0xbb5   :  { %4563 = vmatprep.subr.bf16.mxu0 %v5005_v1 }
 0xbb6   :  { %v4546_v6 = vpop.f32.mrf.mxu1 }
 0xbb8   :  { %4564 = vmatpush3.bf16.msra.mxu0 %v4868_v50 }
 0xbb9   :  { %4565 = vmatprep.subr.bf16.mxu0 %v5005_v1 }
 0xbbc   :  { %4566 = vmatpush3.bf16.msra.mxu0 %v4869_v10 }
 0xbbd   :  { %4567 = vmatprep.subr.bf16.mxu0 %v5005_v1 }
 0xbc0   :  { %4568 = vmatpush3.bf16.msra.mxu0 %v4870_v51 }
 0xbc1   :  { %4587 = vmatprep.subr.bf16.mxu0 %v5005_v1 }
 0xc73   :  { %v1235_v7 = vpop.f32.mrf.mxu0 }
 0xc74   :  { %v1242_v11 = vadd.f32 %v1235_v7, %v5337_v34 }
 0xc75   :  { %v4551_v13 = vpop.f32.mrf.mxu0 }
 0xc76   :  { %v1251_v15 = vadd.f32 %v4142_v9, %v1242_v11 }
 0xc77   :  { %v1238_v16 = vpop.f32.mrf.mxu0 }
 0xc78   :  { %v1243_v17 = vadd.f32 %v1238_v16, %v5341_v38  ;;  %v1253_v18 = vadd.f32 %v1251_v15, %v5128_v3 }
 0xc79   :  { %v4552_v19 = vpop.f32.mrf.mxu0 }
 0xc7a   :  { %v1252_v21 = vadd.f32 %v4142_v9, %v1243_v17  ;;  %v1255_v22 = vsel %vm89_vm1, %v1253_v18, 0.0 }
 0xc7b   :  { %1256 = vadd.xlane.f32.xlu1 %v1255_v22 }
 0xc7c   :  { %v1254_v23 = vadd.f32 %v1252_v21, %v5133_v4  ;;  %v4865_v4 = vld [vmem:[%s6089_s8 + $0x8] sm:$0xff]  }
 0xc7d   :  { %4554 = vmatpush3.bf16.msra.mxu1 %v4865_v4 }
 0xc7e   :  { %v1258_v24 = vsel %vm89_vm1, %v1254_v23, 0.0  ;;  %4555 = vmatprep.subr.bf16.mxu1 %v5005_v1 }
 0xc7f   :  { %1259 = vadd.xlane.f32.xlu0 %v1258_v24 }
 0xc81   :  { %4556 = vmatpush3.bf16.msra.mxu1 %v4866_v36  ;;  %v4155_v36 = vld [vmem:[%s6093_s12] ss:$0 sm:$0xff] }
 0xc82   :  { %4573 = vmatprep.subr.bf16.mxu1 %v5005_v1 }
 0xd04   :  { %v1257_v20 = vpop.xlane.xlu1 %1256 }
 0xd05   :  { %v1262_v25 = vmul.f32 0.03125, %v1257_v20 }
 0xd07   :  { %v1264_v27 = vsub.f32 %v1253_v18, %v1262_v25  ;;  %v4871_v25 = vld [vmem:[%s6116_s29 + $0x18] sm:$0xff]  }
 0xd08   :  { %v1260_v28 = vpop.xlane.xlu0 %1259 }
 0xd09   :  { %v1263_v30 = vmul.f32 0.03125, %v1260_v28  ;;  %v1266_v32 = vmul.f32 %v1264_v27, %v1264_v27 }
 0xd0b   :  { %v1265_v33 = vsub.f32 %v1254_v23, %v1263_v30  ;;  %v1268_v34 = vsel %vm89_vm1, %v1266_v32, 0.0 }
 0xd0c   :  { %1269 = vadd.xlane.f32.xlu1 %v1268_v34 }
 0xd0d   :  { %v1267_v3 = vmul.f32 %v1265_v33, %v1265_v33 }
 0xd0f   :  { %v1271_v35 = vsel %vm89_vm1, %v1267_v3, 0.0 }
 0xd10   :  { %1272 = vadd.xlane.f32.xlu0 %v1271_v35 }
 0xd95   :  { %v1270_v38 = vpop.xlane.xlu1 %1269 }
 0xd96   :  { %v1274_v39 = vmul.f32 0.03125, %v1270_v38 }
 0xd98   :  { %v1276_v40 = vadd.f32 1e-05, %v1274_v39 }
 0xd99   :  { %v1273_v41 = vpop.xlane.xlu0 %1272 }
 0xd9a   :  { %4911 = vrsqrt.f32 %v1276_v40  ;;  %v1275_v42 = vmul.f32 0.03125, %v1273_v41  ;;  %v4156_v40 = vld [vmem:[%s6094_s13] ss:$0 sm:$0xff] }
 0xd9c   :  { %v1277_v43 = vadd.f32 1e-05, %v1275_v42 }
 0xd9e   :  { %4913 = vrsqrt.f32 %v1277_v43 }
 0xda7   :  { %v4912_v44 = vpop.eup %4911 }
 0xda8   :  { %v1280_v45 = vmul.f32 %v4912_v44, %v1264_v27  ;;  %v4872_v27 = vld [vmem:[%s6116_s29 + $0x10] sm:$0xff]  }
 0xdaa   :  { %v1289_v31 = vmul.f32 %v4143_v8, %v1280_v45  ;;  %v4162_v45 = vld [vmem:[%s6084_s3 + $0x1] ss:$0 sm:$0xff] }
 0xdab   :  { %v4914_v29 = vpop.eup %4913 }
 0xdac   :  { %v1281_v12 = vmul.f32 %v4914_v29, %v1265_v33  ;;  %v1298_v48 = vadd.f32 %v4144_v46, %v1289_v31 }
 0xdae   :  { %v1290_v47 = vmul.f32 %v4143_v8, %v1281_v12 }
 0xdb0   :  { %v1299_v49 = vadd.f32 %v4144_v46, %v1290_v47 }
 0xdb2   :  { %v1300_v26 = vpack.c.bf16 %v1299_v49, %v1298_v48 }
 0xdb4   :  { %4558 = vmatmul.mubr.msk.bf16.vlgmr.msra.gmra.mxu1 %vm89_vm1, %v1300_v26 }
 0xdb5   :  { %4577 = vmatprep.mubr.msk.bf16.mxu1 %vm5006_vm0, %v5005_v1  ;;  %4574 = vmatpush3.bf16.msra.mxu1 %v4871_v25 }
 0xdb6   :  { %4575 = vmatprep.subr.bf16.mxu1 %v5005_v1 }
 0xdb9   :  { %4576 = vmatpush3.bf16.msra.mxu1 %v4872_v27 }
 0xdba   :  { %4581 = vmatprep.subr.bf16.mxu1 %v5005_v1 }
 0xe74   :  { %v1361_v53 = vpop.f32.mrf.mxu1 }
 0xe75   :  { %v1362_v55 = vadd.f32 %v4145_v52, %v1361_v53 }
 0xe76   :  { %v4559_v54 = vpop.f32.mrf.mxu1 }
 0xe77   :  { %v1368_v14 = vmax.f32 %v1362_v55, 0.0  ;;  %v5474_v55 = vld [vmem:[%s6118_s27] ss:$0 sm:$0xff] }
 0xe78   :  { %v1364_v56 = vpop.f32.mrf.mxu1 }
 0xe79   :  { %v1365_v57 = vadd.f32 %v4145_v52, %v1364_v56 }
 0xe7a   :  { %v4560_v58 = vpop.f32.mrf.mxu1 }
 0xe7b   :  { %v1369_v59 = vmax.f32 %v1365_v57, 0.0 }
 0xe7d   :  { %v1370_v60 = vpack.c.bf16 %v1369_v59, %v1368_v14 }
 0xe7f   :  { %4570 = vmatmul.mubr.msk.bf16.vlgmr.msra.gmra.mxu0 %vm1410_vm4, %v1370_v60 }
 0xe80   :  { %4589 = vmatprep.mubr.msk.bf16.mxu0 %vm5006_vm0, %v5005_v1 }
 0xf3f   :  { %v1448_v62 = vpop.f32.mrf.mxu0 }
 0xf40   :  { %v1449_v63 = vadd.f32 %v4149_v61, %v1448_v62  ;;  %v5481_v62 = vld [vmem:[%s6118_s27 + $0x1] ss:$0 sm:$0xff]  ;;  %s6119_s27 = smov 112  }
 0xf41   :  { %v4571_v0 = vpop.f32.mrf.mxu0 }
 0xf42   :  { %v1455_v2 = vadd.f32 %v1449_v63, %v1298_v48 }
 0xf43   :  { %v1451_v5 = vpop.f32.mrf.mxu0 }
 0xf44   :  { %v1452_v6 = vadd.f32 %v4149_v61, %v1451_v5  ;;  %v1457_v7 = vsel %vm89_vm1, %v1455_v2, 0.0 }
 0xf45   :  { %1458 = vadd.xlane.f32.xlu1 %v1457_v7  ;;  %v4572_v9 = vpop.f32.mrf.mxu0 }
 0xf46   :  { %v1456_v11 = vadd.f32 %v1452_v6, %v1299_v49 }
 0xf48   :  { %v1460_v13 = vsel %vm89_vm1, %v1456_v11, 0.0 }
 0xf49   :  { %1461 = vadd.xlane.f32.xlu0 %v1460_v13 }
 0xfce   :  { %v1459_v15 = vpop.xlane.xlu1 %1458 }
 0xfcf   :  { %v1463_v16 = vmul.f32 0.03125, %v1459_v15 }
 0xfd1   :  { %v1465_v17 = vsub.f32 %v1455_v2, %v1463_v16 }
 0xfd2   :  { %v1462_v18 = vpop.xlane.xlu0 %1461 }
 0xfd3   :  { %v1464_v19 = vmul.f32 0.03125, %v1462_v18  ;;  %v1467_v21 = vmul.f32 %v1465_v17, %v1465_v17 }
 0xfd5   :  { %v1466_v22 = vsub.f32 %v1456_v11, %v1464_v19  ;;  %v1469_v23 = vsel %vm89_vm1, %v1467_v21, 0.0 }
 0xfd6   :  { %1470 = vadd.xlane.f32.xlu1 %v1469_v23 }
 0xfd7   :  { %v1468_v24 = vmul.f32 %v1466_v22, %v1466_v22 }
 0xfd9   :  { %v1472_v20 = vsel %vm89_vm1, %v1468_v24, 0.0 }
 0xfda   :  { %1473 = vadd.xlane.f32.xlu0 %v1472_v20 }
0x105f   :  { %v1471_v28 = vpop.xlane.xlu1 %1470 }
0x1060   :  { %v1475_v30 = vmul.f32 0.03125, %v1471_v28 }
0x1062   :  { %v1477_v32 = vadd.f32 1e-05, %v1475_v30 }
0x1063   :  { %v1474_v33 = vpop.xlane.xlu0 %1473 }
0x1064   :  { %4915 = vrsqrt.f32 %v1477_v32  ;;  %v1476_v34 = vmul.f32 0.03125, %v1474_v33 }
0x1066   :  { %v1478_v3 = vadd.f32 1e-05, %v1476_v34 }
0x1068   :  { %4917 = vrsqrt.f32 %v1478_v3 }
0x1071   :  { %v4916_v35 = vpop.eup %4915 }
0x1072   :  { %v1481_v4 = vmul.f32 %v4916_v35, %v1465_v17 }
0x1074   :  { %v1490_v39 = vmul.f32 %v4155_v36, %v1481_v4 }
0x1075   :  { %v4918_v37 = vpop.eup %4917 }
0x1076   :  { %v1482_v38 = vmul.f32 %v4918_v37, %v1466_v22  ;;  %v5439_v42 = vadd.f32 %v4156_v40, %v1490_v39 }
0x1078   :  { %v1491_v41 = vmul.f32 %v4155_v36, %v1482_v38 }
0x107a   :  { %v5441_v43 = vadd.f32 %v4156_v40, %v1491_v41 }
0x107c   :  { %v1501_v44 = vpack.c.bf16 %v5441_v43, %v5439_v42 }
0x107e   :  { %4578 = vmatmul.mubr.msk.bf16.vlgmr.msra.gmra.mxu1 %vm89_vm1, %v1501_v44 }
0x107f   :  { %4583 = vmatprep.mubr.msk.bf16.mxu1 %vm5006_vm0, %v5005_v1 }
0x113e   :  { %v1564_v8 = vpop.f32.mrf.mxu1 }
0x113f   :  { %v1565_v29 = vadd.f32 %v4162_v45, %v1564_v8 }
0x1140   :  { %v4579_v12 = vpop.f32.mrf.mxu1 }
0x1141   :  { %v5451_v31 = vpack.c.bf16 %v1565_v29, %v1565_v29 }
0x1142   :  { %v1567_v46 = vpop.f32.mrf.mxu1 }
0x1143   :  { %v1568_v47 = vadd.f32 %v4162_v45, %v1567_v46  ;;  %1579 = vrot.lane.b32.xlu1 %v5451_v31, %s5007_s24 }
0x1144   :  { %v4580_v48 = vpop.f32.mrf.mxu1 }
0x1145   :  { %v5455_v49 = vpack.c.bf16 %v1568_v47, %v1568_v47 }
0x1147   :  { %1628 = vrot.lane.b32.xlu0 %v5455_v49, %s5007_s24 }
0x11b5   :  { %v1580_v26 = vpop.permute.xlu1 %1579 }
0x11b6   :  { %v1585_v50 = vsel %vm143_vm2, %v1580_v26, 0 }
0x11b7   :  { %4582 = vmatpush3.bf16.xpose.msra.mxu1 %v1585_v50 }
0x11b8   :  { %4593 = vmatprep.subr.bf16.mxu1 %v5005_v1 }
0x11b9   :  { %v1629_v10 = vpop.permute.xlu0 %1628 }
0x11ba   :  { %v1634_v51 = vsel %vm143_vm2, %v1629_v10, 0 }
0x11bb   :  { %4588 = vmatpush3.bf16.xpose.msra.mxu0 %v1634_v51 }
0x11bc   :  { %4599 = vmatprep.subr.bf16.mxu0 %v5005_v1 }
0x11be   :  { %4584 = vmatmul.mubr.msk.bf16.vlgmr.msra.gmra.mxu1 %vm143_vm2, %v5451_v31 }
0x11bf   :  { %4595 = vmatprep.mubr.msk.bf16.mxu1 %vm5006_vm0, %v5005_v1 }
0x11c2   :  { %4590 = vmatmul.mubr.msk.bf16.vlgmr.msra.gmra.mxu0 %vm143_vm2, %v5455_v49 }
0x11c3   :  { %4601 = vmatprep.mubr.msk.bf16.mxu0 %vm5006_vm0, %v5005_v1 }
0x127e   :  { %v1621_v52 = vpop.f32.mrf.mxu1 }
0x127f   :  { %v1676_v53 = vmul.f32 0.35355338, %v1621_v52 }
0x1280   :  { %v4585_v54 = vpop.f32.mrf.mxu1 }
0x1281   :  { %v1678_v56 = vadd.f32 %v5474_v55, %v1676_v53 }
0x1282   :  { %v1624_v57 = vpop.f32.mrf.mxu1  ;;  %v1670_v58 = vpop.f32.mrf.mxu0 }
0x1283   :  { %v1677_v14 = vmul.f32 0.35355338, %v1670_v58  ;;  %v1680_v59 = vsel %vm143_vm2, %v1678_v56, -inf }
0x1284   :  { %1681 = vmax.xlane.f32.xlu1 %v1680_v59  ;;  %v4586_v60 = vpop.f32.mrf.mxu1  ;;  %v4591_v61 = vpop.f32.mrf.mxu0 }
0x1285   :  { %v1679_v63 = vadd.f32 %v5481_v62, %v1677_v14 }
0x1286   :  { %v1673_v0 = vpop.f32.mrf.mxu0 }
0x1287   :  { %v1683_v2 = vsel %vm143_vm2, %v1679_v63, -inf }
0x1288   :  { %1684 = vmax.xlane.f32.xlu0 %v1683_v2  ;;  %v4592_v5 = vpop.f32.mrf.mxu0 }
0x1295   :  { %1704 = vrot.lane.b32.xlu1 %v5451_v31, %s5008_s0 }
0x130d   :  { %v1682_v6 = vpop.xlane.xlu1 %1681 }
0x130e   :  { %v1686_v7 = vsub.f32 %v1678_v56, %v1682_v6 }
0x1310   :  { %v1688_v9 = vmul.f32 1.442695, %v1686_v7 }
0x1311   :  { %v1705_v11 = vpop.permute.xlu1 %1704  ;;  %v1685_v13 = vpop.xlane.xlu0 %1684 }
0x1312   :  { %4919 = vpow2.f32 %v1688_v9  ;;  %v1710_v15 = vsel %vm284_vm3, %v1705_v11, 0  ;;  %v1687_v16 = vsub.f32 %v1679_v63, %v1685_v13 }
0x1313   :  { %4594 = vmatpush3.bf16.msra.mxu1 %v1710_v15 }
0x1314   :  { %v1690_v17 = vmul.f32 1.442695, %v1687_v16  ;;  %4605 = vmatprep.subr.bf16.mxu1 %v5005_v1 }
0x1316   :  { %4921 = vpow2.f32 %v1690_v17 }
0x131f   :  { %v4920_v18 = vpop.eup %4919 }
0x1320   :  { %v1692_v19 = vsel %vm143_vm2, %v4920_v18, 0.0 }
0x1321   :  { %1693 = vadd.xlane.f32.xlu1 %v1692_v19 }
0x1323   :  { %v4922_v21 = vpop.eup %4921 }
0x1324   :  { %v1695_v22 = vsel %vm143_vm2, %v4922_v21, 0.0 }
0x1325   :  { %1696 = vadd.xlane.f32.xlu0 %v1695_v22 }
0x1332   :  { %1803 = vrot.lane.b32.xlu1 %v5451_v31, %s5009_s19 }
0x1336   :  { %1853 = vrot.lane.b32.xlu1 %v5455_v49, %s5009_s19 }
0x133a   :  { %1851 = vrot.lane.b32.xlu1 %v5455_v49, %s5010_s1 }
0x133b   :  { %1752 = vrot.lane.b32.xlu0 %v5455_v49, %s5008_s0 }
0x133f   :  { %1801 = vrot.lane.b32.xlu0 %v5451_v31, %s5010_s1 }
0x13aa   :  { %v1694_v23 = vpop.xlane.xlu1 %1693 }
0x13ab   :  { %4923 = vrcp.f32 %v1694_v23 }
0x13ae   :  { %v1697_v24 = vpop.xlane.xlu0 %1696  ;;  %v1804_v28 = vpop.permute.xlu1 %1803 }
0x13af   :  { %4925 = vrcp.f32 %v1697_v24  ;;  %v1809_v34 = vsel %vm143_vm2, %v1804_v28, 0 }
0x13b2   :  { %v1753_v20 = vpop.permute.xlu0 %1752  ;;  %v1854_v35 = vpop.permute.xlu1 %1853 }
0x13b3   :  { %v1758_v25 = vsel %vm284_vm3, %v1753_v20, 0  ;;  %v1859_v36 = vsel %vm143_vm2, %v1854_v35, 0  ;;  %v4166_v20 = vld [vmem:[%s6085_s4 + $0x10] sm:$0xf] }
0x13b4   :  { %4600 = vmatpush3.bf16.msra.mxu0 %v1758_v25  ;;  %v2077_v28 = vsel %vm284_vm3, %v4166_v20, 0 }
0x13b5   :  { %4611 = vmatprep.subr.bf16.mxu0 %v5005_v1 }
0x13b6   :  { %v1802_v37 = vpop.permute.xlu0 %1801  ;;  %v1852_v38 = vpop.permute.xlu1 %1851 }
0x13b8   :  { %v4924_v27 = vpop.eup %4923 }
0x13b9   :  { %v1699_v30 = vmul.f32 %v4924_v27, %v4920_v18 }
0x13bb   :  { %v1702_v32 = vpack.c.bf16 %v1699_v30, %v1699_v30 }
0x13bc   :  { %v4926_v33 = vpop.eup %4925 }
0x13bd   :  { %4596 = vmatmul.mubr.msk.bf16.vlgmr.msra.gmra.mxu1 %vm143_vm2, %v1702_v32  ;;  %v1701_v3 = vmul.f32 %v4926_v33, %v4922_v21 }
0x13be   :  { %4606 = vmatpush3.bf16.xpose.msra.mxu1 %v1809_v34  ;;  %4607 = vmatprep.mubr.msk.bf16.mxu1 %vm5006_vm0, %v5005_v1 }
0x13bf   :  { %v1703_v4 = vpack.c.bf16 %v1701_v3, %v1701_v3  ;;  %4617 = vmatprep.subr.bf16.mxu1 %v5005_v1  ;;  %v4167_v3 = vld [vmem:[%s6085_s4 + $0x14] sm:$0xf] }
0x13c0   :  { %v2030_v35 = vsel %vm284_vm3, %v4167_v3, 0 }
0x13c1   :  { %4602 = vmatmul.mubr.msk.bf16.vlgmr.msra.gmra.mxu0 %vm143_vm2, %v1703_v4 }
0x13c2   :  { %4612 = vmatpush3.bf16.xpose.msra.mxu0 %v1859_v36  ;;  %4613 = vmatprep.mubr.msk.bf16.mxu0 %vm5006_vm0, %v5005_v1 }
0x13c3   :  { %4623 = vmatprep.subr.bf16.mxu0 %v5005_v1 }
0x13c5   :  { %4608 = vmatmul.mubr.msk.bf16.vlgmr.msra.gmra.mxu1 %vm143_vm2, %v1802_v37 }
0x13c6   :  { %4619 = vmatprep.mubr.msk.bf16.mxu1 %vm5006_vm0, %v5005_v1 }
0x13c9   :  { %4614 = vmatmul.mubr.msk.bf16.vlgmr.msra.gmra.mxu0 %vm143_vm2, %v1852_v38 }
0x13ca   :  { %4625 = vmatprep.mubr.msk.bf16.mxu0 %vm5006_vm0, %v5005_v1 }
0x147d   :  { %v5519_v39 = vpop.f32.mrf.mxu1 }
0x147f   :  { %v4597_v40 = vpop.f32.mrf.mxu1 }
0x1481   :  { %v1749_v41 = vpop.f32.mrf.mxu1  ;;  %v5521_v44 = vpop.f32.mrf.mxu0 }
0x1482   :  { %v1800_v45 = vpack.c.bf16 %v5521_v44, %v5519_v39 }
0x1483   :  { %v4598_v8 = vpop.f32.mrf.mxu1  ;;  %v4603_v29 = vpop.f32.mrf.mxu0 }
0x1485   :  { %v1797_v12 = vpop.f32.mrf.mxu0  ;;  %v1845_v46 = vpop.f32.mrf.mxu1 }
0x1486   :  { %v1901_v47 = vmul.f32 0.35355338, %v1845_v46 }
0x1487   :  { %v4604_v48 = vpop.f32.mrf.mxu0  ;;  %v4609_v26 = vpop.f32.mrf.mxu1 }
0x1488   :  { %v1903_v50 = vadd.f32 %v5474_v55, %v1901_v47 }
0x1489   :  { %v1848_v10 = vpop.f32.mrf.mxu1  ;;  %v1895_v51 = vpop.f32.mrf.mxu0 }
0x148a   :  { %v1902_v52 = vmul.f32 0.35355338, %v1895_v51  ;;  %v1905_v53 = vsel %vm143_vm2, %v1903_v50, -inf }
0x148b   :  { %1906 = vmax.xlane.f32.xlu0 %v1905_v53  ;;  %v4610_v54 = vpop.f32.mrf.mxu1  ;;  %v4615_v56 = vpop.f32.mrf.mxu0 }
0x148c   :  { %v1904_v57 = vadd.f32 %v5481_v62, %v1902_v52 }
0x148d   :  { %v1898_v58 = vpop.f32.mrf.mxu0 }
0x148e   :  { %v1908_v14 = vsel %vm143_vm2, %v1904_v57, -inf }
0x148f   :  { %1909 = vmax.xlane.f32.xlu1 %v1908_v14  ;;  %v4616_v59 = vpop.f32.mrf.mxu0 }
0x14a0   :  { %1929 = vrot.lane.b32.xlu1 %v5451_v31, %s5011_s20 }
0x14a4   :  { %2122 = vrot.lane.b32.xlu1 %v5451_v31, %s5013_s22 }
0x14a8   :  { %2172 = vrot.lane.b32.xlu1 %v5455_v49, %s5013_s22  ;;  %s6120_s22 = smov 48  }
0x14ac   :  { %2170 = vrot.lane.b32.xlu1 %v5455_v49, %s6119_s27 }
0x1514   :  { %v1907_v60 = vpop.xlane.xlu0 %1906 }
0x1515   :  { %v1911_v61 = vsub.f32 %v1903_v50, %v1907_v60 }
0x1517   :  { %v1913_v63 = vmul.f32 1.442695, %v1911_v61 }
0x1518   :  { %v1910_v0 = vpop.xlane.xlu1 %1909 }
0x1519   :  { %4927 = vpow2.f32 %v1913_v63  ;;  %v1912_v2 = vsub.f32 %v1904_v57, %v1910_v0 }
0x151b   :  { %v1915_v5 = vmul.f32 1.442695, %v1912_v2 }
0x151c   :  { %v1930_v6 = vpop.permute.xlu1 %1929 }
0x151d   :  { %4929 = vpow2.f32 %v1915_v5  ;;  %v1935_v7 = vsel %vm284_vm3, %v1930_v6, 0 }
0x151e   :  { %4618 = vmatpush3.bf16.msra.mxu1 %v1935_v7 }
0x151f   :  { %4629 = vmatprep.subr.bf16.mxu1 %v5005_v1 }
0x1520   :  { %v2123_v30 = vpop.permute.xlu1 %2122 }
0x1521   :  { %v2128_v44 = vsel %vm143_vm2, %v2123_v30, 0 }
0x1524   :  { %v2173_v32 = vpop.permute.xlu1 %2172 }
0x1525   :  { %v2178_v33 = vsel %vm143_vm2, %v2173_v32, 0 }
0x1526   :  { %v4928_v9 = vpop.eup %4927 }
0x1527   :  { %v1917_v11 = vsel %vm143_vm2, %v4928_v9, 0.0 }
0x1528   :  { %1918 = vadd.xlane.f32.xlu0 %v1917_v11  ;;  %v2171_v34 = vpop.permute.xlu1 %2170 }
0x152a   :  { %v4930_v13 = vpop.eup %4929 }
0x152b   :  { %v1920_v15 = vsel %vm143_vm2, %v4930_v13, 0.0 }
0x152c   :  { %1921 = vadd.xlane.f32.xlu0 %v1920_v15 }
0x1542   :  { %1977 = vrot.lane.b32.xlu0 %v5455_v49, %s5011_s20 }
0x1546   :  { %2120 = vrot.lane.b32.xlu0 %v5451_v31, %s6119_s27 }
0x15b1   :  { %v1919_v16 = vpop.xlane.xlu0 %1918 }
0x15b2   :  { %4931 = vrcp.f32 %v1919_v16 }
0x15b5   :  { %v1922_v17 = vpop.xlane.xlu0 %1921 }
0x15b6   :  { %4933 = vrcp.f32 %v1922_v17 }
0x15b9   :  { %v1978_v18 = vpop.permute.xlu0 %1977 }
0x15ba   :  { %v1983_v19 = vsel %vm284_vm3, %v1978_v18, 0 }
0x15bb   :  { %4624 = vmatpush3.bf16.msra.mxu0 %v1983_v19 }
0x15bc   :  { %4635 = vmatprep.subr.bf16.mxu0 %v5005_v1 }
0x15bd   :  { %v2121_v12 = vpop.permute.xlu0 %2120 }
0x15bf   :  { %v4932_v21 = vpop.eup %4931 }
0x15c0   :  { %v1924_v22 = vmul.f32 %v4932_v21, %v4928_v9 }
0x15c2   :  { %v1927_v23 = vpack.c.bf16 %v1924_v22, %v1924_v22 }
0x15c3   :  { %v4934_v24 = vpop.eup %4933 }
0x15c4   :  { %4620 = vmatmul.mubr.msk.bf16.vlgmr.msra.gmra.mxu1 %vm143_vm2, %v1927_v23  ;;  %v1926_v25 = vmul.f32 %v4934_v24, %v4930_v13 }
0x15c5   :  { %4631 = vmatprep.mubr.msk.bf16.mxu1 %vm5006_vm0, %v5005_v1  ;;  %4630 = vmatpush3.bf16.msra.mxu1 %v2030_v35 }
0x15c6   :  { %v1928_v27 = vpack.c.bf16 %v1926_v25, %v1926_v25  ;;  %4641 = vmatprep.subr.bf16.mxu1 %v5005_v1 }
0x15c8   :  { %4626 = vmatmul.mubr.msk.bf16.vlgmr.msra.gmra.mxu0 %vm143_vm2, %v1928_v27 }
0x15c9   :  { %4636 = vmatpush3.bf16.msra.mxu0 %v2077_v28  ;;  %4637 = vmatprep.mubr.msk.bf16.mxu0 %vm5006_vm0, %v5005_v1 }
0x15ca   :  { %4647 = vmatprep.subr.bf16.mxu0 %v5005_v1 }
0x15d0   :  { %4638 = vmatmul.mubr.msk.bf16.vlgmr.msra.gmra.mxu0 %vm143_vm2, %v1800_v45 }
0x15d1   :  { %4648 = vmatpush3.bf16.xpose.msra.mxu0 %v2178_v33  ;;  %4649 = vmatprep.mubr.msk.bf16.mxu0 %vm5006_vm0, %v5005_v1 }
0x15d2   :  { %4659 = vmatprep.subr.bf16.mxu0 %v5005_v1 }
0x15d8   :  { %4650 = vmatmul.mubr.msk.bf16.vlgmr.msra.gmra.mxu0 %vm143_vm2, %v2171_v34 }
0x15d9   :  { %4661 = vmatprep.mubr.msk.bf16.mxu0 %vm5006_vm0, %v5005_v1 }
0x1684   :  { %v1971_v4 = vpop.f32.mrf.mxu1 }
0x1686   :  { %v4621_v36 = vpop.f32.mrf.mxu1 }
0x1687   :  { %v4168_v36 = vld [vmem:[%s6085_s4 + $0x18] sm:$0xf] }
0x1688   :  { %v1974_v37 = vpop.f32.mrf.mxu1  ;;  %v2019_v38 = vpop.f32.mrf.mxu0 }
0x1689   :  { %v2025_v39 = vpack.c.bf16 %v2019_v38, %v1971_v4  ;;  %v2349_v37 = vsel %vm284_vm3, %v4168_v36, 0 }
0x168a   :  { %v4622_v40 = vpop.f32.mrf.mxu1  ;;  %v4627_v41 = vpop.f32.mrf.mxu0 }
0x168b   :  { %4632 = vmatmul.mubr.msk.bf16.vlgmr.msra.gmra.mxu1 %vm143_vm2, %v2025_v39 }
0x168c   :  { %4642 = vmatpush3.bf16.xpose.msra.mxu1 %v2128_v44  ;;  %v2022_v45 = vpop.f32.mrf.mxu0  ;;  %4643 = vmatprep.mubr.msk.bf16.mxu1 %vm5006_vm0, %v5005_v1 }
0x168d   :  { %4653 = vmatprep.subr.bf16.mxu1 %v5005_v1 }
0x168e   :  { %v4628_v8 = vpop.f32.mrf.mxu0 }
0x1690   :  { %v5579_v29 = vpop.f32.mrf.mxu0 }
0x1692   :  { %v4639_v46 = vpop.f32.mrf.mxu0 }
0x1693   :  { %4644 = vmatmul.mubr.msk.bf16.vlgmr.msra.gmra.mxu1 %vm143_vm2, %v2121_v12 }
0x1694   :  { %v5582_v47 = vpop.f32.mrf.mxu0  ;;  %4655 = vmatprep.mubr.msk.bf16.mxu1 %vm5006_vm0, %v5005_v1 }
0x1696   :  { %v4640_v48 = vpop.f32.mrf.mxu0 }
0x1698   :  { %v2214_v26 = vpop.f32.mrf.mxu0 }
0x1699   :  { %v2221_v50 = vmul.f32 0.35355338, %v2214_v26 }
0x169a   :  { %v4651_v10 = vpop.f32.mrf.mxu0 }
0x169b   :  { %v2223_v51 = vadd.f32 %v5481_v62, %v2221_v50 }
0x169c   :  { %v2217_v52 = vpop.f32.mrf.mxu0 }
0x169d   :  { %v2227_v53 = vsel %vm143_vm2, %v2223_v51, -inf }
0x169e   :  { %2228 = vmax.xlane.f32.xlu1 %v2227_v53  ;;  %v4652_v54 = vpop.f32.mrf.mxu0 }
0x16af   :  { %2248 = vrot.lane.b32.xlu1 %v5451_v31, %s6120_s22 }
0x16b3   :  { %2396 = vrot.lane.b32.xlu1 %v5451_v31, %s6121_s23 }
0x16b7   :  { %2446 = vrot.lane.b32.xlu1 %v5455_v49, %s6121_s23 }
0x16bb   :  { %2444 = vrot.lane.b32.xlu1 %v5455_v49, %s6122_s25 }
0x1727   :  { %v2229_v56 = vpop.xlane.xlu1 %2228 }
0x1728   :  { %v2231_v14 = vsub.f32 %v2223_v51, %v2229_v56 }
0x172a   :  { %v2234_v59 = vmul.f32 1.442695, %v2231_v14 }
0x172b   :  { %v2249_v57 = vpop.permute.xlu1 %2248 }
0x172c   :  { %v2254_v58 = vsel %vm284_vm3, %v2249_v57, 0  ;;  %4935 = vpow2.f32 %v2234_v59 }
0x172d   :  { %4654 = vmatpush3.bf16.msra.mxu1 %v2254_v58 }
0x172e   :  { %4665 = vmatprep.subr.bf16.mxu1 %v5005_v1 }
0x172f   :  { %v2397_v30 = vpop.permute.xlu1 %2396 }
0x1730   :  { %v2402_v33 = vsel %vm143_vm2, %v2397_v30, 0 }
0x1733   :  { %v2447_v45 = vpop.permute.xlu1 %2446 }
0x1734   :  { %v2452_v51 = vsel %vm143_vm2, %v2447_v45, 0 }
0x1737   :  { %v2445_v57 = vpop.permute.xlu1 %2444 }
0x1739   :  { %v4936_v13 = vpop.eup %4935 }
0x173a   :  { %v2239_v16 = vsel %vm143_vm2, %v4936_v13, 0.0 }
0x174b   :  { %v5598_v60 = vpop.f32.mrf.mxu1 }
0x174d   :  { %v4633_v61 = vpop.f32.mrf.mxu1 }
0x174f   :  { %v5600_v63 = vpop.f32.mrf.mxu1 }
0x1751   :  { %v4634_v0 = vpop.f32.mrf.mxu1 }
0x1752   :  { %v2114_v0 = vadd.f32 %v5579_v29, %v5598_v60 }
0x1753   :  { %v2164_v2 = vpop.f32.mrf.mxu1 }
0x1754   :  { %v2220_v5 = vmul.f32 0.35355338, %v2164_v2 }
0x1755   :  { %v4645_v6 = vpop.f32.mrf.mxu1 }
0x1756   :  { %v2222_v7 = vadd.f32 %v5474_v55, %v2220_v5 }
0x1757   :  { %v2167_v9 = vpop.f32.mrf.mxu1 }
0x1758   :  { %v2224_v11 = vsel %vm143_vm2, %v2222_v7, -inf }
0x1759   :  { %2225 = vmax.xlane.f32.xlu0 %v2224_v11  ;;  %v4646_v15 = vpop.f32.mrf.mxu1 }
0x175d   :  { %2240 = vadd.xlane.f32.xlu0 %v2239_v16 }
0x17e2   :  { %v2226_v17 = vpop.xlane.xlu0 %2225 }
0x17e3   :  { %v2230_v18 = vsub.f32 %v2222_v7, %v2226_v17  ;;  %v2117_v7 = vadd.f32 %v5582_v47, %v5600_v63 }
0x17e5   :  { %v2232_v19 = vmul.f32 1.442695, %v2230_v18 }
0x17e6   :  { %v2241_v23 = vpop.xlane.xlu0 %2240 }
0x17e7   :  { %4937 = vpow2.f32 %v2232_v19 }
0x17e8   :  { %4939 = vrcp.f32 %v2241_v23 }
0x17f4   :  { %v4938_v21 = vpop.eup %4937 }
0x17f5   :  { %v2236_v22 = vsel %vm143_vm2, %v4938_v21, 0.0  ;;  %v4940_v24 = vpop.eup %4939 }
0x17f6   :  { %2237 = vadd.xlane.f32.xlu0 %v2236_v22  ;;  %v2245_v25 = vmul.f32 %v4940_v24, %v4936_v13 }
0x17f8   :  { %v2247_v32 = vpack.c.bf16 %v2245_v25, %v2245_v25 }
0x180c   :  { %2296 = vrot.lane.b32.xlu0 %v5455_v49, %s6120_s22 }
0x1810   :  { %2394 = vrot.lane.b32.xlu0 %v5451_v31, %s6122_s25 }
0x187f   :  { %v2238_v20 = vpop.xlane.xlu0 %2237 }
0x1880   :  { %4941 = vrcp.f32 %v2238_v20 }
0x1883   :  { %v2297_v27 = vpop.permute.xlu0 %2296 }
0x1884   :  { %v2302_v28 = vsel %vm284_vm3, %v2297_v27, 0 }
0x1885   :  { %4660 = vmatpush3.bf16.msra.mxu0 %v2302_v28  ;;  %v4169_v28 = vld [vmem:[%s6085_s4 + $0x1c] sm:$0xf] }
0x1886   :  { %4671 = vmatprep.subr.bf16.mxu0 %v5005_v1  ;;  %v2623_v30 = vsel %vm284_vm3, %v4169_v28, 0  ;;  %v4201_v28 = vld [vmem:[%s6090_s9 + $0x1] ss:$0 sm:$0xff] }
0x1887   :  { %v2395_v35 = vpop.permute.xlu0 %2394 }
0x1888   :  { %4662 = vmatmul.mubr.msk.bf16.vlgmr.msra.gmra.mxu0 %vm143_vm2, %v2247_v32 }
0x1889   :  { %4672 = vmatpush3.bf16.xpose.msra.mxu0 %v2402_v33  ;;  %4673 = vmatprep.mubr.msk.bf16.mxu0 %vm5006_vm0, %v5005_v1 }
0x188a   :  { %4683 = vmatprep.subr.bf16.mxu0 %v5005_v1 }
0x188d   :  { %v4942_v34 = vpop.eup %4941 }
0x188e   :  { %v2243_v3 = vmul.f32 %v4942_v34, %v4938_v21 }
0x1890   :  { %4674 = vmatmul.mubr.msk.bf16.vlgmr.msra.gmra.mxu0 %vm143_vm2, %v2395_v35  ;;  %v2246_v4 = vpack.c.bf16 %v2243_v3, %v2243_v3 }
0x1891   :  { %4685 = vmatprep.mubr.msk.bf16.mxu0 %vm5006_vm0, %v5005_v1 }
0x1892   :  { %4656 = vmatmul.mubr.msk.bf16.vlgmr.msra.gmra.mxu1 %vm143_vm2, %v2246_v4 }
0x1893   :  { %4667 = vmatprep.mubr.msk.bf16.mxu1 %vm5006_vm0, %v5005_v1  ;;  %4666 = vmatpush3.bf16.msra.mxu1 %v2349_v37 }
0x1894   :  { %4677 = vmatprep.subr.bf16.mxu1 %v5005_v1 }
0x1948   :  { %v2338_v38 = vpop.f32.mrf.mxu0 }
0x194a   :  { %v4663_v39 = vpop.f32.mrf.mxu0 }
0x194c   :  { %v2341_v40 = vpop.f32.mrf.mxu0 }
0x194e   :  { %v4664_v41 = vpop.f32.mrf.mxu0 }
0x1950   :  { %v2438_v44 = vpop.f32.mrf.mxu0 }
0x1951   :  { %v2494_v8 = vmul.f32 0.35355338, %v2438_v44 }
0x1952   :  { %v2290_v12 = vpop.f32.mrf.mxu1  ;;  %v4675_v46 = vpop.f32.mrf.mxu0 }
0x1953   :  { %v2344_v48 = vpack.c.bf16 %v2338_v38, %v2290_v12  ;;  %v2496_v26 = vadd.f32 %v5474_v55, %v2494_v8  ;;  %v4191_v12 = vld [vmem:[%s6086_s5 + $0x1] ss:$0 sm:$0xff] }
0x1954   :  { %v4657_v50 = vpop.f32.mrf.mxu1  ;;  %v2441_v10 = vpop.f32.mrf.mxu0 }
0x1955   :  { %4668 = vmatmul.mubr.msk.bf16.vlgmr.msra.gmra.mxu1 %vm143_vm2, %v2344_v48  ;;  %v2498_v52 = vsel %vm143_vm2, %v2496_v26, -inf }
0x1956   :  { %4678 = vmatpush3.bf16.xpose.msra.mxu1 %v2452_v51  ;;  %v2293_v53 = vpop.f32.mrf.mxu1  ;;  %2499 = vmax.xlane.f32.xlu0 %v2498_v52  ;;  %v4676_v54 = vpop.f32.mrf.mxu0 }
0x1957   :  { %4679 = vmatprep.mubr.msk.bf16.mxu1 %vm5006_vm0, %v5005_v1  ;;  %4689 = vmatprep.subr.bf16.mxu1 %v5005_v1 }
0x1958   :  { %v4658_v56 = vpop.f32.mrf.mxu1 }
0x195d   :  { %4680 = vmatmul.mubr.msk.bf16.vlgmr.msra.gmra.mxu1 %vm143_vm2, %v2445_v57 }
0x195e   :  { %4691 = vmatprep.mubr.msk.bf16.mxu1 %vm5006_vm0, %v5005_v1 }
0x19df   :  { %v2500_v55 = vpop.xlane.xlu0 %2499 }
0x19e0   :  { %v2504_v58 = vsub.f32 %v2496_v26, %v2500_v55 }
0x19e2   :  { %v2506_v14 = vmul.f32 1.442695, %v2504_v58 }
0x19e4   :  { %4943 = vpow2.f32 %v2506_v14 }
0x19f1   :  { %v4944_v59 = vpop.eup %4943 }
0x19f2   :  { %v2510_v61 = vsel %vm143_vm2, %v4944_v59, 0.0 }
0x19f3   :  { %2511 = vadd.xlane.f32.xlu0 %v2510_v61 }
0x1a15   :  { %v2385_v2 = vpop.f32.mrf.mxu1 }
0x1a16   :  { %v2392_v5 = vadd.f32 %v2385_v2, %v2114_v0 }
0x1a17   :  { %v4669_v6 = vpop.f32.mrf.mxu1 }
0x1a19   :  { %v2388_v9 = vpop.f32.mrf.mxu1 }
0x1a1a   :  { %v2393_v11 = vadd.f32 %v2388_v9, %v2117_v7  ;;  %v4874_v7 = vld [vmem:[%s6089_s8 + $0x10] sm:$0xff]   ;;  %v4875_v9 = vld [vmem:[%s6091_s10 + $0x38] sm:$0xff]  }
0x1a1b   :  { %v4670_v13 = vpop.f32.mrf.mxu1 }
0x1a1d   :  { %v2488_v15 = vpop.f32.mrf.mxu1 }
0x1a1e   :  { %v2495_v16 = vmul.f32 0.35355338, %v2488_v15 }
0x1a1f   :  { %v4681_v17 = vpop.f32.mrf.mxu1 }
0x1a20   :  { %v2497_v18 = vadd.f32 %v5481_v62, %v2495_v16 }
0x1a21   :  { %v2491_v19 = vpop.f32.mrf.mxu1 }
0x1a22   :  { %v2501_v21 = vsel %vm143_vm2, %v2497_v18, -inf }
0x1a23   :  { %2502 = vmax.xlane.f32.xlu1 %v2501_v21  ;;  %v4682_v22 = vpop.f32.mrf.mxu1 }
0x1a24   :  { %v4193_v22 = vld [vmem:[%s6087_s6 + $0x1] ss:$0 sm:$0xff] }
0x1a34   :  { %2522 = vrot.lane.b32.xlu1 %v5451_v31, %s6123_s21 }
0x1a7c   :  { %v2512_v29 = vpop.xlane.xlu0 %2511 }
0x1a7d   :  { %4945 = vrcp.f32 %v2512_v29 }
0x1a8a   :  { %v4946_v60 = vpop.eup %4945 }
0x1a8b   :  { %v2517_v24 = vmul.f32 %v4946_v60, %v4944_v59 }
0x1a8d   :  { %v2520_v62 = vpack.c.bf16 %v2517_v24, %v2517_v24 }
0x1aac   :  { %v2503_v47 = vpop.xlane.xlu1 %2502 }
0x1aad   :  { %v2505_v63 = vsub.f32 %v2497_v18, %v2503_v47 }
0x1aaf   :  { %v2508_v23 = vmul.f32 1.442695, %v2505_v63  ;;  %v4195_v63 = vld [vmem:[%s6088_s7 + $0x1] ss:$0 sm:$0xff] }
0x1ab0   :  { %v2523_v20 = vpop.permute.xlu1 %2522 }
0x1ab1   :  { %4947 = vpow2.f32 %v2508_v23  ;;  %v2528_v25 = vsel %vm284_vm3, %v2523_v20, 0 }
0x1ab2   :  { %4684 = vmatpush3.bf16.msra.mxu0 %v2528_v25 }
0x1ab3   :  { %4695 = vmatprep.subr.bf16.mxu0 %v5005_v1 }
0x1ab5   :  { %4686 = vmatmul.mubr.msk.bf16.vlgmr.msra.gmra.mxu0 %vm143_vm2, %v2520_v62  ;;  %v4876_v62 = vld [vmem:[%s6091_s10 + $0x30] sm:$0xff]  }
0x1ab6   :  { %4697 = vmatprep.mubr.msk.bf16.mxu0 %vm5006_vm0, %v5005_v1  ;;  %4696 = vmatpush3.bf16.msra.mxu0 %v2623_v30 }
0x1ab7   :  { %4709 = vmatprep.subr.bf16.mxu0 %v5005_v1 }
0x1abe   :  { %v4948_v31 = vpop.eup %4947 }
0x1abf   :  { %v2513_v27 = vsel %vm143_vm2, %v4948_v31, 0.0 }
0x1ac0   :  { %2514 = vadd.xlane.f32.xlu0 %v2513_v27  ;;  %v4878_v27 = vld [vmem:[%s6091_s10 + $0x20] sm:$0xff]  }
0x1ad6   :  { %2570 = vrot.lane.b32.xlu0 %v5455_v49, %s6123_s21 }
0x1b49   :  { %v2515_v32 = vpop.xlane.xlu0 %2514 }
0x1b4a   :  { %4949 = vrcp.f32 %v2515_v32 }
0x1b4d   :  { %v2571_v33 = vpop.permute.xlu0 %2570 }
0x1b4e   :  { %v2576_v34 = vsel %vm284_vm3, %v2571_v33, 0 }
0x1b4f   :  { %4690 = vmatpush3.bf16.msra.mxu1 %v2576_v34 }
0x1b50   :  { %4701 = vmatprep.subr.bf16.mxu1 %v5005_v1 }
0x1b57   :  { %v4950_v3 = vpop.eup %4949 }
0x1b58   :  { %v2519_v35 = vmul.f32 %v4950_v3, %v4948_v31  ;;  %v4877_v31 = vld [vmem:[%s6091_s10 + $0x28] sm:$0xff]  }
0x1b5a   :  { %v2521_v49 = vpack.c.bf16 %v2519_v35, %v2519_v35 }
0x1b5c   :  { %4692 = vmatmul.mubr.msk.bf16.vlgmr.msra.gmra.mxu1 %vm143_vm2, %v2521_v49 }
0x1b5d   :  { %4705 = vmatprep.mubr.msk.bf16.mxu1 %vm5006_vm0, %v5005_v1 }
0x1b75   :  { %v2564_v4 = vpop.f32.mrf.mxu0 }
0x1b77   :  { %v4687_v36 = vpop.f32.mrf.mxu0 }
0x1b79   :  { %v2567_v37 = vpop.f32.mrf.mxu0 }
0x1b7a   :  { %v4214_v37 = vld [vmem:[%s6092_s11 + $0x1] ss:$0 sm:$0xff] }
0x1b7b   :  { %v4688_v38 = vpop.f32.mrf.mxu0 }
0x1c1c   :  { %v2612_v39 = vpop.f32.mrf.mxu1 }
0x1c1d   :  { %v2618_v40 = vpack.c.bf16 %v2612_v39, %v2564_v4 }
0x1c1e   :  { %v4693_v41 = vpop.f32.mrf.mxu1 }
0x1c1f   :  { %4698 = vmatmul.mubr.msk.bf16.vlgmr.msra.gmra.mxu0 %vm143_vm2, %v2618_v40 }
0x1c20   :  { %v2615_v44 = vpop.f32.mrf.mxu1  ;;  %4717 = vmatprep.mubr.msk.bf16.mxu0 %vm5006_vm0, %v5005_v1  ;;  %4710 = vmatpush3.bf16.msra.mxu0 %v4875_v9  ;;  %v5801_v9 = vld [vmem:[%s6097_s16 + $0x40] sm:$0xff] }
0x1c21   :  { %4711 = vmatprep.subr.bf16.mxu0 %v5005_v1 }
0x1c22   :  { %v4694_v45 = vpop.f32.mrf.mxu1 }
0x1c24   :  { %4712 = vmatpush3.bf16.msra.mxu0 %v4876_v62 }
0x1c25   :  { %4713 = vmatprep.subr.bf16.mxu0 %v5005_v1 }
0x1c28   :  { %4714 = vmatpush3.bf16.msra.mxu0 %v4877_v31 }
0x1c29   :  { %4715 = vmatprep.subr.bf16.mxu0 %v5005_v1 }
0x1c2c   :  { %4716 = vmatpush3.bf16.msra.mxu0 %v4878_v27 }
0x1cdf   :  { %v2659_v8 = vpop.f32.mrf.mxu0 }
0x1ce0   :  { %v2666_v46 = vadd.f32 %v2659_v8, %v2392_v5 }
0x1ce1   :  { %v4699_v48 = vpop.f32.mrf.mxu0 }
0x1ce2   :  { %v2676_v26 = vadd.f32 %v4191_v12, %v2666_v46 }
0x1ce3   :  { %v2662_v50 = vpop.f32.mrf.mxu0 }
0x1ce4   :  { %v2667_v10 = vadd.f32 %v2662_v50, %v2393_v11  ;;  %v2678_v51 = vadd.f32 %v2676_v26, %v5439_v42  ;;  %v5721_v26 = vld [vmem:[%s6097_s16 + $0x38] sm:$0xff]  ;;  %v5727_v50 = vld [vmem:[%s6097_s16 + $0x30] sm:$0xff] }
0x1ce5   :  { %v4700_v52 = vpop.f32.mrf.mxu0  ;;  %4746 = vmatprep.subr.mxu0 %v5721_v26 }
0x1ce6   :  { %v2677_v53 = vadd.f32 %v4191_v12, %v2667_v10  ;;  %v2680_v54 = vsel %vm89_vm1, %v2678_v51, 0.0  ;;  %v5734_v10 = vld [vmem:[%s6097_s16 + $0x28] sm:$0xff]  ;;  %v5749_v52 = vld [vmem:[%s6097_s16 + $0x78] sm:$0xff] }
0x1ce7   :  { %2681 = vadd.xlane.f32.xlu1 %v2680_v54 }
0x1ce8   :  { %v2679_v56 = vadd.f32 %v2677_v53, %v5441_v43  ;;  %v4873_v43 = vld [vmem:[%s6089_s8 + $0x18] sm:$0xff]  }
0x1ce9   :  { %4702 = vmatpush3.bf16.msra.mxu1 %v4873_v43  ;;  %v5780_v43 = vld [vmem:[%s6097_s16 + $0x18] sm:$0xff] }
0x1cea   :  { %v2683_v57 = vsel %vm89_vm1, %v2679_v56, 0.0  ;;  %4703 = vmatprep.subr.bf16.mxu1 %v5005_v1 }
0x1ceb   :  { %2684 = vadd.xlane.f32.xlu0 %v2683_v57 }
0x1ced   :  { %4704 = vmatpush3.bf16.msra.mxu1 %v4874_v7  ;;  %v5788_v7 = vld [vmem:[%s6097_s16] sm:$0xff] }
0x1cee   :  { %4721 = vmatprep.subr.mxu1 %v5005_v1 }
0x1d70   :  { %v2682_v55 = vpop.xlane.xlu1 %2681 }
0x1d71   :  { %v2686_v58 = vmul.f32 0.03125, %v2682_v55 }
0x1d73   :  { %v2688_v14 = vsub.f32 %v2678_v51, %v2686_v58  ;;  %v5741_v51 = vld [vmem:[%s6097_s16 + $0x20] sm:$0xff] }
0x1d74   :  { %v2685_v59 = vpop.xlane.xlu0 %2684 }
0x1d75   :  { %v2687_v61 = vmul.f32 0.03125, %v2685_v59  ;;  %v2690_v0 = vmul.f32 %v2688_v14, %v2688_v14 }
0x1d77   :  { %v2689_v2 = vsub.f32 %v2679_v56, %v2687_v61  ;;  %v2692_v5 = vsel %vm89_vm1, %v2690_v0, 0.0 }
0x1d78   :  { %2693 = vadd.xlane.f32.xlu1 %v2692_v5  ;;  %v2934_v5 = vld [vmem:[%s6095_s14 + $0x10] sm:$0xff] }
0x1d79   :  { %v2691_v42 = vmul.f32 %v2689_v2, %v2689_v2 }
0x1d7b   :  { %v2695_v6 = vsel %vm89_vm1, %v2691_v42, 0.0  ;;  %v2933_v42 = vld [vmem:[%s6095_s14 + $0x8] sm:$0xff] }
0x1d7c   :  { %2696 = vadd.xlane.f32.xlu0 %v2695_v6  ;;  %v2932_v6 = vld [vmem:[%s6095_s14] sm:$0xff] }
0x1e01   :  { %v2694_v11 = vpop.xlane.xlu1 %2693 }
0x1e02   :  { %v2698_v13 = vmul.f32 0.03125, %v2694_v11  ;;  %v5807_v11 = vld [vmem:[%s6097_s16 + $0x10] sm:$0xff] }
0x1e04   :  { %v2700_v15 = vadd.f32 1e-05, %v2698_v13  ;;  %v5813_v13 = vld [vmem:[%s6097_s16 + $0x48] sm:$0xff] }
0x1e05   :  { %v2697_v16 = vpop.xlane.xlu0 %2696 }
0x1e06   :  { %4951 = vrsqrt.f32 %v2700_v15  ;;  %v2699_v17 = vmul.f32 0.03125, %v2697_v16  ;;  %v5820_v15 = vld [vmem:[%s6097_s16 + $0x50] sm:$0xff]  ;;  %v5826_v16 = vld [vmem:[%s6097_s16 + $0x60] sm:$0xff] }
0x1e08   :  { %v2701_v18 = vadd.f32 1e-05, %v2699_v17  ;;  %v5832_v17 = vld [vmem:[%s6097_s16 + $0x58] sm:$0xff] }
0x1e0a   :  { %4953 = vrsqrt.f32 %v2701_v18  ;;  %v5838_v18 = vld [vmem:[%s6097_s16 + $0x68] sm:$0xff] }
0x1e13   :  { %v4952_v19 = vpop.eup %4951 }
0x1e14   :  { %v2704_v21 = vmul.f32 %v4952_v19, %v2688_v14  ;;  %v5844_v19 = vld [vmem:[%s6097_s16 + $0x80] sm:$0xff] }
0x1e16   :  { %v2714_v47 = vmul.f32 %v4193_v22, %v2704_v21  ;;  %v5850_v21 = vld [vmem:[%s6097_s16 + $0x70] sm:$0xff] }
0x1e17   :  { %v4954_v29 = vpop.eup %4953 }
0x1e18   :  { %v2705_v60 = vmul.f32 %v4954_v29, %v2689_v2  ;;  %v2724_v24 = vadd.f32 %v4195_v63, %v2714_v47  ;;  %v2935_v2 = vld [vmem:[%s6095_s14 + $0x18] sm:$0xff]  ;;  %v5863_v29 = vld [vmem:[%s6097_s16 + $0x90] sm:$0xff] }
0x1e19   :  { %v5875_v47 = vld [vmem:[%s6097_s16 + $0x98] sm:$0xff] }
0x1e1a   :  { %v2715_v23 = vmul.f32 %v4193_v22, %v2705_v60  ;;  %v5856_v22 = vld [vmem:[%s6097_s16 + $0x88] sm:$0xff]  ;;  %v5869_v60 = vld [vmem:[%s6097_s16 + $0xa0] sm:$0xff] }
0x1e1c   :  { %v2725_v20 = vadd.f32 %v4195_v63, %v2715_v23  ;;  %v5881_v63 = vld [vmem:[%s6097_s16 + $0xa8] sm:$0xff]  ;;  %v5888_v23 = vld [vmem:[%s6097_s16 + $0xb0] sm:$0xff] }
0x1e1e   :  { %v2726_v25 = vpack.c.bf16 %v2725_v20, %v2724_v24 }
0x1e20   :  { %4706 = vmatmul.mubr.msk.bf16.vlgmr.msra.gmra.mxu1 %vm89_vm1, %v2726_v25 }
0x1e21   :  { %4729 = vmatprep.mubr.msk.f32.mxu1 %vm5006_vm0, %v5005_v1  ;;  %4722 = vmatpush3.msra.mxu1 %v2935_v2 }
0x1e22   :  { %4723 = vmatprep.subr.mxu1 %v5005_v1 }
0x1e23   :  { %4724 = vmatpush3.msra.mxu1 %v2934_v5 }
0x1e24   :  { %4725 = vmatprep.subr.mxu1 %v5005_v1 }
0x1e25   :  { %4726 = vmatpush3.msra.mxu1 %v2933_v42 }
0x1e26   :  { %4727 = vmatprep.subr.mxu1 %v5005_v1  ;;  %v5795_v1 = vld [vmem:[%s6097_s16 + $0x8] sm:$0xff] }
0x1e27   :  { %4728 = vmatpush3.msra.mxu1 %v2932_v6 }
0x1e28   :  { %4732 = vmatprep.subr.mxu1 %v5780_v43 }
0x1ee0   :  { %v2789_v30 = vpop.f32.mrf.mxu1 }
0x1ee1   :  { %v2790_v33 = vadd.f32 %v4201_v28, %v2789_v30 }
0x1ee2   :  { %v4707_v32 = vpop.f32.mrf.mxu1 }
0x1ee3   :  { %v2796_v49 = vmax.f32 %v2790_v33, 0.0 }
0x1ee4   :  { %v2792_v34 = vpop.f32.mrf.mxu1 }
0x1ee5   :  { %v2793_v3 = vadd.f32 %v4201_v28, %v2792_v34  ;;  %v4221_v34 = vld [vmem:[%s6093_s12 + $0x1] ss:$0 sm:$0xff] }
0x1ee6   :  { %v4708_v35 = vpop.f32.mrf.mxu1 }
0x1ee7   :  { %v2797_v4 = vmax.f32 %v2793_v3, 0.0 }
0x1ee9   :  { %v2798_v36 = vpack.c.bf16 %v2797_v4, %v2796_v49  ;;  %v4223_v4 = vld [vmem:[%s6094_s13 + $0x1] ss:$0 sm:$0xff] }
0x1eeb   :  { %4718 = vmatmul.mubr.msk.bf16.vlgmr.msra.gmra.mxu0 %vm1410_vm4, %v2798_v36 }
0x1eec   :  { %4747 = vmatpush3.msra.mxu0 %v5721_v26 }
0x1eed   :  { %4748 = vmatprep.subr.mxu0 %v5727_v50 }
0x1eee   :  { %4749 = vmatpush3.msra.mxu0 %v5727_v50 }
0x1eef   :  { %4750 = vmatprep.subr.mxu0 %v5734_v10 }
0x1ef0   :  { %4751 = vmatpush3.msra.mxu0 %v5734_v10 }
0x1ef1   :  { %4752 = vmatprep.subr.mxu0 %v5741_v51 }
0x1ef2   :  { %4753 = vmatpush3.msra.mxu0 %v5741_v51 }
0x1ef3   :  { %4774 = vmatprep.subr.mxu0 %v5749_v52 }
0x1fab   :  { %v2877_v38 = vpop.f32.mrf.mxu0 }
0x1fac   :  { %v2878_v39 = vadd.f32 %v4214_v37, %v2877_v38 }
0x1fad   :  { %v4719_v40 = vpop.f32.mrf.mxu0 }
0x1fae   :  { %v2884_v41 = vadd.f32 %v2878_v39, %v2724_v24  ;;  %v5894_v24 = vld [vmem:[%s6097_s16 + $0xb8] sm:$0xff] }
0x1faf   :  { %v2880_v44 = vpop.f32.mrf.mxu0 }
0x1fb0   :  { %v2881_v45 = vadd.f32 %v4214_v37, %v2880_v44  ;;  %v2886_v8 = vsel %vm89_vm1, %v2884_v41, 0.0 }
0x1fb1   :  { %2887 = vadd.xlane.f32.xlu0 %v2886_v8  ;;  %v4720_v12 = vpop.f32.mrf.mxu0 }
0x1fb2   :  { %v2885_v46 = vadd.f32 %v2881_v45, %v2725_v20 }
0x1fb4   :  { %v2889_v48 = vsel %vm89_vm1, %v2885_v46, 0.0 }
0x1fb5   :  { %2890 = vadd.xlane.f32.xlu1 %v2889_v48 }
0x203a   :  { %v2888_v53 = vpop.xlane.xlu0 %2887 }
0x203b   :  { %v2892_v54 = vmul.f32 0.03125, %v2888_v53 }
0x203d   :  { %v5752_v56 = vsub.f32 %v2884_v41, %v2892_v54 }
0x203e   :  { %v2891_v57 = vpop.xlane.xlu1 %2890 }
0x203f   :  { %v2893_v55 = vmul.f32 0.03125, %v2891_v57  ;;  %v2896_v58 = vmul.f32 %v5752_v56, %v5752_v56 }
0x2041   :  { %v5756_v14 = vsub.f32 %v2885_v46, %v2893_v55  ;;  %v2898_v59 = vsel %vm89_vm1, %v2896_v58, 0.0 }
0x2042   :  { %2899 = vadd.xlane.f32.xlu0 %v2898_v59 }
0x2043   :  { %v2897_v61 = vmul.f32 %v5756_v14, %v5756_v14 }
0x2045   :  { %v2901_v0 = vsel %vm89_vm1, %v2897_v61, 0.0 }
0x2046   :  { %2902 = vadd.xlane.f32.xlu1 %v2901_v0 }
0x206f   :  { %3203 = vxpose.xlu0.b32.start [1/4] (short) (narrow) %v5741_v51, 32 }
0x2073   :  { %3204 = vxpose.xlu0.b32.cont [2/4] (short) (narrow) %v5734_v10, 32 }
0x2077   :  { %3205 = vxpose.xlu0.b32.cont [3/4] (short) (narrow) %v5727_v50, 32 }
0x2079   :  { %3026 = vxpose.xlu1.b32.start [1/4] (short) (narrow) %v5788_v7, 32 }
0x207b   :  { %3206 = vxpose.xlu0.b32.end [4/4] (short) (narrow) %v5721_v26, 32 }
0x207d   :  { %3027 = vxpose.xlu1.b32.cont [2/4] (short) (narrow) %v5795_v1, 32 }
0x207f   :  { %3380 = vxpose.xlu0.b32.start [1/4] (short) (narrow) %v5801_v9, 32 }
0x2081   :  { %3028 = vxpose.xlu1.b32.cont [3/4] (short) (narrow) %v5807_v11, 32 }
0x2083   :  { %3381 = vxpose.xlu0.b32.cont [2/4] (short) (narrow) %v5813_v13, 32 }
0x2085   :  { %3029 = vxpose.xlu1.b32.end [4/4] (short) (narrow) %v5780_v43, 32 }
0x2087   :  { %3382 = vxpose.xlu0.b32.cont [3/4] (short) (narrow) %v5820_v15, 32 }
0x2089   :  { %3557 = vxpose.xlu1.b32.start [1/4] (short) (narrow) %v5826_v16, 32 }
0x208b   :  { %3383 = vxpose.xlu0.b32.end [4/4] (short) (narrow) %v5832_v17, 32 }
0x208d   :  { %3558 = vxpose.xlu1.b32.cont [2/4] (short) (narrow) %v5838_v18, 32 }
0x208f   :  { %3734 = vxpose.xlu0.b32.start [1/4] (short) (narrow) %v5844_v19, 32 }
0x2091   :  { %3559 = vxpose.xlu1.b32.cont [3/4] (short) (narrow) %v5850_v21, 32 }
0x2093   :  { %3735 = vxpose.xlu0.b32.cont [2/4] (short) (narrow) %v5856_v22, 32 }
0x2095   :  { %3560 = vxpose.xlu1.b32.end [4/4] (short) (narrow) %v5749_v52, 32 }
0x2097   :  { %3736 = vxpose.xlu0.b32.cont [3/4] (short) (narrow) %v5863_v29, 32 }
0x2099   :  { %3911 = vxpose.xlu1.b32.start [1/4] (short) (narrow) %v5869_v60, 32 }
0x209b   :  { %3737 = vxpose.xlu0.b32.end [4/4] (short) (narrow) %v5875_v47, 32 }
0x209d   :  { %3912 = vxpose.xlu1.b32.cont [2/4] (short) (narrow) %v5881_v63, 32 }
0x20a1   :  { %3913 = vxpose.xlu1.b32.cont [3/4] (short) (narrow) %v5888_v23, 32 }
0x20a5   :  { %3914 = vxpose.xlu1.b32.end [4/4] (short) (narrow) %v5894_v24, 32 }
0x20cb   :  { %v2900_v20 = vpop.xlane.xlu0 %2899 }
0x20cc   :  { %v2904_v25 = vmul.f32 0.03125, %v2900_v20 }
0x20ce   :  { %v2906_v62 = vadd.f32 1e-05, %v2904_v25 }
0x20cf   :  { %v2903_v31 = vpop.xlane.xlu1 %2902 }
0x20d0   :  { %4955 = vrsqrt.f32 %v2906_v62  ;;  %v2905_v27 = vmul.f32 0.03125, %v2903_v31  ;;  %v3176_v62 = vmul.f32 %v5788_v7, %v5788_v7  ;;  %v3177_v31 = vmul.f32 %v5795_v1, %v5795_v1 }
0x20d2   :  { %v2907_v28 = vadd.f32 1e-05, %v2905_v27  ;;  %v3178_v27 = vmul.f32 %v5807_v11, %v5807_v11 }
0x20d4   :  { %4957 = vrsqrt.f32 %v2907_v28  ;;  %v3180_v28 = vsel %vm89_vm1, %v3176_v62, 0.0 }
0x20dd   :  { %v4956_v30 = vpop.eup %4955 }
0x20de   :  { %v2910_v32 = vmul.f32 %v4956_v30, %v5752_v56  ;;  %v3181_v30 = vsel %vm89_vm1, %v3177_v31, 0.0 }
0x20e0   :  { %v2920_v35 = vmul.f32 %v4221_v34, %v2910_v32  ;;  %v3182_v32 = vadd.f32 %v3181_v30, %v3180_v28 }
0x20e1   :  { %v4958_v33 = vpop.eup %4957 }
0x20e2   :  { %v2911_v3 = vmul.f32 %v4958_v33, %v5756_v14  ;;  %v2930_v37 = vadd.f32 %v4223_v4, %v2920_v35  ;;  %v3179_v33 = vmul.f32 %v5780_v43, %v5780_v43 }
0x20e4   :  { %v2921_v49 = vmul.f32 %v4221_v34, %v2911_v3  ;;  %v3183_v34 = vsel %vm89_vm1, %v3178_v27, 0.0  ;;  %v3185_v35 = vsel %vm89_vm1, %v3179_v33, 0.0  ;;  %v3533_v27 = vmul.f32 %v5832_v17, %v5832_v17 }
0x20e5   :  { %v3184_v3 = vadd.f32 %v3183_v34, %v3182_v32  ;;  %v3709_v34 = vmul.f32 %v5850_v21, %v5850_v21 }
0x20e6   :  { %v2931_v36 = vadd.f32 %v4223_v4, %v2921_v49 }
0x20e8   :  { %v2945_v38 = vrot.slane %v2931_v36, 7 }
0x20ea   :  { %v2947_v39 = vsel %vm2946_vm5, %v2945_v38, %v2930_v37 }
0x20eb   :  { %v3219_v40 = vpop.trf.xlu0  ;;  %4730 = vmatmul.mubr.msk.f32.vlgmr.msra.gmra.mxu1 %vm89_vm1, %v2947_v39 }
0x20ec   :  { %4754 = vmatprep.mubr.msk.f32.mxu0 %vm89_vm1, %v3219_v40  ;;  %4733 = vmatpush3.msra.mxu1 %v5780_v43 }
0x20ed   :  { %4734 = vmatprep.subr.mxu1 %v5807_v11 }
0x20ee   :  { %4735 = vmatpush3.msra.mxu1 %v5807_v11 }
0x20ef   :  { %v3220_v41 = vpop.trf.xlu0  ;;  %4736 = vmatprep.subr.mxu1 %v5795_v1 }
0x20f0   :  { %4755 = vmatmul.mubr.msk.f32.vlgmr.msra.gmra.mxu0 %vm89_vm1, %v3220_v41  ;;  %4737 = vmatpush3.msra.mxu1 %v5795_v1  ;;  %v4224_v1 = vld [vmem:[%s6096_s15] ss:$0 sm:$0xff]  ;;  %s5018_s15 = smov [#allocation2]  }
0x20f1   :  { %4738 = vmatprep.subr.mxu1 %v5788_v7  ;;  %4775 = vmatpush3.msra.mxu0 %v5749_v52  ;;  %s4094_s19 = sshll.u32 %s5018_s15, 4  ;;  %s4095_s19 = int_to_ptr.vmem [resolvable:$true] %s4094_s19 }
0x20f2   :  { %4739 = vmatpush3.msra.mxu1 %v5788_v7  ;;  %4776 = vmatprep.subr.mxu0 %v5850_v21  ;;  %v3186_v7 = vadd.f32 %v3185_v35, %v3184_v3  ;;  %v3885_v35 = vmul.f32 %v5856_v22, %v5856_v22  ;;  %s4961_s8 = scalar_lea.vmem %s4095_s19, 32  ;;  %p4966_p1 = scmp.lt.s32.totalorder %s4095_s19, %s4095_s19 }
0x20f3   :  { %v3221_v44 = vpop.trf.xlu0  ;;  %4760 = vmatprep.subr.mxu1 %v5832_v17  ;;  %4777 = vmatpush3.msra.mxu0 %v5850_v21  ;;  %p4962_p0 = scmp.ne.s32.totalorder %s4095_s19, %s4961_s8  ;;  %p4967_p2 = scmp.lt.s32.totalorder %s4961_s8, %s4961_s8 }
0x20f4   :  { %4757 = vmatprep.mubr.msk.f32.mxu0 %vm89_vm1, %v3221_v44  ;;  %4778 = vmatprep.subr.mxu0 %v5838_v18 }
0x20f5   :  { %v3042_v45 = vpop.trf.xlu1  ;;  %4779 = vmatpush3.msra.mxu0 %v5838_v18  ;;  %3187 = vadd.xlane.f32.xlu1 %v3186_v7  ;;  %p4968_p3 = por %p4967_p2, %p4966_p1 }
0x20f6   :  { %4740 = vmatprep.mubr.msk.f32.mxu1 %vm89_vm1, %v3042_v45  ;;  %4780 = vmatprep.subr.mxu0 %v5826_v16 }
0x20f7   :  { %v3222_v8 = vpop.trf.xlu0  ;;  %4781 = vmatpush3.msra.mxu0 %v5826_v16  ;;  %p4969_p4 = pnand %p4968_p3, %p4962_p0 }
0x20f8   :  { %4758 = vmatmul.mubr.msk.f32.gmra.mxu0 %vm89_vm1, %v3222_v8  ;;  %4802 = vmatprep.subr.mxu0 %v5894_v24 }
0x20f9   :  { %v3043_v12 = vpop.trf.xlu1 }
0x20fa   :  { %4741 = vmatmul.mubr.msk.f32.vlgmr.msra.gmra.mxu1 %vm89_vm1, %v3043_v12 }
0x20fb   :  { %v3396_v46 = vpop.trf.xlu0  ;;  %4761 = vmatpush3.msra.mxu1 %v5832_v17 }
0x20fc   :  { %4762 = vmatprep.subr.mxu1 %v5820_v15 }
0x20fd   :  { %v3044_v48 = vpop.trf.xlu1  ;;  %4763 = vmatpush3.msra.mxu1 %v5820_v15 }
0x20fe   :  { %4743 = vmatprep.mubr.msk.f32.mxu1 %vm89_vm1, %v3044_v48  ;;  %4764 = vmatprep.subr.mxu1 %v5813_v13  ;;  %v3354_v48 = vmul.f32 %v5734_v10, %v5734_v10 }
0x20ff   :  { %v3397_v53 = vpop.trf.xlu0  ;;  %4765 = vmatpush3.msra.mxu1 %v5813_v13 }
0x2100   :  { %4766 = vmatprep.subr.mxu1 %v5801_v9 }
0x2101   :  { %v3045_v54 = vpop.trf.xlu1  ;;  %4767 = vmatpush3.msra.mxu1 %v5801_v9 }
0x2102   :  { %4744 = vmatmul.mubr.msk.f32.gmra.mxu1 %vm89_vm1, %v3045_v54  ;;  %4788 = vmatprep.subr.mxu1 %v5875_v47 }
0x2103   :  { %v3398_v56 = vpop.trf.xlu0  ;;  %4768 = vmatprep.mubr.msk.f32.mxu1 %vm89_vm1, %v3396_v46  ;;  %v3353_v46 = vmul.f32 %v5741_v51, %v5741_v51  ;;  %v3355_v51 = vmul.f32 %v5727_v50, %v5727_v50  ;;  %v3708_v50 = vmul.f32 %v5838_v18, %v5838_v18  ;;  %v3884_v18 = vmul.f32 %v5844_v19, %v5844_v19 }
0x2105   :  { %v3573_v57 = vpop.trf.xlu1  ;;  %v3357_v10 = vsel %vm89_vm1, %v3353_v46, 0.0  ;;  %v3360_v31 = vsel %vm89_vm1, %v3355_v51, 0.0  ;;  %v3888_v46 = vsel %vm89_vm1, %v3884_v18, 0.0 }
0x2106   :  { %4769 = vmatmul.mubr.msk.f32.vlgmr.msra.gmra.mxu1 %vm89_vm1, %v3397_v53  ;;  %4782 = vmatprep.mubr.msk.f32.mxu0 %vm89_vm1, %v3573_v57  ;;  %v3531_v57 = vmul.f32 %v5813_v13, %v5813_v13 }
0x2107   :  { %v3399_v55 = vpop.trf.xlu0  ;;  %4771 = vmatprep.mubr.msk.f32.mxu1 %vm89_vm1, %v3398_v56  ;;  %4789 = vmatpush3.msra.mxu1 %v5875_v47  ;;  %v3530_v56 = vmul.f32 %v5801_v9, %v5801_v9  ;;  %v3532_v9 = vmul.f32 %v5820_v15, %v5820_v15  ;;  %v3356_v15 = vmul.f32 %v5721_v26, %v5721_v26 }
0x2108   :  { %4790 = vmatprep.subr.mxu1 %v5863_v29 }
0x2109   :  { %v3574_v58 = vpop.trf.xlu1  ;;  %4791 = vmatpush3.msra.mxu1 %v5863_v29  ;;  %v3534_v13 = vsel %vm89_vm1, %v3530_v56, 0.0  ;;  %v3537_v33 = vsel %vm89_vm1, %v3532_v9, 0.0 }
0x210a   :  { %4772 = vmatmul.mubr.msk.f32.gmra.mxu1 %vm89_vm1, %v3399_v55  ;;  %4783 = vmatmul.mubr.msk.f32.vlgmr.msra.gmra.mxu0 %vm89_vm1, %v3574_v58 }
0x210b   :  { %v3750_v14 = vpop.trf.xlu0  ;;  %4792 = vmatprep.subr.mxu1 %v5856_v22  ;;  %4803 = vmatpush3.msra.mxu0 %v5894_v24 }
0x210c   :  { %4793 = vmatpush3.msra.mxu1 %v5856_v22  ;;  %4796 = vmatprep.mubr.msk.f32.mxu1 %vm89_vm1, %v3750_v14 }
0x210d   :  { %v3575_v59 = vpop.trf.xlu1  ;;  %4794 = vmatprep.subr.mxu1 %v5844_v19  ;;  %4804 = vmatprep.subr.mxu0 %v5888_v23 }
0x210e   :  { %4785 = vmatprep.mubr.msk.f32.mxu0 %vm89_vm1, %v3575_v59  ;;  %4795 = vmatpush3.msra.mxu1 %v5844_v19 }
0x210f   :  { %v3751_v61 = vpop.trf.xlu0  ;;  %4805 = vmatpush3.msra.mxu0 %v5888_v23  ;;  %4816 = vmatprep.subr.mxu1 %v5894_v24 }
0x2110   :  { %4797 = vmatmul.mubr.msk.f32.vlgmr.msra.gmra.mxu1 %vm89_vm1, %v3751_v61  ;;  %4806 = vmatprep.subr.mxu0 %v5881_v63 }
0x2111   :  { %v3576_v0 = vpop.trf.xlu1  ;;  %4807 = vmatpush3.msra.mxu0 %v5881_v63  ;;  %4820 = vmatpush3.msra.mxu1 %v5894_v24 }
0x2112   :  { %4786 = vmatmul.mubr.msk.f32.gmra.mxu0 %vm89_vm1, %v3576_v0  ;;  %4808 = vmatprep.subr.mxu0 %v5869_v60  ;;  %v3358_v0 = vsel %vm89_vm1, %v3354_v48, 0.0  ;;  %v3889_v48 = vsel %vm89_vm1, %v3885_v35, 0.0 }
0x2113   :  { %v3752_v2 = vpop.trf.xlu0  ;;  %4809 = vmatpush3.msra.mxu0 %v5869_v60  ;;  %4817 = vmatprep.subr.mxu1 %v5888_v23 }
0x2114   :  { %4799 = vmatprep.mubr.msk.f32.mxu1 %vm89_vm1, %v3752_v2  ;;  %4821 = vmatpush3.msra.mxu1 %v5888_v23 }
0x2115   :  { %v3927_v5 = vpop.trf.xlu1  ;;  %4818 = vmatprep.subr.mxu1 %v5881_v63 }
0x2116   :  { %4810 = vmatprep.mubr.msk.f32.mxu0 %vm89_vm1, %v3927_v5  ;;  %4822 = vmatpush3.msra.mxu1 %v5881_v63  ;;  %v3535_v5 = vsel %vm89_vm1, %v3531_v57, 0.0 }
0x2117   :  { %v3753_v42 = vpop.trf.xlu0  ;;  %4819 = vmatprep.subr.mxu1 %v5869_v60  ;;  %v3536_v28 = vadd.f32 %v3535_v5, %v3534_v13  ;;  %v3887_v13 = vmul.f32 %v5875_v47, %v5875_v47 }
0x2118   :  { %4800 = vmatmul.mubr.msk.f32.gmra.mxu1 %vm89_vm1, %v3753_v42 }
0x2119   :  { %v3928_v6 = vpop.trf.xlu1  ;;  %4823 = vmatpush3.msra.mxu1 %v5869_v60  ;;  %v3538_v19 = vadd.f32 %v3537_v33, %v3536_v28  ;;  %v3893_v28 = vsel %vm89_vm1, %v3887_v13, 0.0 }
0x211a   :  { %4811 = vmatmul.mubr.msk.f32.vlgmr.msra.gmra.mxu0 %vm89_vm1, %v3928_v6  ;;  %v3707_v6 = vmul.f32 %v5826_v16, %v5826_v16 }
0x211c   :  { %v3711_v7 = vsel %vm89_vm1, %v3707_v6, 0.0 }
0x211d   :  { %v3929_v20 = vpop.trf.xlu1 }
0x211e   :  { %4813 = vmatprep.mubr.msk.f32.mxu1 %vm89_vm1, %v3929_v20 }
0x2121   :  { %v3930_v25 = vpop.trf.xlu1 }
0x2122   :  { %4814 = vmatmul.mubr.msk.f32.vlgmr.msra.gmra.mxu1 %vm89_vm1, %v3930_v25  ;;  %v3359_v25 = vadd.f32 %v3358_v0, %v3357_v10  ;;  %v3890_v0 = vadd.f32 %v3889_v48, %v3888_v46 }
0x21ab   :  { %v3016_v11 = vpop.f32.mrf.mxu1 }
0x21ac   :  { %v3017_v49 = vadd.f32 %v4224_v1, %v3016_v11  ;;  %v3712_v1 = vsel %vm89_vm1, %v3708_v50, 0.0 }
0x21ad   :  { %v4731_v4 = vpop.f32.mrf.mxu1 }
0x21ae   :  { %3021 = vst.msk [vmem:[#allocation2] sm:$0x3] %vm3020_vm6, %v3017_v49  ;;  %v3361_v4 = vadd.f32 %v3360_v31, %v3359_v25 }
0x21b0   :  { %v4756_v36 = vpop.f32.mrf.mxu0 }
0x21b1   :  { %v3333_v38 = vmul.f32 %v4756_v36, %v4756_v36  ;;  %v3362_v36 = vsel %vm89_vm1, %v3356_v15, 0.0 }
0x21b2   :  { %v3313_v37 = vpop.f32.mrf.mxu0  ;;  %v3363_v57 = vadd.f32 %v3362_v36, %v3361_v4 }
0x21b3   :  { %v3332_v43 = vmul.f32 %v3313_v37, %v3313_v37  ;;  %v3337_v40 = vsel %vm89_vm1, %v3333_v38, 0.0 }
0x21b5   :  { %v3336_v41 = vsel %vm89_vm1, %v3332_v43, 0.0  ;;  %v3539_v43 = vsel %vm89_vm1, %v3533_v27, 0.0 }
0x21b6   :  { %v3338_v53 = vadd.f32 %v3337_v40, %v3336_v41  ;;  %v3710_v41 = vmul.f32 %v5749_v52, %v5749_v52 }
0x21b8   :  { %v4759_v39 = vpop.f32.mrf.mxu0  ;;  %v3716_v10 = vsel %vm89_vm1, %v3710_v41, 0.0 }
0x21b9   :  { %v3335_v44 = vmul.f32 %v4759_v39, %v4759_v39 }
0x21ba   :  { %v4742_v45 = vpop.f32.mrf.mxu1  ;;  %v3323_v8 = vpop.f32.mrf.mxu0 }
0x21bb   :  { %v3334_v12 = vmul.f32 %v3323_v8, %v3323_v8  ;;  %v3341_v55 = vsel %vm89_vm1, %v3335_v44, 0.0  ;;  %v3156_v2 = vmul.f32 %v4742_v45, %v4742_v45  ;;  %v3713_v44 = vadd.f32 %v3712_v1, %v3711_v7 }
0x21bc   :  { %v3136_v54 = vpop.f32.mrf.mxu1  ;;  %v3714_v45 = vsel %vm89_vm1, %v3709_v34, 0.0 }
0x21bd   :  { %v3339_v58 = vsel %vm89_vm1, %v3334_v12, 0.0  ;;  %v3155_v59 = vmul.f32 %v3136_v54, %v3136_v54  ;;  %v3160_v30 = vsel %vm89_vm1, %v3156_v2, 0.0 }
0x21be   :  { %v3340_v14 = vadd.f32 %v3339_v58, %v3338_v53  ;;  %v3886_v53 = vmul.f32 %v5863_v29, %v5863_v29 }
0x21bf   :  { %v3159_v20 = vsel %vm89_vm1, %v3155_v59, 0.0  ;;  %v4062_v59 = vmul.f32 %v5881_v63, %v5881_v63  ;;  %v4063_v63 = vmul.f32 %v5888_v23, %v5888_v23  ;;  %v4064_v23 = vmul.f32 %v5894_v24, %v5894_v24 }
0x21c0   :  { %v3342_v61 = vadd.f32 %v3341_v55, %v3340_v14  ;;  %v3161_v3 = vadd.f32 %v3160_v30, %v3159_v20  ;;  %v3540_v55 = vadd.f32 %v3539_v43, %v3538_v19  ;;  %v4061_v14 = vmul.f32 %v5869_v60, %v5869_v60 }
0x21c1   :  { %v3891_v6 = vsel %vm89_vm1, %v3886_v53, 0.0  ;;  %v4066_v20 = vsel %vm89_vm1, %v4062_v59, 0.0  ;;  %v4068_v33 = vsel %vm89_vm1, %v4063_v63, 0.0  ;;  %v4070_v4 = vsel %vm89_vm1, %v4064_v23, 0.0 }
0x21c2   :  { %v4745_v42 = vpop.f32.mrf.mxu1  ;;  %3343 = vadd.xlane.f32.xlu1 %v3342_v61  ;;  %v3715_v61 = vadd.f32 %v3714_v45, %v3713_v44  ;;  %v4065_v50 = vsel %vm89_vm1, %v4061_v14, 0.0  ;;  %v3892_v47 = vadd.f32 %v3891_v6, %v3890_v0 }
0x21c3   :  { %v3158_v32 = vmul.f32 %v4745_v42, %v4745_v42 }
0x21c4   :  { %v3146_v62 = vpop.f32.mrf.mxu1  ;;  %v3717_v27 = vadd.f32 %v3716_v10, %v3715_v61 }
0x21c5   :  { %v3157_v16 = vmul.f32 %v3146_v62, %v3146_v62  ;;  %v3164_v37 = vsel %vm89_vm1, %v3158_v32, 0.0 }
0x21c6   :  { %v4770_v26 = vpop.f32.mrf.mxu1 }
0x21c7   :  { %v3162_v17 = vsel %vm89_vm1, %v3157_v16, 0.0  ;;  %v3510_v21 = vmul.f32 %v4770_v26, %v4770_v26  ;;  %v4067_v16 = vadd.f32 %v4066_v20, %v4065_v50 }
0x21c8   :  { %v3163_v11 = vadd.f32 %v3162_v17, %v3161_v3  ;;  %v3490_v49 = vpop.f32.mrf.mxu1 }
0x21c9   :  { %v3509_v38 = vmul.f32 %v3490_v49, %v3490_v49  ;;  %v3514_v52 = vsel %vm89_vm1, %v3510_v21, 0.0  ;;  %v4069_v49 = vadd.f32 %v4068_v33, %v4067_v16 }
0x21ca   :  { %v4773_v39 = vpop.f32.mrf.mxu1  ;;  %v4784_v22 = vpop.f32.mrf.mxu0  ;;  %v3165_v40 = vadd.f32 %v3164_v37, %v3163_v11  ;;  %v3894_v11 = vadd.f32 %v3893_v28, %v3892_v47 }
0x21cb   :  { %v3513_v8 = vsel %vm89_vm1, %v3509_v38, 0.0  ;;  %v3512_v12 = vmul.f32 %v4773_v39, %v4773_v39  ;;  %v3687_v5 = vmul.f32 %v4784_v22, %v4784_v22  ;;  %v4071_v41 = vadd.f32 %v4070_v4, %v4069_v49 }
0x21cc   :  { %v3500_v54 = vpop.f32.mrf.mxu1  ;;  %3166 = vadd.xlane.f32.xlu0 %v3165_v40  ;;  %v3667_v56 = vpop.f32.mrf.mxu0  ;;  %v3515_v51 = vadd.f32 %v3514_v52, %v3513_v8 }
0x21cd   :  { %v3511_v58 = vmul.f32 %v3500_v54, %v3500_v54  ;;  %v3518_v29 = vsel %vm89_vm1, %v3512_v12, 0.0  ;;  %v3686_v2 = vmul.f32 %v3667_v56, %v3667_v56  ;;  %v3691_v30 = vsel %vm89_vm1, %v3687_v5, 0.0 }
0x21cf   :  { %v3516_v9 = vsel %vm89_vm1, %v3511_v58, 0.0  ;;  %v3690_v31 = vsel %vm89_vm1, %v3686_v2, 0.0 }
0x21d0   :  { %v3517_v42 = vadd.f32 %v3516_v9, %v3515_v51  ;;  %3364 = vadd.xlane.f32.xlu0 %v3363_v57  ;;  %v4798_v60 = vpop.f32.mrf.mxu1  ;;  %v3692_v35 = vadd.f32 %v3691_v30, %v3690_v31 }
0x21d1   :  { %v3864_v34 = vmul.f32 %v4798_v60, %v4798_v60 }
0x21d2   :  { %v4787_v25 = vpop.f32.mrf.mxu0  ;;  %v3519_v62 = vadd.f32 %v3518_v29, %v3517_v42  ;;  %v3844_v15 = vpop.f32.mrf.mxu1 }
0x21d3   :  { %v3689_v18 = vmul.f32 %v4787_v25, %v4787_v25  ;;  %v3863_v26 = vmul.f32 %v3844_v15, %v3844_v15  ;;  %v3868_v24 = vsel %vm89_vm1, %v3864_v34, 0.0 }
0x21d4   :  { %3541 = vadd.xlane.f32.xlu0 %v3540_v55  ;;  %v3677_v32 = vpop.f32.mrf.mxu0  ;;  %3520 = vadd.xlane.f32.xlu1 %v3519_v62 }
0x21d5   :  { %v3688_v3 = vmul.f32 %v3677_v32, %v3677_v32  ;;  %v3695_v36 = vsel %vm89_vm1, %v3689_v18, 0.0  ;;  %v3867_v19 = vsel %vm89_vm1, %v3863_v26, 0.0 }
0x21d6   :  { %v3869_v22 = vadd.f32 %v3868_v24, %v3867_v19 }
0x21d7   :  { %v3693_v17 = vsel %vm89_vm1, %v3688_v3, 0.0 }
0x21d8   :  { %v3694_v7 = vadd.f32 %v3693_v17, %v3692_v35  ;;  %v4801_v1 = vpop.f32.mrf.mxu1  ;;  %3718 = vadd.xlane.f32.xlu0 %v3717_v27 }
0x21d9   :  { %v3866_v37 = vmul.f32 %v4801_v1, %v4801_v1 }
0x21da   :  { %v3854_v21 = vpop.f32.mrf.mxu1  ;;  %v4812_v38 = vpop.f32.mrf.mxu0  ;;  %v3696_v43 = vadd.f32 %v3695_v36, %v3694_v7 }
0x21db   :  { %v3865_v39 = vmul.f32 %v3854_v21, %v3854_v21  ;;  %v3872_v44 = vsel %vm89_vm1, %v3866_v37, 0.0  ;;  %v4041_v48 = vmul.f32 %v4812_v38, %v4812_v38 }
0x21dc   :  { %v4021_v40 = vpop.f32.mrf.mxu0  ;;  %3697 = vadd.xlane.f32.xlu1 %v3696_v43  ;;  %3895 = vadd.xlane.f32.xlu0 %v3894_v11 }
0x21dd   :  { %v3870_v45 = vsel %vm89_vm1, %v3865_v39, 0.0  ;;  %v4040_v12 = vmul.f32 %v4021_v40, %v4021_v40  ;;  %v4045_v57 = vsel %vm89_vm1, %v4041_v48, 0.0 }
0x21de   :  { %v3871_v8 = vadd.f32 %v3870_v45, %v3869_v22 }
0x21df   :  { %v4044_v54 = vsel %vm89_vm1, %v4040_v12, 0.0 }
0x21e0   :  { %v3873_v46 = vadd.f32 %v3872_v44, %v3871_v8  ;;  %4072 = vadd.xlane.f32.xlu0 %v4071_v41  ;;  %v4046_v58 = vadd.f32 %v4045_v57, %v4044_v54 }
0x21e2   :  { %v4815_v53 = vpop.f32.mrf.mxu1  ;;  %3874 = vadd.xlane.f32.xlu1 %v3873_v46 }
0x21e3   :  { %v4043_v55 = vmul.f32 %v4815_v53, %v4815_v53 }
0x21e4   :  { %v4031_v56 = vpop.f32.mrf.mxu1 }
0x21e5   :  { %v4042_v52 = vmul.f32 %v4031_v56, %v4031_v56  ;;  %v4049_v51 = vsel %vm89_vm1, %v4043_v55, 0.0 }
0x21e7   :  { %v4047_v14 = vsel %vm89_vm1, %v4042_v52, 0.0 }
0x21e8   :  { %v4048_v59 = vadd.f32 %v4047_v14, %v4046_v58 }
0x21ea   :  { %v4050_v61 = vadd.f32 %v4049_v51, %v4048_v59 }
0x21ec   :  { %4051 = vadd.xlane.f32.xlu1 %v4050_v61 }
0x21ed   :  { %4972 = shalt.err (!%p4969_p4)
}
0x21ee   :  { %4097 = dma.vmem_to_hbm [thread:$0]  %s4095_s19, 32, %s6098_s17, [#allocation3]   ;;  %v3188_v10 = vpop.xlane.xlu1 %3187  ;;  %vm4086_vm7 = vcmask 0  }
0x21ef   :  { %v3189_v0 = vrot.slane %v3188_v10, 4 }
0x21f1   :  { %v3190_v2 = vadd.f32 %v3189_v0, %v3188_v10 }
0x21f3   :  { %v3191_v5 = vrot.slane %v3190_v2, 2 }
0x21f5   :  { %v3192_v63 = vadd.f32 %v3191_v5, %v3190_v2 }
0x21f7   :  { %v3193_v31 = vrot.slane %v3192_v63, 1 }
0x21f9   :  { %v3194_v34 = vadd.f32 %v3193_v31, %v3192_v63 }
0x224b   :  { %v3344_v29 = vpop.xlane.xlu1 %3343 }
0x224c   :  { %v3345_v9 = vrot.slane %v3344_v29, 4 }
0x224e   :  { %v3346_v13 = vadd.f32 %v3345_v9, %v3344_v29 }
0x2250   :  { %v3347_v42 = vrot.slane %v3346_v13, 2 }
0x2252   :  { %v3348_v25 = vadd.f32 %v3347_v42, %v3346_v13 }
0x2254   :  { %v3349_v32 = vrot.slane %v3348_v25, 1 }
0x2255   :  { %v3167_v60 = vpop.xlane.xlu0 %3166 }
0x2256   :  { %v3168_v6 = vrot.slane %v3167_v60, 4  ;;  %v3350_v7 = vadd.f32 %v3349_v32, %v3348_v25 }
0x2258   :  { %v3169_v50 = vadd.f32 %v3168_v6, %v3167_v60 }
0x2259   :  { %v3365_v20 = vpop.xlane.xlu0 %3364 }
0x225a   :  { %v3170_v62 = vrot.slane %v3169_v50, 2  ;;  %v3366_v15 = vrot.slane %v3365_v20, 4 }
0x225c   :  { %v3367_v27 = vadd.f32 %v3366_v15, %v3365_v20  ;;  %v3171_v47 = vadd.f32 %v3170_v62, %v3169_v50 }
0x225d   :  { %v3542_v28 = vpop.xlane.xlu0 %3541  ;;  %v3521_v30 = vpop.xlane.xlu1 %3520 }
0x225e   :  { %v3368_v23 = vrot.slane %v3367_v27, 2  ;;  %v3543_v16 = vrot.slane %v3542_v28, 4  ;;  %v3522_v33 = vrot.slane %v3521_v30, 4  ;;  %v3172_v18 = vrot.slane %v3171_v47, 1 }
0x2260   :  { %v3544_v3 = vadd.f32 %v3543_v16, %v3542_v28  ;;  %v3523_v26 = vadd.f32 %v3522_v33, %v3521_v30  ;;  %v3173_v35 = vadd.f32 %v3172_v18, %v3171_v47  ;;  %v3369_v17 = vadd.f32 %v3368_v23, %v3367_v27 }
0x2261   :  { %v3719_v1 = vpop.xlane.xlu0 %3718 }
0x2262   :  { %v3545_v11 = vrot.slane %v3544_v3, 2  ;;  %v3524_v49 = vrot.slane %v3523_v26, 2  ;;  %4824 = vpush %v3173_v35  ;;  %v3720_v4 = vrot.slane %v3719_v1, 4  ;;  %v3370_v36 = vrot.slane %v3369_v17, 1 }
0x2263   :  { %4826 = vpush %v3194_v34 }
0x2264   :  { %4828 = vpush %v3350_v7  ;;  %v3721_v24 = vadd.f32 %v3720_v4, %v3719_v1  ;;  %v3371_v19 = vadd.f32 %v3370_v36, %v3369_v17  ;;  %v3525_v37 = vadd.f32 %v3524_v49, %v3523_v26  ;;  %v3546_v21 = vadd.f32 %v3545_v11, %v3544_v3 }
0x2265   :  { %v3698_v38 = vpop.xlane.xlu1 %3697  ;;  %v3896_v43 = vpop.xlane.xlu0 %3895 }
0x2266   :  { %v3722_v39 = vrot.slane %v3721_v24, 2  ;;  %v3699_v22 = vrot.slane %v3698_v38, 4  ;;  %4830 = vpush %v3371_v19  ;;  %v3526_v40 = vrot.slane %v3525_v37, 1  ;;  %v3547_v41 = vrot.slane %v3546_v21, 1 }
0x2267   :  { %v3897_v44 = vrot.slane %v3896_v43, 4 }
0x2268   :  { %v3700_v45 = vadd.f32 %v3699_v22, %v3698_v38  ;;  %v3527_v8 = vadd.f32 %v3526_v40, %v3525_v37  ;;  %v3548_v12 = vadd.f32 %v3547_v41, %v3546_v21  ;;  %v3723_v46 = vadd.f32 %v3722_v39, %v3721_v24 }
0x2269   :  { %v3898_v48 = vadd.f32 %v3897_v44, %v3896_v43  ;;  %v4073_v54 = vpop.xlane.xlu0 %4072 }
0x226a   :  { %v3701_v53 = vrot.slane %v3700_v45, 2  ;;  %4832 = vpush %v3527_v8  ;;  %v3724_v55 = vrot.slane %v3723_v46, 1  ;;  %v4074_v14 = vrot.slane %v4073_v54, 4 }
0x226b   :  { %4834 = vpush %v3548_v12  ;;  %v3899_v56 = vrot.slane %v3898_v48, 2  ;;  %v3875_v57 = vpop.xlane.xlu1 %3874 }
0x226c   :  { %v3876_v52 = vrot.slane %v3875_v57, 4  ;;  %v3702_v58 = vadd.f32 %v3701_v53, %v3700_v45  ;;  %v3725_v10 = vadd.f32 %v3724_v55, %v3723_v46  ;;  %v4075_v9 = vadd.f32 %v4074_v14, %v4073_v54 }
0x226d   :  { %v3900_v59 = vadd.f32 %v3899_v56, %v3898_v48 }
0x226e   :  { %v3877_v51 = vadd.f32 %v3876_v52, %v3875_v57  ;;  %v3703_v61 = vrot.slane %v3702_v58, 1  ;;  %v4076_v42 = vrot.slane %v4075_v9, 2 }
0x226f   :  { %v3901_v2 = vrot.slane %v3900_v59, 1 }
0x2270   :  { %v3878_v0 = vrot.slane %v3877_v51, 2  ;;  %v3704_v29 = vadd.f32 %v3703_v61, %v3702_v58  ;;  %v4077_v25 = vadd.f32 %v4076_v42, %v4075_v9 }
0x2271   :  { %v3902_v6 = vadd.f32 %v3901_v2, %v3900_v59 }
0x2272   :  { %4836 = vpush %v3704_v29  ;;  %v3879_v13 = vadd.f32 %v3878_v0, %v3877_v51  ;;  %v4078_v31 = vrot.slane %v4077_v25, 1 }
0x2273   :  { %4838 = vpush %v3725_v10 }
0x2274   :  { %v3880_v5 = vrot.slane %v3879_v13, 1  ;;  %v4079_v28 = vadd.f32 %v4078_v31, %v4077_v25 }
0x2275   :  { %v4052_v60 = vpop.xlane.xlu1 %4051 }
0x2276   :  { %v4053_v63 = vrot.slane %v4052_v60, 4  ;;  %v3881_v50 = vadd.f32 %v3880_v5, %v3879_v13 }
0x2278   :  { %v4054_v20 = vadd.f32 %v4053_v63, %v4052_v60  ;;  %4840 = vpush %v3881_v50 }
0x2279   :  { %4842 = vpush %v3902_v6 }
0x227a   :  { %v4055_v62 = vrot.slane %v4054_v20, 2 }
0x227c   :  { %v4056_v15 = vadd.f32 %v4055_v62, %v4054_v20 }
0x227e   :  { %v4057_v27 = vrot.slane %v4056_v15, 1 }
0x2280   :  { %v4058_v47 = vadd.f32 %v4057_v27, %v4056_v15 }
0x2282   :  { %4844 = vpush %v4058_v47 }
0x2283   :  { %4846 = vpush %v4079_v28 }
0x2293   :  { %s4825_s17 = spop %4824 }
0x2294   :  { %s4827_s22 = spop %4826 }
0x2295   :  { %s3196_s23 = smul.f32 2.0, %s4827_s22  ;;  %s4829_s25 = spop %4828 }
0x2297   :  { %s3197_s6 = ssub.f32 %s4825_s17, %s3196_s23  ;;  %s4831_s29 = spop %4830 }
0x2298   :  { %s3373_s2 = smul.f32 2.0, %s4831_s29  ;;  %s5019_s17 = smov [#allocation4]  }
0x2299   :  { %s3352_s7 = sadd.f32 %s4829_s25, %s3197_s6  ;;  %s4104_s22 = sshll.u32 %s5019_s17, 4  ;;  %s4105_s22 = int_to_ptr.vmem [resolvable:$true] %s4104_s22 }
0x229a   :  { %s4981_s25 = scalar_lea.vmem %s4105_s22, 16  ;;  %s4985_s6 = scalar_lea.vmem %s4105_s22, 32 }
0x229b   :  { %s4833_s21 = spop %4832  ;;  %s3374_s26 = ssub.f32 %s3352_s7, %s3373_s2 }
0x229c   :  { %s4835_s14 = spop %4834  ;;  %p4982_p5 = scmp.ne.s32.totalorder %s4105_s22, %s4981_s25 }
0x229d   :  { %s3529_s3 = sadd.f32 %s4833_s21, %s3374_s26  ;;  %s3550_s4 = smul.f32 2.0, %s4835_s14 }
0x229e   :  { %p4986_p6 = scmp.lt.s32.totalorder %s4105_s22, %s4105_s22  ;;  %p4987_p7 = scmp.lt.s32.totalorder %s4985_s6, %s4981_s25 }
0x229f   :  { %s3551_s11 = ssub.f32 %s3529_s3, %s3550_s4 }
0x22a0   :  { %p4988_p8 = por %p4987_p7, %p4986_p6 }
0x22a2   :  { %p4989_p9 = pnand %p4988_p8, %p4982_p5 }
0x22a3   :  { %s4837_s9 = spop %4836 }
0x22a4   :  { %s4839_s10 = spop %4838  ;;  %s3706_s24 = sadd.f32 %s4837_s9, %s3551_s11 }
0x22a5   :  { %s3727_s5 = smul.f32 2.0, %s4839_s10 }
0x22a7   :  { %s3728_s27 = ssub.f32 %s3706_s24, %s3727_s5 }
0x22a9   :  { %s4841_s28 = spop %4840 }
0x22aa   :  { %s4843_s30 = spop %4842  ;;  %s3883_s16 = sadd.f32 %s4841_s28, %s3728_s27 }
0x22ab   :  { %s3904_s0 = smul.f32 2.0, %s4843_s30 }
0x22ad   :  { %s3905_s12 = ssub.f32 %s3883_s16, %s3904_s0 }
0x22b3   :  { %s4845_s13 = spop %4844 }
0x22b4   :  { %s4060_s15 = sadd.f32 %s4845_s13, %s3905_s12  ;;  %s4847_s19 = spop %4846 }
0x22b5   :  { %s4081_s8 = smul.f32 2.0, %s4847_s19 }
0x22b7   :  { %s4082_s1 = ssub.f32 %s4060_s15, %s4081_s8 }
0x22b9   :  { %s4083_s20 = sadd.f32 192.0, %s4082_s1 }
0x22bb   :  { %s4084_s23 = smul.f32 0.01, %s4083_s20 }
0x22bd   :  { %v4085_v30 = vstv %s4084_s23 }
0x22be   :  { %4087 = vst.msk [vmem:[#allocation4] sm:$0x1] %vm4086_vm7, %v4085_v30 }
0x22bf   :  { %4992 = shalt.err (!%p4989_p9)
}
0x22c0   :  { %4107 = dma.vmem_to_hbm [thread:$0]  %s4105_s22, 16, %s6099_s18, [#allocation5]  }
0x22c1   :  { %5001 = dma.done.wait [#allocation3], 32  }
0x22c2   :  { %5002 = vsyncadd [#allocation3], 4294967264 }
0x22c3   :  { %5003 = dma.done.wait [#allocation5], 16  }
0x22c4   :  { %5004 = vsyncadd [#allocation5], 4294967280 }
0x22c5   :  { %4114 = vsyncpa [#allocation3], 1 }
0x22c6   :  { %4115 = vsyncpa [#allocation5], 1 }

</bundles_post_ra>
